<compile_context>
chip_gen: v7x
topology: tpu7x:2x2x1
jax: 0.10.0
libtpu: 0.0.40
codegen_flags: <defaults>
</compile_context>

<pallas_src>
import functools

import jax
import jax.numpy as jnp
from jax.experimental import pallas as pl
from jax.experimental.pallas import tpu as pltpu

# ---------------- small ViT config (scaled-down vit_base_patch16_224) ----------------
IMG = 32
PATCH = 16
IN_CHANS = 3
EMBED_DIM = 128
DEPTH = 2
NUM_HEADS = 4
HEAD_DIM = EMBED_DIM // NUM_HEADS
MLP_DIM = 4 * EMBED_DIM
NUM_CLASSES = 10
HEAD_PAD = 128                      # lane-dense padded classifier width (sliced to 10 outside)
LN_EPS = 1e-6

N_PATCHES = (IMG // PATCH) ** 2
SEQ = N_PATCHES + 1
PATCH_K = IN_CHANS * PATCH * PATCH


# ---------------- in-kernel helpers (operate on loaded f32 arrays) ----------------
def _ln(x, g, b, eps):
    mu = jnp.mean(x, axis=-1, keepdims=True)
    xc = x - mu
    var = jnp.mean(xc * xc, axis=-1, keepdims=True)
    return xc * jax.lax.rsqrt(var + eps) * g + b


def _mm(x_f32, w_bf16, b_f32):
    """bf16 MXU matmul with f32 accumulation + f32 bias."""
    y = jnp.dot(x_f32.astype(jnp.bfloat16), w_bf16, preferred_element_type=jnp.float32)
    return y + b_f32


# ---------------- single fused ViT forward kernel ----------------
def _vit_kernel(patches_ref, patch_w_ref, patch_b_ref, cls_ref, pos_ref,
                ln1_g_ref, ln1_b_ref,
                q_w_ref, q_b_ref, k_w_ref, k_b_ref, v_w_ref, v_b_ref,
                proj_w_ref, proj_b_ref,
                ln2_g_ref, ln2_b_ref,
                fc1_w_ref, fc1_b_ref, fc2_w_ref, fc2_b_ref,
                lnf_g_ref, lnf_b_ref, head_w_ref, head_b_ref,
                o_ref,
                *, batch, n_patches, num_heads, head_dim, depth, eps):
    f32 = jnp.float32
    bf16 = jnp.bfloat16
    seq = n_patches + 1
    scale = head_dim ** -0.5

    # ---- patch embed for the whole flattened batch (B*NP, K) + cls token + pos embed ----
    emb = _mm(patches_ref[...].astype(f32), patch_w_ref[...], patch_b_ref[...])   # (B*NP, D)
    cls = cls_ref[...].astype(f32)                                                # (1, D)
    pos = pos_ref[...].astype(f32)                                                # (S, D)
    rows = []
    for b in range(batch):                     # static, tiny: sublane concat only
        rows.append(cls + pos[0:1, :])
        rows.append(emb[b * n_patches:(b + 1) * n_patches, :] + pos[1:, :])
    x = jnp.concatenate(rows, axis=0)          # (B*S, D) f32 residual stream, VMEM-resident

    # ---- DEPTH transformer blocks (weights indexed along the leading depth axis) ----
    for d in range(depth):
        # --- multi-head self-attention ---
        y = _ln(x, ln1_g_ref[d].astype(f32), ln1_b_ref[d].astype(f32), eps)
        yb = y.astype(bf16)                    # cast once, reused by q/k/v matmuls
        q = jnp.dot(yb, q_w_ref[d], preferred_element_type=f32) + q_b_ref[d].astype(f32)
        k = jnp.dot(yb, k_w_ref[d], preferred_element_type=f32) + k_b_ref[d].astype(f32)
        v = jnp.dot(yb, v_w_ref[d], preferred_element_type=f32) + v_b_ref[d].astype(f32)
        qb16, kb16, vb16 = q.astype(bf16), k.astype(bf16), v.astype(bf16)
        proj_w = proj_w_ref[d]                 # (D, D) bf16, loaded once per block

        batch_outs = []
        for b in range(batch):                 # static unroll; only scores need per-example work
            r0, r1 = b * seq, (b + 1) * seq
            out_b = None
            for h in range(num_heads):
                c0, c1 = h * head_dim, (h + 1) * head_dim
                qh = qb16[r0:r1, c0:c1]
                kh = kb16[r0:r1, c0:c1]
                vh = vb16[r0:r1, c0:c1]
                s = jax.lax.dot_general(qh, kh, (((1,), (1,)), ((), ())),
                                        preferred_element_type=f32) * scale       # (S, S)
                s = s - jnp.max(s, axis=-1, keepdims=True)
                p = jnp.exp(s)
                p = p * pl.reciprocal(jnp.sum(p, axis=-1, keepdims=True), approx=True)
                hv = jnp.dot(p.astype(bf16), vh, preferred_element_type=f32)      # (S, Hd)
                # fold the lane-concat of heads into the output projection:
                #   concat_h(head_h) @ W == sum_h head_h @ W[h*Hd:(h+1)*Hd, :]
                contrib = jnp.dot(hv.astype(bf16), proj_w[c0:c1, :],
                                  preferred_element_type=f32)                     # (S, D)
                out_b = contrib if out_b is None else out_b + contrib
            batch_outs.append(out_b)
        attn = jnp.concatenate(batch_outs, axis=0) + proj_b_ref[d].astype(f32)    # (B*S, D)
        x = x + attn                                                              # residual 1

        # --- MLP ---
        y2 = _ln(x, ln2_g_ref[d].astype(f32), ln2_b_ref[d].astype(f32), eps)
        hid = jnp.dot(y2.astype(bf16), fc1_w_ref[d], preferred_element_type=f32) \
            + fc1_b_ref[d].astype(f32)
        # TODO(synk): timm uses exact erf-GELU; tanh-approx GELU used here for Mosaic-safe lowering.
        hid = jax.nn.gelu(hid, approximate=True)
        mlp = jnp.dot(hid.astype(bf16), fc2_w_ref[d], preferred_element_type=f32) \
            + fc2_b_ref[d].astype(f32)
        x = x + mlp                                                               # residual 2

    # ---- final LN on the cls rows only + lane-dense padded classifier head ----
    cls_rows = jnp.concatenate([x[b * seq:b * seq + 1, :] for b in range(batch)], axis=0)
    yf = _ln(cls_rows, lnf_g_ref[...].astype(f32), lnf_b_ref[...].astype(f32), eps)
    logits = jnp.dot(yf.astype(bf16), head_w_ref[...], preferred_element_type=f32) \
        + head_b_ref[...].astype(f32)
    o_ref[...] = logits.astype(o_ref.dtype)                                       # (B, HEAD_PAD)


# ---------------- model forward ----------------
def vit_forward(params, x):
    B, C, H, W = x.shape
    gh, gw = H // PATCH, W // PATCH
    n_patches = gh * gw
    K = C * PATCH * PATCH

    # unfold NCHW image into non-overlapping patches, flattening (C, ph, pw) in the same order
    # as the flattened torch Conv2d(patch_size, stride=patch_size) weight, then flatten batch
    # so the kernel sees a single (B*NP, K) matmul operand.
    patches = x.reshape(B, C, gh, PATCH, gw, PATCH)
    patches = patches.transpose(0, 2, 4, 1, 3, 5).reshape(B * n_patches, K)

    kernel = functools.partial(
        _vit_kernel, batch=B, n_patches=n_patches,
        num_heads=NUM_HEADS, head_dim=HEAD_DIM, depth=DEPTH, eps=LN_EPS)

    # Single fused pallas_call: all operands (weights + patches) are small enough to be fully
    # VMEM-resident, so no grid / BlockSpecs are needed — whole arrays are mapped into VMEM.
    logits_pad = pl.pallas_call(
        kernel,
        out_shape=jax.ShapeDtypeStruct((B, HEAD_PAD), jnp.float32),
        compiler_params=pltpu.CompilerParams(vmem_limit_bytes=64 * 1024 * 1024),
    )(patches,
      params["patch_w"], params["patch_b"], params["cls_token"], params["pos_embed"],
      params["ln1_g"], params["ln1_b"],
      params["q_w"], params["q_b"], params["k_w"], params["k_b"],
      params["v_w"], params["v_b"],
      params["proj_w"], params["proj_b"],
      params["ln2_g"], params["ln2_b"],
      params["fc1_w"], params["fc1_b"], params["fc2_w"], params["fc2_b"],
      params["ln_g"], params["ln_b"], params["head_w"], params["head_b"])

    return logits_pad[:, :NUM_CLASSES]


# ---------------- deterministic parameter init (per-block weights stacked over DEPTH) ----------------
def init_params(key):
    keys = iter(jax.random.split(key, 32))

    def nrm(shape, scale=0.02):
        return scale * jax.random.normal(next(keys), shape, dtype=jnp.float32)

    head_w = jnp.zeros((EMBED_DIM, HEAD_PAD), jnp.float32)
    head_w = head_w.at[:, :NUM_CLASSES].set(nrm((EMBED_DIM, NUM_CLASSES)))

    d, md = EMBED_DIM, MLP_DIM
    return dict(
        # matmul weights stored bf16 in HBM (MXU-native); f32 accumulation in-kernel.
        patch_w=nrm((PATCH_K, d)).astype(jnp.bfloat16),   # flattened conv weight, transposed
        patch_b=nrm((1, d)),
        cls_token=nrm((1, d)),
        pos_embed=nrm((SEQ, d)),
        ln1_g=jnp.ones((DEPTH, 1, d), jnp.float32),
        ln1_b=jnp.zeros((DEPTH, 1, d), jnp.float32),
        q_w=nrm((DEPTH, d, d)).astype(jnp.bfloat16),
        q_b=jnp.zeros((DEPTH, 1, d), jnp.float32),
        k_w=nrm((DEPTH, d, d)).astype(jnp.bfloat16),
        k_b=jnp.zeros((DEPTH, 1, d), jnp.float32),
        v_w=nrm((DEPTH, d, d)).astype(jnp.bfloat16),
        v_b=jnp.zeros((DEPTH, 1, d), jnp.float32),
        proj_w=nrm((DEPTH, d, d)).astype(jnp.bfloat16),
        proj_b=jnp.zeros((DEPTH, 1, d), jnp.float32),
        ln2_g=jnp.ones((DEPTH, 1, d), jnp.float32),
        ln2_b=jnp.zeros((DEPTH, 1, d), jnp.float32),
        fc1_w=nrm((DEPTH, d, md)).astype(jnp.bfloat16),
        fc1_b=jnp.zeros((DEPTH, 1, md), jnp.float32),
        fc2_w=nrm((DEPTH, md, d)).astype(jnp.bfloat16),
        fc2_b=jnp.zeros((DEPTH, 1, d), jnp.float32),
        ln_g=jnp.ones((1, d), jnp.float32),
        ln_b=jnp.zeros((1, d), jnp.float32),
        head_w=head_w.astype(jnp.bfloat16),               # the re-initialized nn.Linear head (padded)
        head_b=jnp.zeros((1, HEAD_PAD), jnp.float32),
    )


if __name__ == "__main__":
    key = jax.random.PRNGKey(0)
    pkey, xkey = jax.random.split(key)
    params = init_params(pkey)
    x = jax.random.normal(xkey, (2, IN_CHANS, IMG, IMG), dtype=jnp.float32)  # NCHW like PyTorch

    logits = jax.jit(vit_forward)(params, x)
    jax.block_until_ready(logits)
    assert logits.shape == (2, NUM_CLASSES), logits.shape
    assert bool(jnp.all(jnp.isfinite(logits)))
    print("KERNEL_OK")
</pallas_src>

<mosaic_0001>
module attributes {stable_mosaic.version = 11 : i64} {
  func.func @_vit_kernel(%arg0: memref<8x768xf32, #tpu.memory_space<vmem>>, %arg1: memref<768x128xbf16, #tpu.memory_space<vmem>>, %arg2: memref<1x128xf32, #tpu.memory_space<vmem>>, %arg3: memref<1x128xf32, #tpu.memory_space<vmem>>, %arg4: memref<5x128xf32, #tpu.memory_space<vmem>>, %arg5: memref<2x1x128xf32, #tpu.memory_space<vmem>>, %arg6: memref<2x1x128xf32, #tpu.memory_space<vmem>>, %arg7: memref<2x128x128xbf16, #tpu.memory_space<vmem>>, %arg8: memref<2x1x128xf32, #tpu.memory_space<vmem>>, %arg9: memref<2x128x128xbf16, #tpu.memory_space<vmem>>, %arg10: memref<2x1x128xf32, #tpu.memory_space<vmem>>, %arg11: memref<2x128x128xbf16, #tpu.memory_space<vmem>>, %arg12: memref<2x1x128xf32, #tpu.memory_space<vmem>>, %arg13: memref<2x128x128xbf16, #tpu.memory_space<vmem>>, %arg14: memref<2x1x128xf32, #tpu.memory_space<vmem>>, %arg15: memref<2x1x128xf32, #tpu.memory_space<vmem>>, %arg16: memref<2x1x128xf32, #tpu.memory_space<vmem>>, %arg17: memref<2x128x512xbf16, #tpu.memory_space<vmem>>, %arg18: memref<2x1x512xf32, #tpu.memory_space<vmem>>, %arg19: memref<2x512x128xbf16, #tpu.memory_space<vmem>>, %arg20: memref<2x1x128xf32, #tpu.memory_space<vmem>>, %arg21: memref<1x128xf32, #tpu.memory_space<vmem>>, %arg22: memref<1x128xf32, #tpu.memory_space<vmem>>, %arg23: memref<128x128xbf16, #tpu.memory_space<vmem>>, %arg24: memref<1x128xf32, #tpu.memory_space<vmem>>, %arg25: memref<2x128xf32, #tpu.memory_space<vmem>>) attributes {dimension_semantics = [], scalar_prefetch = 0 : i64, scratch_operands = 0 : i64, tpu.core_type = #tpu.core_type<tc>} {
    %c0 = arith.constant 0 : index
    %c0_0 = arith.constant 0 : index
    %0 = vector.load %arg0[%c0, %c0_0] : memref<8x768xf32, #tpu.memory_space<vmem>>, vector<8x768xf32>
    %c0_1 = arith.constant 0 : index
    %c0_2 = arith.constant 0 : index
    %1 = vector.load %arg1[%c0_1, %c0_2] : memref<768x128xbf16, #tpu.memory_space<vmem>>, vector<768x128xbf16>
    %c0_3 = arith.constant 0 : index
    %c0_4 = arith.constant 0 : index
    %2 = vector.load %arg2[%c0_3, %c0_4] : memref<1x128xf32, #tpu.memory_space<vmem>>, vector<1x128xf32>
    %3 = arith.truncf %0 : vector<8x768xf32> to vector<8x768xbf16>
    %cst = arith.constant dense<0.000000e+00> : vector<8x128xf32>
    %4 = tpu.matmul %3, %1, %cst {dimension_numbers = #tpu.dot_dimension_numbers<[1], [0], [0], [1], [0, 0, 1, 1], [], []>} : vector<8x768xbf16>, vector<768x128xbf16>, vector<8x128xf32> -> vector<8x128xf32>
    %5 = vector.broadcast %2 : vector<1x128xf32> to vector<8x128xf32>
    %6 = arith.addf %4, %5 : vector<8x128xf32>
    %c0_5 = arith.constant 0 : index
    %c0_6 = arith.constant 0 : index
    %7 = vector.load %arg3[%c0_5, %c0_6] : memref<1x128xf32, #tpu.memory_space<vmem>>, vector<1x128xf32>
    %c0_7 = arith.constant 0 : index
    %c0_8 = arith.constant 0 : index
    %8 = vector.load %arg4[%c0_7, %c0_8] : memref<5x128xf32, #tpu.memory_space<vmem>>, vector<5x128xf32>
    %9 = vector.extract_strided_slice %8 {offsets = [0, 0], sizes = [1, 128], strides = [1, 1]} : vector<5x128xf32> to vector<1x128xf32>
    %10 = arith.addf %7, %9 : vector<1x128xf32>
    %11 = vector.extract_strided_slice %6 {offsets = [0, 0], sizes = [4, 128], strides = [1, 1]} : vector<8x128xf32> to vector<4x128xf32>
    %12 = vector.extract_strided_slice %8 {offsets = [1, 0], sizes = [4, 128], strides = [1, 1]} : vector<5x128xf32> to vector<4x128xf32>
    %13 = arith.addf %11, %12 : vector<4x128xf32>
    %14 = vector.extract_strided_slice %8 {offsets = [0, 0], sizes = [1, 128], strides = [1, 1]} : vector<5x128xf32> to vector<1x128xf32>
    %15 = arith.addf %7, %14 : vector<1x128xf32>
    %16 = vector.extract_strided_slice %6 {offsets = [4, 0], sizes = [4, 128], strides = [1, 1]} : vector<8x128xf32> to vector<4x128xf32>
    %17 = vector.extract_strided_slice %8 {offsets = [1, 0], sizes = [4, 128], strides = [1, 1]} : vector<5x128xf32> to vector<4x128xf32>
    %18 = arith.addf %16, %17 : vector<4x128xf32>
    %19 = tpu.concatenate %10, %13, %15, %18 in 0 : vector<1x128xf32>, vector<4x128xf32>, vector<1x128xf32>, vector<4x128xf32> -> vector<10x128xf32>
    %c0_9 = arith.constant 0 : index
    %c0_10 = arith.constant 0 : index
    %c0_11 = arith.constant 0 : index
    %20 = vector.load %arg5[%c0_9, %c0_10, %c0_11] : memref<2x1x128xf32, #tpu.memory_space<vmem>>, vector<1x1x128xf32>
    %21 = vector.shape_cast %20 : vector<1x1x128xf32> to vector<1x128xf32>
    %c0_12 = arith.constant 0 : index
    %c0_13 = arith.constant 0 : index
    %c0_14 = arith.constant 0 : index
    %22 = vector.load %arg6[%c0_12, %c0_13, %c0_14] : memref<2x1x128xf32, #tpu.memory_space<vmem>>, vector<1x1x128xf32>
    %23 = vector.shape_cast %22 : vector<1x1x128xf32> to vector<1x128xf32>
    %cst_15 = arith.constant dense<0.000000e+00> : vector<10xf32>
    %24 = vector.multi_reduction <add>, %19, %cst_15 [1] : vector<10x128xf32> to vector<10xf32>
    %25 = vector.shape_cast %24 : vector<10xf32> to vector<10x1xf32>
    %cst_16 = arith.constant 1.280000e+02 : f32
    %26 = vector.broadcast %cst_16 : f32 to vector<10x1xf32>
    %27 = arith.divf %25, %26 : vector<10x1xf32>
    %28 = vector.broadcast %27 : vector<10x1xf32> to vector<10x128xf32>
    %29 = arith.subf %19, %28 : vector<10x128xf32>
    %30 = arith.mulf %29, %29 : vector<10x128xf32>
    %cst_17 = arith.constant dense<0.000000e+00> : vector<10xf32>
    %31 = vector.multi_reduction <add>, %30, %cst_17 [1] : vector<10x128xf32> to vector<10xf32>
    %32 = vector.shape_cast %31 : vector<10xf32> to vector<10x1xf32>
    %cst_18 = arith.constant 1.280000e+02 : f32
    %33 = vector.broadcast %cst_18 : f32 to vector<10x1xf32>
    %34 = arith.divf %32, %33 : vector<10x1xf32>
    %cst_19 = arith.constant 9.99999997E-7 : f32
    %35 = vector.broadcast %cst_19 : f32 to vector<10x1xf32>
    %36 = arith.addf %34, %35 : vector<10x1xf32>
    %37 = math.rsqrt %36 : vector<10x1xf32>
    %38 = vector.broadcast %37 : vector<10x1xf32> to vector<10x128xf32>
    %39 = arith.mulf %29, %38 : vector<10x128xf32>
    %40 = vector.broadcast %21 : vector<1x128xf32> to vector<10x128xf32>
    %41 = arith.mulf %39, %40 : vector<10x128xf32>
    %42 = vector.broadcast %23 : vector<1x128xf32> to vector<10x128xf32>
    %43 = arith.addf %41, %42 : vector<10x128xf32>
    %44 = arith.truncf %43 : vector<10x128xf32> to vector<10x128xbf16>
    %c0_20 = arith.constant 0 : index
    %c0_21 = arith.constant 0 : index
    %c0_22 = arith.constant 0 : index
    %45 = vector.load %arg7[%c0_20, %c0_21, %c0_22] : memref<2x128x128xbf16, #tpu.memory_space<vmem>>, vector<1x128x128xbf16>
    %46 = vector.shape_cast %45 : vector<1x128x128xbf16> to vector<128x128xbf16>
    %cst_23 = arith.constant dense<0.000000e+00> : vector<10x128xf32>
    %47 = tpu.matmul %44, %46, %cst_23 {dimension_numbers = #tpu.dot_dimension_numbers<[1], [0], [0], [1], [0, 0, 1, 1], [], []>} : vector<10x128xbf16>, vector<128x128xbf16>, vector<10x128xf32> -> vector<10x128xf32>
    %c0_24 = arith.constant 0 : index
    %c0_25 = arith.constant 0 : index
    %c0_26 = arith.constant 0 : index
    %48 = vector.load %arg8[%c0_24, %c0_25, %c0_26] : memref<2x1x128xf32, #tpu.memory_space<vmem>>, vector<1x1x128xf32>
    %49 = vector.shape_cast %48 : vector<1x1x128xf32> to vector<1x128xf32>
    %50 = vector.broadcast %49 : vector<1x128xf32> to vector<10x128xf32>
    %51 = arith.addf %47, %50 : vector<10x128xf32>
    %c0_27 = arith.constant 0 : index
    %c0_28 = arith.constant 0 : index
    %c0_29 = arith.constant 0 : index
    %52 = vector.load %arg9[%c0_27, %c0_28, %c0_29] : memref<2x128x128xbf16, #tpu.memory_space<vmem>>, vector<1x128x128xbf16>
    %53 = vector.shape_cast %52 : vector<1x128x128xbf16> to vector<128x128xbf16>
    %cst_30 = arith.constant dense<0.000000e+00> : vector<10x128xf32>
    %54 = tpu.matmul %44, %53, %cst_30 {dimension_numbers = #tpu.dot_dimension_numbers<[1], [0], [0], [1], [0, 0, 1, 1], [], []>} : vector<10x128xbf16>, vector<128x128xbf16>, vector<10x128xf32> -> vector<10x128xf32>
    %c0_31 = arith.constant 0 : index
    %c0_32 = arith.constant 0 : index
    %c0_33 = arith.constant 0 : index
    %55 = vector.load %arg10[%c0_31, %c0_32, %c0_33] : memref<2x1x128xf32, #tpu.memory_space<vmem>>, vector<1x1x128xf32>
    %56 = vector.shape_cast %55 : vector<1x1x128xf32> to vector<1x128xf32>
    %57 = vector.broadcast %56 : vector<1x128xf32> to vector<10x128xf32>
    %58 = arith.addf %54, %57 : vector<10x128xf32>
    %c0_34 = arith.constant 0 : index
    %c0_35 = arith.constant 0 : index
    %c0_36 = arith.constant 0 : index
    %59 = vector.load %arg11[%c0_34, %c0_35, %c0_36] : memref<2x128x128xbf16, #tpu.memory_space<vmem>>, vector<1x128x128xbf16>
    %60 = vector.shape_cast %59 : vector<1x128x128xbf16> to vector<128x128xbf16>
    %cst_37 = arith.constant dense<0.000000e+00> : vector<10x128xf32>
    %61 = tpu.matmul %44, %60, %cst_37 {dimension_numbers = #tpu.dot_dimension_numbers<[1], [0], [0], [1], [0, 0, 1, 1], [], []>} : vector<10x128xbf16>, vector<128x128xbf16>, vector<10x128xf32> -> vector<10x128xf32>
    %c0_38 = arith.constant 0 : index
    %c0_39 = arith.constant 0 : index
    %c0_40 = arith.constant 0 : index
    %62 = vector.load %arg12[%c0_38, %c0_39, %c0_40] : memref<2x1x128xf32, #tpu.memory_space<vmem>>, vector<1x1x128xf32>
    %63 = vector.shape_cast %62 : vector<1x1x128xf32> to vector<1x128xf32>
    %64 = vector.broadcast %63 : vector<1x128xf32> to vector<10x128xf32>
    %65 = arith.addf %61, %64 : vector<10x128xf32>
    %66 = arith.truncf %51 : vector<10x128xf32> to vector<10x128xbf16>
    %67 = arith.truncf %58 : vector<10x128xf32> to vector<10x128xbf16>
    %68 = arith.truncf %65 : vector<10x128xf32> to vector<10x128xbf16>
    %c0_41 = arith.constant 0 : index
    %c0_42 = arith.constant 0 : index
    %c0_43 = arith.constant 0 : index
    %69 = vector.load %arg13[%c0_41, %c0_42, %c0_43] : memref<2x128x128xbf16, #tpu.memory_space<vmem>>, vector<1x128x128xbf16>
    %70 = vector.shape_cast %69 : vector<1x128x128xbf16> to vector<128x128xbf16>
    %71 = vector.extract_strided_slice %66 {offsets = [0, 0], sizes = [5, 32], strides = [1, 1]} : vector<10x128xbf16> to vector<5x32xbf16>
    %72 = vector.extract_strided_slice %67 {offsets = [0, 0], sizes = [5, 32], strides = [1, 1]} : vector<10x128xbf16> to vector<5x32xbf16>
    %73 = vector.extract_strided_slice %68 {offsets = [0, 0], sizes = [5, 32], strides = [1, 1]} : vector<10x128xbf16> to vector<5x32xbf16>
    %cst_44 = arith.constant dense<0.000000e+00> : vector<5x5xf32>
    %74 = tpu.matmul %71, %72, %cst_44 {dimension_numbers = #tpu.dot_dimension_numbers<[1], [1], [0], [0], [0, 0, 1, 0], [], []>} : vector<5x32xbf16>, vector<5x32xbf16>, vector<5x5xf32> -> vector<5x5xf32>
    %cst_45 = arith.constant 0.176776692 : f32
    %75 = vector.broadcast %cst_45 : f32 to vector<5x5xf32>
    %76 = arith.mulf %74, %75 : vector<5x5xf32>
    %cst_46 = arith.constant dense<0xFF800000> : vector<5xf32>
    %77 = vector.multi_reduction <maximumf>, %76, %cst_46 [1] : vector<5x5xf32> to vector<5xf32>
    %78 = vector.shape_cast %77 : vector<5xf32> to vector<5x1xf32>
    %79 = vector.broadcast %78 : vector<5x1xf32> to vector<5x5xf32>
    %80 = arith.subf %76, %79 : vector<5x5xf32>
    %81 = math.exp %80 : vector<5x5xf32>
    %cst_47 = arith.constant dense<0.000000e+00> : vector<5xf32>
    %82 = vector.multi_reduction <add>, %81, %cst_47 [1] : vector<5x5xf32> to vector<5xf32>
    %83 = vector.shape_cast %82 : vector<5xf32> to vector<5x1xf32>
    %84 = tpu.reciprocal %83 {approx = true} : vector<5x1xf32> -> vector<5x1xf32>
    %85 = vector.broadcast %84 : vector<5x1xf32> to vector<5x5xf32>
    %86 = arith.mulf %81, %85 : vector<5x5xf32>
    %87 = arith.truncf %86 : vector<5x5xf32> to vector<5x5xbf16>
    %cst_48 = arith.constant dense<0.000000e+00> : vector<5x32xf32>
    %88 = tpu.matmul %87, %73, %cst_48 {dimension_numbers = #tpu.dot_dimension_numbers<[1], [0], [0], [1], [0, 0, 1, 1], [], []>} : vector<5x5xbf16>, vector<5x32xbf16>, vector<5x32xf32> -> vector<5x32xf32>
    %89 = arith.truncf %88 : vector<5x32xf32> to vector<5x32xbf16>
    %90 = vector.extract_strided_slice %70 {offsets = [0, 0], sizes = [32, 128], strides = [1, 1]} : vector<128x128xbf16> to vector<32x128xbf16>
    %cst_49 = arith.constant dense<0.000000e+00> : vector<5x128xf32>
    %91 = tpu.matmul %89, %90, %cst_49 {dimension_numbers = #tpu.dot_dimension_numbers<[1], [0], [0], [1], [0, 0, 1, 1], [], []>} : vector<5x32xbf16>, vector<32x128xbf16>, vector<5x128xf32> -> vector<5x128xf32>
    %92 = vector.extract_strided_slice %66 {offsets = [0, 32], sizes = [5, 32], strides = [1, 1]} : vector<10x128xbf16> to vector<5x32xbf16>
    %93 = vector.extract_strided_slice %67 {offsets = [0, 32], sizes = [5, 32], strides = [1, 1]} : vector<10x128xbf16> to vector<5x32xbf16>
    %94 = vector.extract_strided_slice %68 {offsets = [0, 32], sizes = [5, 32], strides = [1, 1]} : vector<10x128xbf16> to vector<5x32xbf16>
    %cst_50 = arith.constant dense<0.000000e+00> : vector<5x5xf32>
    %95 = tpu.matmul %92, %93, %cst_50 {dimension_numbers = #tpu.dot_dimension_numbers<[1], [1], [0], [0], [0, 0, 1, 0], [], []>} : vector<5x32xbf16>, vector<5x32xbf16>, vector<5x5xf32> -> vector<5x5xf32>
    %cst_51 = arith.constant 0.176776692 : f32
    %96 = vector.broadcast %cst_51 : f32 to vector<5x5xf32>
    %97 = arith.mulf %95, %96 : vector<5x5xf32>
    %cst_52 = arith.constant dense<0xFF800000> : vector<5xf32>
    %98 = vector.multi_reduction <maximumf>, %97, %cst_52 [1] : vector<5x5xf32> to vector<5xf32>
    %99 = vector.shape_cast %98 : vector<5xf32> to vector<5x1xf32>
    %100 = vector.broadcast %99 : vector<5x1xf32> to vector<5x5xf32>
    %101 = arith.subf %97, %100 : vector<5x5xf32>
    %102 = math.exp %101 : vector<5x5xf32>
    %cst_53 = arith.constant dense<0.000000e+00> : vector<5xf32>
    %103 = vector.multi_reduction <add>, %102, %cst_53 [1] : vector<5x5xf32> to vector<5xf32>
    %104 = vector.shape_cast %103 : vector<5xf32> to vector<5x1xf32>
    %105 = tpu.reciprocal %104 {approx = true} : vector<5x1xf32> -> vector<5x1xf32>
    %106 = vector.broadcast %105 : vector<5x1xf32> to vector<5x5xf32>
    %107 = arith.mulf %102, %106 : vector<5x5xf32>
    %108 = arith.truncf %107 : vector<5x5xf32> to vector<5x5xbf16>
    %cst_54 = arith.constant dense<0.000000e+00> : vector<5x32xf32>
    %109 = tpu.matmul %108, %94, %cst_54 {dimension_numbers = #tpu.dot_dimension_numbers<[1], [0], [0], [1], [0, 0, 1, 1], [], []>} : vector<5x5xbf16>, vector<5x32xbf16>, vector<5x32xf32> -> vector<5x32xf32>
    %110 = arith.truncf %109 : vector<5x32xf32> to vector<5x32xbf16>
    %111 = vector.extract_strided_slice %70 {offsets = [32, 0], sizes = [32, 128], strides = [1, 1]} : vector<128x128xbf16> to vector<32x128xbf16>
    %cst_55 = arith.constant dense<0.000000e+00> : vector<5x128xf32>
    %112 = tpu.matmul %110, %111, %cst_55 {dimension_numbers = #tpu.dot_dimension_numbers<[1], [0], [0], [1], [0, 0, 1, 1], [], []>} : vector<5x32xbf16>, vector<32x128xbf16>, vector<5x128xf32> -> vector<5x128xf32>
    %113 = arith.addf %91, %112 : vector<5x128xf32>
    %114 = vector.extract_strided_slice %66 {offsets = [0, 64], sizes = [5, 32], strides = [1, 1]} : vector<10x128xbf16> to vector<5x32xbf16>
    %115 = vector.extract_strided_slice %67 {offsets = [0, 64], sizes = [5, 32], strides = [1, 1]} : vector<10x128xbf16> to vector<5x32xbf16>
    %116 = vector.extract_strided_slice %68 {offsets = [0, 64], sizes = [5, 32], strides = [1, 1]} : vector<10x128xbf16> to vector<5x32xbf16>
    %cst_56 = arith.constant dense<0.000000e+00> : vector<5x5xf32>
    %117 = tpu.matmul %114, %115, %cst_56 {dimension_numbers = #tpu.dot_dimension_numbers<[1], [1], [0], [0], [0, 0, 1, 0], [], []>} : vector<5x32xbf16>, vector<5x32xbf16>, vector<5x5xf32> -> vector<5x5xf32>
    %cst_57 = arith.constant 0.176776692 : f32
    %118 = vector.broadcast %cst_57 : f32 to vector<5x5xf32>
    %119 = arith.mulf %117, %118 : vector<5x5xf32>
    %cst_58 = arith.constant dense<0xFF800000> : vector<5xf32>
    %120 = vector.multi_reduction <maximumf>, %119, %cst_58 [1] : vector<5x5xf32> to vector<5xf32>
    %121 = vector.shape_cast %120 : vector<5xf32> to vector<5x1xf32>
    %122 = vector.broadcast %121 : vector<5x1xf32> to vector<5x5xf32>
    %123 = arith.subf %119, %122 : vector<5x5xf32>
    %124 = math.exp %123 : vector<5x5xf32>
    %cst_59 = arith.constant dense<0.000000e+00> : vector<5xf32>
    %125 = vector.multi_reduction <add>, %124, %cst_59 [1] : vector<5x5xf32> to vector<5xf32>
    %126 = vector.shape_cast %125 : vector<5xf32> to vector<5x1xf32>
    %127 = tpu.reciprocal %126 {approx = true} : vector<5x1xf32> -> vector<5x1xf32>
    %128 = vector.broadcast %127 : vector<5x1xf32> to vector<5x5xf32>
    %129 = arith.mulf %124, %128 : vector<5x5xf32>
    %130 = arith.truncf %129 : vector<5x5xf32> to vector<5x5xbf16>
    %cst_60 = arith.constant dense<0.000000e+00> : vector<5x32xf32>
    %131 = tpu.matmul %130, %116, %cst_60 {dimension_numbers = #tpu.dot_dimension_numbers<[1], [0], [0], [1], [0, 0, 1, 1], [], []>} : vector<5x5xbf16>, vector<5x32xbf16>, vector<5x32xf32> -> vector<5x32xf32>
    %132 = arith.truncf %131 : vector<5x32xf32> to vector<5x32xbf16>
    %133 = vector.extract_strided_slice %70 {offsets = [64, 0], sizes = [32, 128], strides = [1, 1]} : vector<128x128xbf16> to vector<32x128xbf16>
    %cst_61 = arith.constant dense<0.000000e+00> : vector<5x128xf32>
    %134 = tpu.matmul %132, %133, %cst_61 {dimension_numbers = #tpu.dot_dimension_numbers<[1], [0], [0], [1], [0, 0, 1, 1], [], []>} : vector<5x32xbf16>, vector<32x128xbf16>, vector<5x128xf32> -> vector<5x128xf32>
    %135 = arith.addf %113, %134 : vector<5x128xf32>
    %136 = vector.extract_strided_slice %66 {offsets = [0, 96], sizes = [5, 32], strides = [1, 1]} : vector<10x128xbf16> to vector<5x32xbf16>
    %137 = vector.extract_strided_slice %67 {offsets = [0, 96], sizes = [5, 32], strides = [1, 1]} : vector<10x128xbf16> to vector<5x32xbf16>
    %138 = vector.extract_strided_slice %68 {offsets = [0, 96], sizes = [5, 32], strides = [1, 1]} : vector<10x128xbf16> to vector<5x32xbf16>
    %cst_62 = arith.constant dense<0.000000e+00> : vector<5x5xf32>
    %139 = tpu.matmul %136, %137, %cst_62 {dimension_numbers = #tpu.dot_dimension_numbers<[1], [1], [0], [0], [0, 0, 1, 0], [], []>} : vector<5x32xbf16>, vector<5x32xbf16>, vector<5x5xf32> -> vector<5x5xf32>
    %cst_63 = arith.constant 0.176776692 : f32
    %140 = vector.broadcast %cst_63 : f32 to vector<5x5xf32>
    %141 = arith.mulf %139, %140 : vector<5x5xf32>
    %cst_64 = arith.constant dense<0xFF800000> : vector<5xf32>
    %142 = vector.multi_reduction <maximumf>, %141, %cst_64 [1] : vector<5x5xf32> to vector<5xf32>
    %143 = vector.shape_cast %142 : vector<5xf32> to vector<5x1xf32>
    %144 = vector.broadcast %143 : vector<5x1xf32> to vector<5x5xf32>
    %145 = arith.subf %141, %144 : vector<5x5xf32>
    %146 = math.exp %145 : vector<5x5xf32>
    %cst_65 = arith.constant dense<0.000000e+00> : vector<5xf32>
    %147 = vector.multi_reduction <add>, %146, %cst_65 [1] : vector<5x5xf32> to vector<5xf32>
    %148 = vector.shape_cast %147 : vector<5xf32> to vector<5x1xf32>
    %149 = tpu.reciprocal %148 {approx = true} : vector<5x1xf32> -> vector<5x1xf32>
    %150 = vector.broadcast %149 : vector<5x1xf32> to vector<5x5xf32>
    %151 = arith.mulf %146, %150 : vector<5x5xf32>
    %152 = arith.truncf %151 : vector<5x5xf32> to vector<5x5xbf16>
    %cst_66 = arith.constant dense<0.000000e+00> : vector<5x32xf32>
    %153 = tpu.matmul %152, %138, %cst_66 {dimension_numbers = #tpu.dot_dimension_numbers<[1], [0], [0], [1], [0, 0, 1, 1], [], []>} : vector<5x5xbf16>, vector<5x32xbf16>, vector<5x32xf32> -> vector<5x32xf32>
    %154 = arith.truncf %153 : vector<5x32xf32> to vector<5x32xbf16>
    %155 = vector.extract_strided_slice %70 {offsets = [96, 0], sizes = [32, 128], strides = [1, 1]} : vector<128x128xbf16> to vector<32x128xbf16>
    %cst_67 = arith.constant dense<0.000000e+00> : vector<5x128xf32>
    %156 = tpu.matmul %154, %155, %cst_67 {dimension_numbers = #tpu.dot_dimension_numbers<[1], [0], [0], [1], [0, 0, 1, 1], [], []>} : vector<5x32xbf16>, vector<32x128xbf16>, vector<5x128xf32> -> vector<5x128xf32>
    %157 = arith.addf %135, %156 : vector<5x128xf32>
    %158 = vector.extract_strided_slice %66 {offsets = [5, 0], sizes = [5, 32], strides = [1, 1]} : vector<10x128xbf16> to vector<5x32xbf16>
    %159 = vector.extract_strided_slice %67 {offsets = [5, 0], sizes = [5, 32], strides = [1, 1]} : vector<10x128xbf16> to vector<5x32xbf16>
    %160 = vector.extract_strided_slice %68 {offsets = [5, 0], sizes = [5, 32], strides = [1, 1]} : vector<10x128xbf16> to vector<5x32xbf16>
    %cst_68 = arith.constant dense<0.000000e+00> : vector<5x5xf32>
    %161 = tpu.matmul %158, %159, %cst_68 {dimension_numbers = #tpu.dot_dimension_numbers<[1], [1], [0], [0], [0, 0, 1, 0], [], []>} : vector<5x32xbf16>, vector<5x32xbf16>, vector<5x5xf32> -> vector<5x5xf32>
    %cst_69 = arith.constant 0.176776692 : f32
    %162 = vector.broadcast %cst_69 : f32 to vector<5x5xf32>
    %163 = arith.mulf %161, %162 : vector<5x5xf32>
    %cst_70 = arith.constant dense<0xFF800000> : vector<5xf32>
    %164 = vector.multi_reduction <maximumf>, %163, %cst_70 [1] : vector<5x5xf32> to vector<5xf32>
    %165 = vector.shape_cast %164 : vector<5xf32> to vector<5x1xf32>
    %166 = vector.broadcast %165 : vector<5x1xf32> to vector<5x5xf32>
    %167 = arith.subf %163, %166 : vector<5x5xf32>
    %168 = math.exp %167 : vector<5x5xf32>
    %cst_71 = arith.constant dense<0.000000e+00> : vector<5xf32>
    %169 = vector.multi_reduction <add>, %168, %cst_71 [1] : vector<5x5xf32> to vector<5xf32>
    %170 = vector.shape_cast %169 : vector<5xf32> to vector<5x1xf32>
    %171 = tpu.reciprocal %170 {approx = true} : vector<5x1xf32> -> vector<5x1xf32>
    %172 = vector.broadcast %171 : vector<5x1xf32> to vector<5x5xf32>
    %173 = arith.mulf %168, %172 : vector<5x5xf32>
    %174 = arith.truncf %173 : vector<5x5xf32> to vector<5x5xbf16>
    %cst_72 = arith.constant dense<0.000000e+00> : vector<5x32xf32>
    %175 = tpu.matmul %174, %160, %cst_72 {dimension_numbers = #tpu.dot_dimension_numbers<[1], [0], [0], [1], [0, 0, 1, 1], [], []>} : vector<5x5xbf16>, vector<5x32xbf16>, vector<5x32xf32> -> vector<5x32xf32>
    %176 = arith.truncf %175 : vector<5x32xf32> to vector<5x32xbf16>
    %177 = vector.extract_strided_slice %70 {offsets = [0, 0], sizes = [32, 128], strides = [1, 1]} : vector<128x128xbf16> to vector<32x128xbf16>
    %cst_73 = arith.constant dense<0.000000e+00> : vector<5x128xf32>
    %178 = tpu.matmul %176, %177, %cst_73 {dimension_numbers = #tpu.dot_dimension_numbers<[1], [0], [0], [1], [0, 0, 1, 1], [], []>} : vector<5x32xbf16>, vector<32x128xbf16>, vector<5x128xf32> -> vector<5x128xf32>
    %179 = vector.extract_strided_slice %66 {offsets = [5, 32], sizes = [5, 32], strides = [1, 1]} : vector<10x128xbf16> to vector<5x32xbf16>
    %180 = vector.extract_strided_slice %67 {offsets = [5, 32], sizes = [5, 32], strides = [1, 1]} : vector<10x128xbf16> to vector<5x32xbf16>
    %181 = vector.extract_strided_slice %68 {offsets = [5, 32], sizes = [5, 32], strides = [1, 1]} : vector<10x128xbf16> to vector<5x32xbf16>
    %cst_74 = arith.constant dense<0.000000e+00> : vector<5x5xf32>
    %182 = tpu.matmul %179, %180, %cst_74 {dimension_numbers = #tpu.dot_dimension_numbers<[1], [1], [0], [0], [0, 0, 1, 0], [], []>} : vector<5x32xbf16>, vector<5x32xbf16>, vector<5x5xf32> -> vector<5x5xf32>
    %cst_75 = arith.constant 0.176776692 : f32
    %183 = vector.broadcast %cst_75 : f32 to vector<5x5xf32>
    %184 = arith.mulf %182, %183 : vector<5x5xf32>
    %cst_76 = arith.constant dense<0xFF800000> : vector<5xf32>
    %185 = vector.multi_reduction <maximumf>, %184, %cst_76 [1] : vector<5x5xf32> to vector<5xf32>
    %186 = vector.shape_cast %185 : vector<5xf32> to vector<5x1xf32>
    %187 = vector.broadcast %186 : vector<5x1xf32> to vector<5x5xf32>
    %188 = arith.subf %184, %187 : vector<5x5xf32>
    %189 = math.exp %188 : vector<5x5xf32>
    %cst_77 = arith.constant dense<0.000000e+00> : vector<5xf32>
    %190 = vector.multi_reduction <add>, %189, %cst_77 [1] : vector<5x5xf32> to vector<5xf32>
    %191 = vector.shape_cast %190 : vector<5xf32> to vector<5x1xf32>
    %192 = tpu.reciprocal %191 {approx = true} : vector<5x1xf32> -> vector<5x1xf32>
    %193 = vector.broadcast %192 : vector<5x1xf32> to vector<5x5xf32>
    %194 = arith.mulf %189, %193 : vector<5x5xf32>
    %195 = arith.truncf %194 : vector<5x5xf32> to vector<5x5xbf16>
    %cst_78 = arith.constant dense<0.000000e+00> : vector<5x32xf32>
    %196 = tpu.matmul %195, %181, %cst_78 {dimension_numbers = #tpu.dot_dimension_numbers<[1], [0], [0], [1], [0, 0, 1, 1], [], []>} : vector<5x5xbf16>, vector<5x32xbf16>, vector<5x32xf32> -> vector<5x32xf32>
    %197 = arith.truncf %196 : vector<5x32xf32> to vector<5x32xbf16>
    %198 = vector.extract_strided_slice %70 {offsets = [32, 0], sizes = [32, 128], strides = [1, 1]} : vector<128x128xbf16> to vector<32x128xbf16>
    %cst_79 = arith.constant dense<0.000000e+00> : vector<5x128xf32>
    %199 = tpu.matmul %197, %198, %cst_79 {dimension_numbers = #tpu.dot_dimension_numbers<[1], [0], [0], [1], [0, 0, 1, 1], [], []>} : vector<5x32xbf16>, vector<32x128xbf16>, vector<5x128xf32> -> vector<5x128xf32>
    %200 = arith.addf %178, %199 : vector<5x128xf32>
    %201 = vector.extract_strided_slice %66 {offsets = [5, 64], sizes = [5, 32], strides = [1, 1]} : vector<10x128xbf16> to vector<5x32xbf16>
    %202 = vector.extract_strided_slice %67 {offsets = [5, 64], sizes = [5, 32], strides = [1, 1]} : vector<10x128xbf16> to vector<5x32xbf16>
    %203 = vector.extract_strided_slice %68 {offsets = [5, 64], sizes = [5, 32], strides = [1, 1]} : vector<10x128xbf16> to vector<5x32xbf16>
    %cst_80 = arith.constant dense<0.000000e+00> : vector<5x5xf32>
    %204 = tpu.matmul %201, %202, %cst_80 {dimension_numbers = #tpu.dot_dimension_numbers<[1], [1], [0], [0], [0, 0, 1, 0], [], []>} : vector<5x32xbf16>, vector<5x32xbf16>, vector<5x5xf32> -> vector<5x5xf32>
    %cst_81 = arith.constant 0.176776692 : f32
    %205 = vector.broadcast %cst_81 : f32 to vector<5x5xf32>
    %206 = arith.mulf %204, %205 : vector<5x5xf32>
    %cst_82 = arith.constant dense<0xFF800000> : vector<5xf32>
    %207 = vector.multi_reduction <maximumf>, %206, %cst_82 [1] : vector<5x5xf32> to vector<5xf32>
    %208 = vector.shape_cast %207 : vector<5xf32> to vector<5x1xf32>
    %209 = vector.broadcast %208 : vector<5x1xf32> to vector<5x5xf32>
    %210 = arith.subf %206, %209 : vector<5x5xf32>
    %211 = math.exp %210 : vector<5x5xf32>
    %cst_83 = arith.constant dense<0.000000e+00> : vector<5xf32>
    %212 = vector.multi_reduction <add>, %211, %cst_83 [1] : vector<5x5xf32> to vector<5xf32>
    %213 = vector.shape_cast %212 : vector<5xf32> to vector<5x1xf32>
    %214 = tpu.reciprocal %213 {approx = true} : vector<5x1xf32> -> vector<5x1xf32>
    %215 = vector.broadcast %214 : vector<5x1xf32> to vector<5x5xf32>
    %216 = arith.mulf %211, %215 : vector<5x5xf32>
    %217 = arith.truncf %216 : vector<5x5xf32> to vector<5x5xbf16>
    %cst_84 = arith.constant dense<0.000000e+00> : vector<5x32xf32>
    %218 = tpu.matmul %217, %203, %cst_84 {dimension_numbers = #tpu.dot_dimension_numbers<[1], [0], [0], [1], [0, 0, 1, 1], [], []>} : vector<5x5xbf16>, vector<5x32xbf16>, vector<5x32xf32> -> vector<5x32xf32>
    %219 = arith.truncf %218 : vector<5x32xf32> to vector<5x32xbf16>
    %220 = vector.extract_strided_slice %70 {offsets = [64, 0], sizes = [32, 128], strides = [1, 1]} : vector<128x128xbf16> to vector<32x128xbf16>
    %cst_85 = arith.constant dense<0.000000e+00> : vector<5x128xf32>
    %221 = tpu.matmul %219, %220, %cst_85 {dimension_numbers = #tpu.dot_dimension_numbers<[1], [0], [0], [1], [0, 0, 1, 1], [], []>} : vector<5x32xbf16>, vector<32x128xbf16>, vector<5x128xf32> -> vector<5x128xf32>
    %222 = arith.addf %200, %221 : vector<5x128xf32>
    %223 = vector.extract_strided_slice %66 {offsets = [5, 96], sizes = [5, 32], strides = [1, 1]} : vector<10x128xbf16> to vector<5x32xbf16>
    %224 = vector.extract_strided_slice %67 {offsets = [5, 96], sizes = [5, 32], strides = [1, 1]} : vector<10x128xbf16> to vector<5x32xbf16>
    %225 = vector.extract_strided_slice %68 {offsets = [5, 96], sizes = [5, 32], strides = [1, 1]} : vector<10x128xbf16> to vector<5x32xbf16>
    %cst_86 = arith.constant dense<0.000000e+00> : vector<5x5xf32>
    %226 = tpu.matmul %223, %224, %cst_86 {dimension_numbers = #tpu.dot_dimension_numbers<[1], [1], [0], [0], [0, 0, 1, 0], [], []>} : vector<5x32xbf16>, vector<5x32xbf16>, vector<5x5xf32> -> vector<5x5xf32>
    %cst_87 = arith.constant 0.176776692 : f32
    %227 = vector.broadcast %cst_87 : f32 to vector<5x5xf32>
    %228 = arith.mulf %226, %227 : vector<5x5xf32>
    %cst_88 = arith.constant dense<0xFF800000> : vector<5xf32>
    %229 = vector.multi_reduction <maximumf>, %228, %cst_88 [1] : vector<5x5xf32> to vector<5xf32>
    %230 = vector.shape_cast %229 : vector<5xf32> to vector<5x1xf32>
    %231 = vector.broadcast %230 : vector<5x1xf32> to vector<5x5xf32>
    %232 = arith.subf %228, %231 : vector<5x5xf32>
    %233 = math.exp %232 : vector<5x5xf32>
    %cst_89 = arith.constant dense<0.000000e+00> : vector<5xf32>
    %234 = vector.multi_reduction <add>, %233, %cst_89 [1] : vector<5x5xf32> to vector<5xf32>
    %235 = vector.shape_cast %234 : vector<5xf32> to vector<5x1xf32>
    %236 = tpu.reciprocal %235 {approx = true} : vector<5x1xf32> -> vector<5x1xf32>
    %237 = vector.broadcast %236 : vector<5x1xf32> to vector<5x5xf32>
    %238 = arith.mulf %233, %237 : vector<5x5xf32>
    %239 = arith.truncf %238 : vector<5x5xf32> to vector<5x5xbf16>
    %cst_90 = arith.constant dense<0.000000e+00> : vector<5x32xf32>
    %240 = tpu.matmul %239, %225, %cst_90 {dimension_numbers = #tpu.dot_dimension_numbers<[1], [0], [0], [1], [0, 0, 1, 1], [], []>} : vector<5x5xbf16>, vector<5x32xbf16>, vector<5x32xf32> -> vector<5x32xf32>
    %241 = arith.truncf %240 : vector<5x32xf32> to vector<5x32xbf16>
    %242 = vector.extract_strided_slice %70 {offsets = [96, 0], sizes = [32, 128], strides = [1, 1]} : vector<128x128xbf16> to vector<32x128xbf16>
    %cst_91 = arith.constant dense<0.000000e+00> : vector<5x128xf32>
    %243 = tpu.matmul %241, %242, %cst_91 {dimension_numbers = #tpu.dot_dimension_numbers<[1], [0], [0], [1], [0, 0, 1, 1], [], []>} : vector<5x32xbf16>, vector<32x128xbf16>, vector<5x128xf32> -> vector<5x128xf32>
    %244 = arith.addf %222, %243 : vector<5x128xf32>
    %245 = tpu.concatenate %157, %244 in 0 : vector<5x128xf32>, vector<5x128xf32> -> vector<10x128xf32>
    %c0_92 = arith.constant 0 : index
    %c0_93 = arith.constant 0 : index
    %c0_94 = arith.constant 0 : index
    %246 = vector.load %arg14[%c0_92, %c0_93, %c0_94] : memref<2x1x128xf32, #tpu.memory_space<vmem>>, vector<1x1x128xf32>
    %247 = vector.shape_cast %246 : vector<1x1x128xf32> to vector<1x128xf32>
    %248 = vector.broadcast %247 : vector<1x128xf32> to vector<10x128xf32>
    %249 = arith.addf %245, %248 : vector<10x128xf32>
    %250 = arith.addf %19, %249 : vector<10x128xf32>
    %c0_95 = arith.constant 0 : index
    %c0_96 = arith.constant 0 : index
    %c0_97 = arith.constant 0 : index
    %251 = vector.load %arg15[%c0_95, %c0_96, %c0_97] : memref<2x1x128xf32, #tpu.memory_space<vmem>>, vector<1x1x128xf32>
    %252 = vector.shape_cast %251 : vector<1x1x128xf32> to vector<1x128xf32>
    %c0_98 = arith.constant 0 : index
    %c0_99 = arith.constant 0 : index
    %c0_100 = arith.constant 0 : index
    %253 = vector.load %arg16[%c0_98, %c0_99, %c0_100] : memref<2x1x128xf32, #tpu.memory_space<vmem>>, vector<1x1x128xf32>
    %254 = vector.shape_cast %253 : vector<1x1x128xf32> to vector<1x128xf32>
    %cst_101 = arith.constant dense<0.000000e+00> : vector<10xf32>
    %255 = vector.multi_reduction <add>, %250, %cst_101 [1] : vector<10x128xf32> to vector<10xf32>
    %256 = vector.shape_cast %255 : vector<10xf32> to vector<10x1xf32>
    %cst_102 = arith.constant 1.280000e+02 : f32
    %257 = vector.broadcast %cst_102 : f32 to vector<10x1xf32>
    %258 = arith.divf %256, %257 : vector<10x1xf32>
    %259 = vector.broadcast %258 : vector<10x1xf32> to vector<10x128xf32>
    %260 = arith.subf %250, %259 : vector<10x128xf32>
    %261 = arith.mulf %260, %260 : vector<10x128xf32>
    %cst_103 = arith.constant dense<0.000000e+00> : vector<10xf32>
    %262 = vector.multi_reduction <add>, %261, %cst_103 [1] : vector<10x128xf32> to vector<10xf32>
    %263 = vector.shape_cast %262 : vector<10xf32> to vector<10x1xf32>
    %cst_104 = arith.constant 1.280000e+02 : f32
    %264 = vector.broadcast %cst_104 : f32 to vector<10x1xf32>
    %265 = arith.divf %263, %264 : vector<10x1xf32>
    %cst_105 = arith.constant 9.99999997E-7 : f32
    %266 = vector.broadcast %cst_105 : f32 to vector<10x1xf32>
    %267 = arith.addf %265, %266 : vector<10x1xf32>
    %268 = math.rsqrt %267 : vector<10x1xf32>
    %269 = vector.broadcast %268 : vector<10x1xf32> to vector<10x128xf32>
    %270 = arith.mulf %260, %269 : vector<10x128xf32>
    %271 = vector.broadcast %252 : vector<1x128xf32> to vector<10x128xf32>
    %272 = arith.mulf %270, %271 : vector<10x128xf32>
    %273 = vector.broadcast %254 : vector<1x128xf32> to vector<10x128xf32>
    %274 = arith.addf %272, %273 : vector<10x128xf32>
    %275 = arith.truncf %274 : vector<10x128xf32> to vector<10x128xbf16>
    %c0_106 = arith.constant 0 : index
    %c0_107 = arith.constant 0 : index
    %c0_108 = arith.constant 0 : index
    %276 = vector.load %arg17[%c0_106, %c0_107, %c0_108] : memref<2x128x512xbf16, #tpu.memory_space<vmem>>, vector<1x128x512xbf16>
    %277 = vector.shape_cast %276 : vector<1x128x512xbf16> to vector<128x512xbf16>
    %cst_109 = arith.constant dense<0.000000e+00> : vector<10x512xf32>
    %278 = tpu.matmul %275, %277, %cst_109 {dimension_numbers = #tpu.dot_dimension_numbers<[1], [0], [0], [1], [0, 0, 1, 1], [], []>} : vector<10x128xbf16>, vector<128x512xbf16>, vector<10x512xf32> -> vector<10x512xf32>
    %c0_110 = arith.constant 0 : index
    %c0_111 = arith.constant 0 : index
    %c0_112 = arith.constant 0 : index
    %279 = vector.load %arg18[%c0_110, %c0_111, %c0_112] : memref<2x1x512xf32, #tpu.memory_space<vmem>>, vector<1x1x512xf32>
    %280 = vector.shape_cast %279 : vector<1x1x512xf32> to vector<1x512xf32>
    %281 = vector.broadcast %280 : vector<1x512xf32> to vector<10x512xf32>
    %282 = arith.addf %278, %281 : vector<10x512xf32>
    %283 = arith.mulf %282, %282 : vector<10x512xf32>
    %284 = arith.mulf %282, %283 : vector<10x512xf32>
    %cst_113 = arith.constant 4.471500e-02 : f32
    %285 = vector.broadcast %cst_113 : f32 to vector<10x512xf32>
    %286 = arith.mulf %285, %284 : vector<10x512xf32>
    %287 = arith.addf %282, %286 : vector<10x512xf32>
    %cst_114 = arith.constant 0.797884583 : f32
    %288 = vector.broadcast %cst_114 : f32 to vector<10x512xf32>
    %289 = arith.mulf %288, %287 : vector<10x512xf32>
    %290 = math.tanh %289 : vector<10x512xf32>
    %cst_115 = arith.constant 1.000000e+00 : f32
    %291 = vector.broadcast %cst_115 : f32 to vector<10x512xf32>
    %292 = arith.addf %291, %290 : vector<10x512xf32>
    %cst_116 = arith.constant 5.000000e-01 : f32
    %293 = vector.broadcast %cst_116 : f32 to vector<10x512xf32>
    %294 = arith.mulf %293, %292 : vector<10x512xf32>
    %295 = arith.mulf %282, %294 : vector<10x512xf32>
    %296 = arith.truncf %295 : vector<10x512xf32> to vector<10x512xbf16>
    %c0_117 = arith.constant 0 : index
    %c0_118 = arith.constant 0 : index
    %c0_119 = arith.constant 0 : index
    %297 = vector.load %arg19[%c0_117, %c0_118, %c0_119] : memref<2x512x128xbf16, #tpu.memory_space<vmem>>, vector<1x512x128xbf16>
    %298 = vector.shape_cast %297 : vector<1x512x128xbf16> to vector<512x128xbf16>
    %cst_120 = arith.constant dense<0.000000e+00> : vector<10x128xf32>
    %299 = tpu.matmul %296, %298, %cst_120 {dimension_numbers = #tpu.dot_dimension_numbers<[1], [0], [0], [1], [0, 0, 1, 1], [], []>} : vector<10x512xbf16>, vector<512x128xbf16>, vector<10x128xf32> -> vector<10x128xf32>
    %c0_121 = arith.constant 0 : index
    %c0_122 = arith.constant 0 : index
    %c0_123 = arith.constant 0 : index
    %300 = vector.load %arg20[%c0_121, %c0_122, %c0_123] : memref<2x1x128xf32, #tpu.memory_space<vmem>>, vector<1x1x128xf32>
    %301 = vector.shape_cast %300 : vector<1x1x128xf32> to vector<1x128xf32>
    %302 = vector.broadcast %301 : vector<1x128xf32> to vector<10x128xf32>
    %303 = arith.addf %299, %302 : vector<10x128xf32>
    %304 = arith.addf %250, %303 : vector<10x128xf32>
    %c1 = arith.constant 1 : index
    %c0_124 = arith.constant 0 : index
    %c0_125 = arith.constant 0 : index
    %305 = vector.load %arg5[%c1, %c0_124, %c0_125] : memref<2x1x128xf32, #tpu.memory_space<vmem>>, vector<1x1x128xf32>
    %306 = vector.shape_cast %305 : vector<1x1x128xf32> to vector<1x128xf32>
    %c1_126 = arith.constant 1 : index
    %c0_127 = arith.constant 0 : index
    %c0_128 = arith.constant 0 : index
    %307 = vector.load %arg6[%c1_126, %c0_127, %c0_128] : memref<2x1x128xf32, #tpu.memory_space<vmem>>, vector<1x1x128xf32>
    %308 = vector.shape_cast %307 : vector<1x1x128xf32> to vector<1x128xf32>
    %cst_129 = arith.constant dense<0.000000e+00> : vector<10xf32>
    %309 = vector.multi_reduction <add>, %304, %cst_129 [1] : vector<10x128xf32> to vector<10xf32>
    %310 = vector.shape_cast %309 : vector<10xf32> to vector<10x1xf32>
    %cst_130 = arith.constant 1.280000e+02 : f32
    %311 = vector.broadcast %cst_130 : f32 to vector<10x1xf32>
    %312 = arith.divf %310, %311 : vector<10x1xf32>
    %313 = vector.broadcast %312 : vector<10x1xf32> to vector<10x128xf32>
    %314 = arith.subf %304, %313 : vector<10x128xf32>
    %315 = arith.mulf %314, %314 : vector<10x128xf32>
    %cst_131 = arith.constant dense<0.000000e+00> : vector<10xf32>
    %316 = vector.multi_reduction <add>, %315, %cst_131 [1] : vector<10x128xf32> to vector<10xf32>
    %317 = vector.shape_cast %316 : vector<10xf32> to vector<10x1xf32>
    %cst_132 = arith.constant 1.280000e+02 : f32
    %318 = vector.broadcast %cst_132 : f32 to vector<10x1xf32>
    %319 = arith.divf %317, %318 : vector<10x1xf32>
    %cst_133 = arith.constant 9.99999997E-7 : f32
    %320 = vector.broadcast %cst_133 : f32 to vector<10x1xf32>
    %321 = arith.addf %319, %320 : vector<10x1xf32>
    %322 = math.rsqrt %321 : vector<10x1xf32>
    %323 = vector.broadcast %322 : vector<10x1xf32> to vector<10x128xf32>
    %324 = arith.mulf %314, %323 : vector<10x128xf32>
    %325 = vector.broadcast %306 : vector<1x128xf32> to vector<10x128xf32>
    %326 = arith.mulf %324, %325 : vector<10x128xf32>
    %327 = vector.broadcast %308 : vector<1x128xf32> to vector<10x128xf32>
    %328 = arith.addf %326, %327 : vector<10x128xf32>
    %329 = arith.truncf %328 : vector<10x128xf32> to vector<10x128xbf16>
    %c1_134 = arith.constant 1 : index
    %c0_135 = arith.constant 0 : index
    %c0_136 = arith.constant 0 : index
    %330 = vector.load %arg7[%c1_134, %c0_135, %c0_136] : memref<2x128x128xbf16, #tpu.memory_space<vmem>>, vector<1x128x128xbf16>
    %331 = vector.shape_cast %330 : vector<1x128x128xbf16> to vector<128x128xbf16>
    %cst_137 = arith.constant dense<0.000000e+00> : vector<10x128xf32>
    %332 = tpu.matmul %329, %331, %cst_137 {dimension_numbers = #tpu.dot_dimension_numbers<[1], [0], [0], [1], [0, 0, 1, 1], [], []>} : vector<10x128xbf16>, vector<128x128xbf16>, vector<10x128xf32> -> vector<10x128xf32>
    %c1_138 = arith.constant 1 : index
    %c0_139 = arith.constant 0 : index
    %c0_140 = arith.constant 0 : index
    %333 = vector.load %arg8[%c1_138, %c0_139, %c0_140] : memref<2x1x128xf32, #tpu.memory_space<vmem>>, vector<1x1x128xf32>
    %334 = vector.shape_cast %333 : vector<1x1x128xf32> to vector<1x128xf32>
    %335 = vector.broadcast %334 : vector<1x128xf32> to vector<10x128xf32>
    %336 = arith.addf %332, %335 : vector<10x128xf32>
    %c1_141 = arith.constant 1 : index
    %c0_142 = arith.constant 0 : index
    %c0_143 = arith.constant 0 : index
    %337 = vector.load %arg9[%c1_141, %c0_142, %c0_143] : memref<2x128x128xbf16, #tpu.memory_space<vmem>>, vector<1x128x128xbf16>
    %338 = vector.shape_cast %337 : vector<1x128x128xbf16> to vector<128x128xbf16>
    %cst_144 = arith.constant dense<0.000000e+00> : vector<10x128xf32>
    %339 = tpu.matmul %329, %338, %cst_144 {dimension_numbers = #tpu.dot_dimension_numbers<[1], [0], [0], [1], [0, 0, 1, 1], [], []>} : vector<10x128xbf16>, vector<128x128xbf16>, vector<10x128xf32> -> vector<10x128xf32>
    %c1_145 = arith.constant 1 : index
    %c0_146 = arith.constant 0 : index
    %c0_147 = arith.constant 0 : index
    %340 = vector.load %arg10[%c1_145, %c0_146, %c0_147] : memref<2x1x128xf32, #tpu.memory_space<vmem>>, vector<1x1x128xf32>
    %341 = vector.shape_cast %340 : vector<1x1x128xf32> to vector<1x128xf32>
    %342 = vector.broadcast %341 : vector<1x128xf32> to vector<10x128xf32>
    %343 = arith.addf %339, %342 : vector<10x128xf32>
    %c1_148 = arith.constant 1 : index
    %c0_149 = arith.constant 0 : index
    %c0_150 = arith.constant 0 : index
    %344 = vector.load %arg11[%c1_148, %c0_149, %c0_150] : memref<2x128x128xbf16, #tpu.memory_space<vmem>>, vector<1x128x128xbf16>
    %345 = vector.shape_cast %344 : vector<1x128x128xbf16> to vector<128x128xbf16>
    %cst_151 = arith.constant dense<0.000000e+00> : vector<10x128xf32>
    %346 = tpu.matmul %329, %345, %cst_151 {dimension_numbers = #tpu.dot_dimension_numbers<[1], [0], [0], [1], [0, 0, 1, 1], [], []>} : vector<10x128xbf16>, vector<128x128xbf16>, vector<10x128xf32> -> vector<10x128xf32>
    %c1_152 = arith.constant 1 : index
    %c0_153 = arith.constant 0 : index
    %c0_154 = arith.constant 0 : index
    %347 = vector.load %arg12[%c1_152, %c0_153, %c0_154] : memref<2x1x128xf32, #tpu.memory_space<vmem>>, vector<1x1x128xf32>
    %348 = vector.shape_cast %347 : vector<1x1x128xf32> to vector<1x128xf32>
    %349 = vector.broadcast %348 : vector<1x128xf32> to vector<10x128xf32>
    %350 = arith.addf %346, %349 : vector<10x128xf32>
    %351 = arith.truncf %336 : vector<10x128xf32> to vector<10x128xbf16>
    %352 = arith.truncf %343 : vector<10x128xf32> to vector<10x128xbf16>
    %353 = arith.truncf %350 : vector<10x128xf32> to vector<10x128xbf16>
    %c1_155 = arith.constant 1 : index
    %c0_156 = arith.constant 0 : index
    %c0_157 = arith.constant 0 : index
    %354 = vector.load %arg13[%c1_155, %c0_156, %c0_157] : memref<2x128x128xbf16, #tpu.memory_space<vmem>>, vector<1x128x128xbf16>
    %355 = vector.shape_cast %354 : vector<1x128x128xbf16> to vector<128x128xbf16>
    %356 = vector.extract_strided_slice %351 {offsets = [0, 0], sizes = [5, 32], strides = [1, 1]} : vector<10x128xbf16> to vector<5x32xbf16>
    %357 = vector.extract_strided_slice %352 {offsets = [0, 0], sizes = [5, 32], strides = [1, 1]} : vector<10x128xbf16> to vector<5x32xbf16>
    %358 = vector.extract_strided_slice %353 {offsets = [0, 0], sizes = [5, 32], strides = [1, 1]} : vector<10x128xbf16> to vector<5x32xbf16>
    %cst_158 = arith.constant dense<0.000000e+00> : vector<5x5xf32>
    %359 = tpu.matmul %356, %357, %cst_158 {dimension_numbers = #tpu.dot_dimension_numbers<[1], [1], [0], [0], [0, 0, 1, 0], [], []>} : vector<5x32xbf16>, vector<5x32xbf16>, vector<5x5xf32> -> vector<5x5xf32>
    %cst_159 = arith.constant 0.176776692 : f32
    %360 = vector.broadcast %cst_159 : f32 to vector<5x5xf32>
    %361 = arith.mulf %359, %360 : vector<5x5xf32>
    %cst_160 = arith.constant dense<0xFF800000> : vector<5xf32>
    %362 = vector.multi_reduction <maximumf>, %361, %cst_160 [1] : vector<5x5xf32> to vector<5xf32>
    %363 = vector.shape_cast %362 : vector<5xf32> to vector<5x1xf32>
    %364 = vector.broadcast %363 : vector<5x1xf32> to vector<5x5xf32>
    %365 = arith.subf %361, %364 : vector<5x5xf32>
    %366 = math.exp %365 : vector<5x5xf32>
    %cst_161 = arith.constant dense<0.000000e+00> : vector<5xf32>
    %367 = vector.multi_reduction <add>, %366, %cst_161 [1] : vector<5x5xf32> to vector<5xf32>
    %368 = vector.shape_cast %367 : vector<5xf32> to vector<5x1xf32>
    %369 = tpu.reciprocal %368 {approx = true} : vector<5x1xf32> -> vector<5x1xf32>
    %370 = vector.broadcast %369 : vector<5x1xf32> to vector<5x5xf32>
    %371 = arith.mulf %366, %370 : vector<5x5xf32>
    %372 = arith.truncf %371 : vector<5x5xf32> to vector<5x5xbf16>
    %cst_162 = arith.constant dense<0.000000e+00> : vector<5x32xf32>
    %373 = tpu.matmul %372, %358, %cst_162 {dimension_numbers = #tpu.dot_dimension_numbers<[1], [0], [0], [1], [0, 0, 1, 1], [], []>} : vector<5x5xbf16>, vector<5x32xbf16>, vector<5x32xf32> -> vector<5x32xf32>
    %374 = arith.truncf %373 : vector<5x32xf32> to vector<5x32xbf16>
    %375 = vector.extract_strided_slice %355 {offsets = [0, 0], sizes = [32, 128], strides = [1, 1]} : vector<128x128xbf16> to vector<32x128xbf16>
    %cst_163 = arith.constant dense<0.000000e+00> : vector<5x128xf32>
    %376 = tpu.matmul %374, %375, %cst_163 {dimension_numbers = #tpu.dot_dimension_numbers<[1], [0], [0], [1], [0, 0, 1, 1], [], []>} : vector<5x32xbf16>, vector<32x128xbf16>, vector<5x128xf32> -> vector<5x128xf32>
    %377 = vector.extract_strided_slice %351 {offsets = [0, 32], sizes = [5, 32], strides = [1, 1]} : vector<10x128xbf16> to vector<5x32xbf16>
    %378 = vector.extract_strided_slice %352 {offsets = [0, 32], sizes = [5, 32], strides = [1, 1]} : vector<10x128xbf16> to vector<5x32xbf16>
    %379 = vector.extract_strided_slice %353 {offsets = [0, 32], sizes = [5, 32], strides = [1, 1]} : vector<10x128xbf16> to vector<5x32xbf16>
    %cst_164 = arith.constant dense<0.000000e+00> : vector<5x5xf32>
    %380 = tpu.matmul %377, %378, %cst_164 {dimension_numbers = #tpu.dot_dimension_numbers<[1], [1], [0], [0], [0, 0, 1, 0], [], []>} : vector<5x32xbf16>, vector<5x32xbf16>, vector<5x5xf32> -> vector<5x5xf32>
    %cst_165 = arith.constant 0.176776692 : f32
    %381 = vector.broadcast %cst_165 : f32 to vector<5x5xf32>
    %382 = arith.mulf %380, %381 : vector<5x5xf32>
    %cst_166 = arith.constant dense<0xFF800000> : vector<5xf32>
    %383 = vector.multi_reduction <maximumf>, %382, %cst_166 [1] : vector<5x5xf32> to vector<5xf32>
    %384 = vector.shape_cast %383 : vector<5xf32> to vector<5x1xf32>
    %385 = vector.broadcast %384 : vector<5x1xf32> to vector<5x5xf32>
    %386 = arith.subf %382, %385 : vector<5x5xf32>
    %387 = math.exp %386 : vector<5x5xf32>
    %cst_167 = arith.constant dense<0.000000e+00> : vector<5xf32>
    %388 = vector.multi_reduction <add>, %387, %cst_167 [1] : vector<5x5xf32> to vector<5xf32>
    %389 = vector.shape_cast %388 : vector<5xf32> to vector<5x1xf32>
    %390 = tpu.reciprocal %389 {approx = true} : vector<5x1xf32> -> vector<5x1xf32>
    %391 = vector.broadcast %390 : vector<5x1xf32> to vector<5x5xf32>
    %392 = arith.mulf %387, %391 : vector<5x5xf32>
    %393 = arith.truncf %392 : vector<5x5xf32> to vector<5x5xbf16>
    %cst_168 = arith.constant dense<0.000000e+00> : vector<5x32xf32>
    %394 = tpu.matmul %393, %379, %cst_168 {dimension_numbers = #tpu.dot_dimension_numbers<[1], [0], [0], [1], [0, 0, 1, 1], [], []>} : vector<5x5xbf16>, vector<5x32xbf16>, vector<5x32xf32> -> vector<5x32xf32>
    %395 = arith.truncf %394 : vector<5x32xf32> to vector<5x32xbf16>
    %396 = vector.extract_strided_slice %355 {offsets = [32, 0], sizes = [32, 128], strides = [1, 1]} : vector<128x128xbf16> to vector<32x128xbf16>
    %cst_169 = arith.constant dense<0.000000e+00> : vector<5x128xf32>
    %397 = tpu.matmul %395, %396, %cst_169 {dimension_numbers = #tpu.dot_dimension_numbers<[1], [0], [0], [1], [0, 0, 1, 1], [], []>} : vector<5x32xbf16>, vector<32x128xbf16>, vector<5x128xf32> -> vector<5x128xf32>
    %398 = arith.addf %376, %397 : vector<5x128xf32>
    %399 = vector.extract_strided_slice %351 {offsets = [0, 64], sizes = [5, 32], strides = [1, 1]} : vector<10x128xbf16> to vector<5x32xbf16>
    %400 = vector.extract_strided_slice %352 {offsets = [0, 64], sizes = [5, 32], strides = [1, 1]} : vector<10x128xbf16> to vector<5x32xbf16>
    %401 = vector.extract_strided_slice %353 {offsets = [0, 64], sizes = [5, 32], strides = [1, 1]} : vector<10x128xbf16> to vector<5x32xbf16>
    %cst_170 = arith.constant dense<0.000000e+00> : vector<5x5xf32>
    %402 = tpu.matmul %399, %400, %cst_170 {dimension_numbers = #tpu.dot_dimension_numbers<[1], [1], [0], [0], [0, 0, 1, 0], [], []>} : vector<5x32xbf16>, vector<5x32xbf16>, vector<5x5xf32> -> vector<5x5xf32>
    %cst_171 = arith.constant 0.176776692 : f32
    %403 = vector.broadcast %cst_171 : f32 to vector<5x5xf32>
    %404 = arith.mulf %402, %403 : vector<5x5xf32>
    %cst_172 = arith.constant dense<0xFF800000> : vector<5xf32>
    %405 = vector.multi_reduction <maximumf>, %404, %cst_172 [1] : vector<5x5xf32> to vector<5xf32>
    %406 = vector.shape_cast %405 : vector<5xf32> to vector<5x1xf32>
    %407 = vector.broadcast %406 : vector<5x1xf32> to vector<5x5xf32>
    %408 = arith.subf %404, %407 : vector<5x5xf32>
    %409 = math.exp %408 : vector<5x5xf32>
    %cst_173 = arith.constant dense<0.000000e+00> : vector<5xf32>
    %410 = vector.multi_reduction <add>, %409, %cst_173 [1] : vector<5x5xf32> to vector<5xf32>
    %411 = vector.shape_cast %410 : vector<5xf32> to vector<5x1xf32>
    %412 = tpu.reciprocal %411 {approx = true} : vector<5x1xf32> -> vector<5x1xf32>
    %413 = vector.broadcast %412 : vector<5x1xf32> to vector<5x5xf32>
    %414 = arith.mulf %409, %413 : vector<5x5xf32>
    %415 = arith.truncf %414 : vector<5x5xf32> to vector<5x5xbf16>
    %cst_174 = arith.constant dense<0.000000e+00> : vector<5x32xf32>
    %416 = tpu.matmul %415, %401, %cst_174 {dimension_numbers = #tpu.dot_dimension_numbers<[1], [0], [0], [1], [0, 0, 1, 1], [], []>} : vector<5x5xbf16>, vector<5x32xbf16>, vector<5x32xf32> -> vector<5x32xf32>
    %417 = arith.truncf %416 : vector<5x32xf32> to vector<5x32xbf16>
    %418 = vector.extract_strided_slice %355 {offsets = [64, 0], sizes = [32, 128], strides = [1, 1]} : vector<128x128xbf16> to vector<32x128xbf16>
    %cst_175 = arith.constant dense<0.000000e+00> : vector<5x128xf32>
    %419 = tpu.matmul %417, %418, %cst_175 {dimension_numbers = #tpu.dot_dimension_numbers<[1], [0], [0], [1], [0, 0, 1, 1], [], []>} : vector<5x32xbf16>, vector<32x128xbf16>, vector<5x128xf32> -> vector<5x128xf32>
    %420 = arith.addf %398, %419 : vector<5x128xf32>
    %421 = vector.extract_strided_slice %351 {offsets = [0, 96], sizes = [5, 32], strides = [1, 1]} : vector<10x128xbf16> to vector<5x32xbf16>
    %422 = vector.extract_strided_slice %352 {offsets = [0, 96], sizes = [5, 32], strides = [1, 1]} : vector<10x128xbf16> to vector<5x32xbf16>
    %423 = vector.extract_strided_slice %353 {offsets = [0, 96], sizes = [5, 32], strides = [1, 1]} : vector<10x128xbf16> to vector<5x32xbf16>
    %cst_176 = arith.constant dense<0.000000e+00> : vector<5x5xf32>
    %424 = tpu.matmul %421, %422, %cst_176 {dimension_numbers = #tpu.dot_dimension_numbers<[1], [1], [0], [0], [0, 0, 1, 0], [], []>} : vector<5x32xbf16>, vector<5x32xbf16>, vector<5x5xf32> -> vector<5x5xf32>
    %cst_177 = arith.constant 0.176776692 : f32
    %425 = vector.broadcast %cst_177 : f32 to vector<5x5xf32>
    %426 = arith.mulf %424, %425 : vector<5x5xf32>
    %cst_178 = arith.constant dense<0xFF800000> : vector<5xf32>
    %427 = vector.multi_reduction <maximumf>, %426, %cst_178 [1] : vector<5x5xf32> to vector<5xf32>
    %428 = vector.shape_cast %427 : vector<5xf32> to vector<5x1xf32>
    %429 = vector.broadcast %428 : vector<5x1xf32> to vector<5x5xf32>
    %430 = arith.subf %426, %429 : vector<5x5xf32>
    %431 = math.exp %430 : vector<5x5xf32>
    %cst_179 = arith.constant dense<0.000000e+00> : vector<5xf32>
    %432 = vector.multi_reduction <add>, %431, %cst_179 [1] : vector<5x5xf32> to vector<5xf32>
    %433 = vector.shape_cast %432 : vector<5xf32> to vector<5x1xf32>
    %434 = tpu.reciprocal %433 {approx = true} : vector<5x1xf32> -> vector<5x1xf32>
    %435 = vector.broadcast %434 : vector<5x1xf32> to vector<5x5xf32>
    %436 = arith.mulf %431, %435 : vector<5x5xf32>
    %437 = arith.truncf %436 : vector<5x5xf32> to vector<5x5xbf16>
    %cst_180 = arith.constant dense<0.000000e+00> : vector<5x32xf32>
    %438 = tpu.matmul %437, %423, %cst_180 {dimension_numbers = #tpu.dot_dimension_numbers<[1], [0], [0], [1], [0, 0, 1, 1], [], []>} : vector<5x5xbf16>, vector<5x32xbf16>, vector<5x32xf32> -> vector<5x32xf32>
    %439 = arith.truncf %438 : vector<5x32xf32> to vector<5x32xbf16>
    %440 = vector.extract_strided_slice %355 {offsets = [96, 0], sizes = [32, 128], strides = [1, 1]} : vector<128x128xbf16> to vector<32x128xbf16>
    %cst_181 = arith.constant dense<0.000000e+00> : vector<5x128xf32>
    %441 = tpu.matmul %439, %440, %cst_181 {dimension_numbers = #tpu.dot_dimension_numbers<[1], [0], [0], [1], [0, 0, 1, 1], [], []>} : vector<5x32xbf16>, vector<32x128xbf16>, vector<5x128xf32> -> vector<5x128xf32>
    %442 = arith.addf %420, %441 : vector<5x128xf32>
    %443 = vector.extract_strided_slice %351 {offsets = [5, 0], sizes = [5, 32], strides = [1, 1]} : vector<10x128xbf16> to vector<5x32xbf16>
    %444 = vector.extract_strided_slice %352 {offsets = [5, 0], sizes = [5, 32], strides = [1, 1]} : vector<10x128xbf16> to vector<5x32xbf16>
    %445 = vector.extract_strided_slice %353 {offsets = [5, 0], sizes = [5, 32], strides = [1, 1]} : vector<10x128xbf16> to vector<5x32xbf16>
    %cst_182 = arith.constant dense<0.000000e+00> : vector<5x5xf32>
    %446 = tpu.matmul %443, %444, %cst_182 {dimension_numbers = #tpu.dot_dimension_numbers<[1], [1], [0], [0], [0, 0, 1, 0], [], []>} : vector<5x32xbf16>, vector<5x32xbf16>, vector<5x5xf32> -> vector<5x5xf32>
    %cst_183 = arith.constant 0.176776692 : f32
    %447 = vector.broadcast %cst_183 : f32 to vector<5x5xf32>
    %448 = arith.mulf %446, %447 : vector<5x5xf32>
    %cst_184 = arith.constant dense<0xFF800000> : vector<5xf32>
    %449 = vector.multi_reduction <maximumf>, %448, %cst_184 [1] : vector<5x5xf32> to vector<5xf32>
    %450 = vector.shape_cast %449 : vector<5xf32> to vector<5x1xf32>
    %451 = vector.broadcast %450 : vector<5x1xf32> to vector<5x5xf32>
    %452 = arith.subf %448, %451 : vector<5x5xf32>
    %453 = math.exp %452 : vector<5x5xf32>
    %cst_185 = arith.constant dense<0.000000e+00> : vector<5xf32>
    %454 = vector.multi_reduction <add>, %453, %cst_185 [1] : vector<5x5xf32> to vector<5xf32>
    %455 = vector.shape_cast %454 : vector<5xf32> to vector<5x1xf32>
    %456 = tpu.reciprocal %455 {approx = true} : vector<5x1xf32> -> vector<5x1xf32>
    %457 = vector.broadcast %456 : vector<5x1xf32> to vector<5x5xf32>
    %458 = arith.mulf %453, %457 : vector<5x5xf32>
    %459 = arith.truncf %458 : vector<5x5xf32> to vector<5x5xbf16>
    %cst_186 = arith.constant dense<0.000000e+00> : vector<5x32xf32>
    %460 = tpu.matmul %459, %445, %cst_186 {dimension_numbers = #tpu.dot_dimension_numbers<[1], [0], [0], [1], [0, 0, 1, 1], [], []>} : vector<5x5xbf16>, vector<5x32xbf16>, vector<5x32xf32> -> vector<5x32xf32>
    %461 = arith.truncf %460 : vector<5x32xf32> to vector<5x32xbf16>
    %462 = vector.extract_strided_slice %355 {offsets = [0, 0], sizes = [32, 128], strides = [1, 1]} : vector<128x128xbf16> to vector<32x128xbf16>
    %cst_187 = arith.constant dense<0.000000e+00> : vector<5x128xf32>
    %463 = tpu.matmul %461, %462, %cst_187 {dimension_numbers = #tpu.dot_dimension_numbers<[1], [0], [0], [1], [0, 0, 1, 1], [], []>} : vector<5x32xbf16>, vector<32x128xbf16>, vector<5x128xf32> -> vector<5x128xf32>
    %464 = vector.extract_strided_slice %351 {offsets = [5, 32], sizes = [5, 32], strides = [1, 1]} : vector<10x128xbf16> to vector<5x32xbf16>
    %465 = vector.extract_strided_slice %352 {offsets = [5, 32], sizes = [5, 32], strides = [1, 1]} : vector<10x128xbf16> to vector<5x32xbf16>
    %466 = vector.extract_strided_slice %353 {offsets = [5, 32], sizes = [5, 32], strides = [1, 1]} : vector<10x128xbf16> to vector<5x32xbf16>
    %cst_188 = arith.constant dense<0.000000e+00> : vector<5x5xf32>
    %467 = tpu.matmul %464, %465, %cst_188 {dimension_numbers = #tpu.dot_dimension_numbers<[1], [1], [0], [0], [0, 0, 1, 0], [], []>} : vector<5x32xbf16>, vector<5x32xbf16>, vector<5x5xf32> -> vector<5x5xf32>
    %cst_189 = arith.constant 0.176776692 : f32
    %468 = vector.broadcast %cst_189 : f32 to vector<5x5xf32>
    %469 = arith.mulf %467, %468 : vector<5x5xf32>
    %cst_190 = arith.constant dense<0xFF800000> : vector<5xf32>
    %470 = vector.multi_reduction <maximumf>, %469, %cst_190 [1] : vector<5x5xf32> to vector<5xf32>
    %471 = vector.shape_cast %470 : vector<5xf32> to vector<5x1xf32>
    %472 = vector.broadcast %471 : vector<5x1xf32> to vector<5x5xf32>
    %473 = arith.subf %469, %472 : vector<5x5xf32>
    %474 = math.exp %473 : vector<5x5xf32>
    %cst_191 = arith.constant dense<0.000000e+00> : vector<5xf32>
    %475 = vector.multi_reduction <add>, %474, %cst_191 [1] : vector<5x5xf32> to vector<5xf32>
    %476 = vector.shape_cast %475 : vector<5xf32> to vector<5x1xf32>
    %477 = tpu.reciprocal %476 {approx = true} : vector<5x1xf32> -> vector<5x1xf32>
    %478 = vector.broadcast %477 : vector<5x1xf32> to vector<5x5xf32>
    %479 = arith.mulf %474, %478 : vector<5x5xf32>
    %480 = arith.truncf %479 : vector<5x5xf32> to vector<5x5xbf16>
    %cst_192 = arith.constant dense<0.000000e+00> : vector<5x32xf32>
    %481 = tpu.matmul %480, %466, %cst_192 {dimension_numbers = #tpu.dot_dimension_numbers<[1], [0], [0], [1], [0, 0, 1, 1], [], []>} : vector<5x5xbf16>, vector<5x32xbf16>, vector<5x32xf32> -> vector<5x32xf32>
    %482 = arith.truncf %481 : vector<5x32xf32> to vector<5x32xbf16>
    %483 = vector.extract_strided_slice %355 {offsets = [32, 0], sizes = [32, 128], strides = [1, 1]} : vector<128x128xbf16> to vector<32x128xbf16>
    %cst_193 = arith.constant dense<0.000000e+00> : vector<5x128xf32>
    %484 = tpu.matmul %482, %483, %cst_193 {dimension_numbers = #tpu.dot_dimension_numbers<[1], [0], [0], [1], [0, 0, 1, 1], [], []>} : vector<5x32xbf16>, vector<32x128xbf16>, vector<5x128xf32> -> vector<5x128xf32>
    %485 = arith.addf %463, %484 : vector<5x128xf32>
    %486 = vector.extract_strided_slice %351 {offsets = [5, 64], sizes = [5, 32], strides = [1, 1]} : vector<10x128xbf16> to vector<5x32xbf16>
    %487 = vector.extract_strided_slice %352 {offsets = [5, 64], sizes = [5, 32], strides = [1, 1]} : vector<10x128xbf16> to vector<5x32xbf16>
    %488 = vector.extract_strided_slice %353 {offsets = [5, 64], sizes = [5, 32], strides = [1, 1]} : vector<10x128xbf16> to vector<5x32xbf16>
    %cst_194 = arith.constant dense<0.000000e+00> : vector<5x5xf32>
    %489 = tpu.matmul %486, %487, %cst_194 {dimension_numbers = #tpu.dot_dimension_numbers<[1], [1], [0], [0], [0, 0, 1, 0], [], []>} : vector<5x32xbf16>, vector<5x32xbf16>, vector<5x5xf32> -> vector<5x5xf32>
    %cst_195 = arith.constant 0.176776692 : f32
    %490 = vector.broadcast %cst_195 : f32 to vector<5x5xf32>
    %491 = arith.mulf %489, %490 : vector<5x5xf32>
    %cst_196 = arith.constant dense<0xFF800000> : vector<5xf32>
    %492 = vector.multi_reduction <maximumf>, %491, %cst_196 [1] : vector<5x5xf32> to vector<5xf32>
    %493 = vector.shape_cast %492 : vector<5xf32> to vector<5x1xf32>
    %494 = vector.broadcast %493 : vector<5x1xf32> to vector<5x5xf32>
    %495 = arith.subf %491, %494 : vector<5x5xf32>
    %496 = math.exp %495 : vector<5x5xf32>
    %cst_197 = arith.constant dense<0.000000e+00> : vector<5xf32>
    %497 = vector.multi_reduction <add>, %496, %cst_197 [1] : vector<5x5xf32> to vector<5xf32>
    %498 = vector.shape_cast %497 : vector<5xf32> to vector<5x1xf32>
    %499 = tpu.reciprocal %498 {approx = true} : vector<5x1xf32> -> vector<5x1xf32>
    %500 = vector.broadcast %499 : vector<5x1xf32> to vector<5x5xf32>
    %501 = arith.mulf %496, %500 : vector<5x5xf32>
    %502 = arith.truncf %501 : vector<5x5xf32> to vector<5x5xbf16>
    %cst_198 = arith.constant dense<0.000000e+00> : vector<5x32xf32>
    %503 = tpu.matmul %502, %488, %cst_198 {dimension_numbers = #tpu.dot_dimension_numbers<[1], [0], [0], [1], [0, 0, 1, 1], [], []>} : vector<5x5xbf16>, vector<5x32xbf16>, vector<5x32xf32> -> vector<5x32xf32>
    %504 = arith.truncf %503 : vector<5x32xf32> to vector<5x32xbf16>
    %505 = vector.extract_strided_slice %355 {offsets = [64, 0], sizes = [32, 128], strides = [1, 1]} : vector<128x128xbf16> to vector<32x128xbf16>
    %cst_199 = arith.constant dense<0.000000e+00> : vector<5x128xf32>
    %506 = tpu.matmul %504, %505, %cst_199 {dimension_numbers = #tpu.dot_dimension_numbers<[1], [0], [0], [1], [0, 0, 1, 1], [], []>} : vector<5x32xbf16>, vector<32x128xbf16>, vector<5x128xf32> -> vector<5x128xf32>
    %507 = arith.addf %485, %506 : vector<5x128xf32>
    %508 = vector.extract_strided_slice %351 {offsets = [5, 96], sizes = [5, 32], strides = [1, 1]} : vector<10x128xbf16> to vector<5x32xbf16>
    %509 = vector.extract_strided_slice %352 {offsets = [5, 96], sizes = [5, 32], strides = [1, 1]} : vector<10x128xbf16> to vector<5x32xbf16>
    %510 = vector.extract_strided_slice %353 {offsets = [5, 96], sizes = [5, 32], strides = [1, 1]} : vector<10x128xbf16> to vector<5x32xbf16>
    %cst_200 = arith.constant dense<0.000000e+00> : vector<5x5xf32>
    %511 = tpu.matmul %508, %509, %cst_200 {dimension_numbers = #tpu.dot_dimension_numbers<[1], [1], [0], [0], [0, 0, 1, 0], [], []>} : vector<5x32xbf16>, vector<5x32xbf16>, vector<5x5xf32> -> vector<5x5xf32>
    %cst_201 = arith.constant 0.176776692 : f32
    %512 = vector.broadcast %cst_201 : f32 to vector<5x5xf32>
    %513 = arith.mulf %511, %512 : vector<5x5xf32>
    %cst_202 = arith.constant dense<0xFF800000> : vector<5xf32>
    %514 = vector.multi_reduction <maximumf>, %513, %cst_202 [1] : vector<5x5xf32> to vector<5xf32>
    %515 = vector.shape_cast %514 : vector<5xf32> to vector<5x1xf32>
    %516 = vector.broadcast %515 : vector<5x1xf32> to vector<5x5xf32>
    %517 = arith.subf %513, %516 : vector<5x5xf32>
    %518 = math.exp %517 : vector<5x5xf32>
    %cst_203 = arith.constant dense<0.000000e+00> : vector<5xf32>
    %519 = vector.multi_reduction <add>, %518, %cst_203 [1] : vector<5x5xf32> to vector<5xf32>
    %520 = vector.shape_cast %519 : vector<5xf32> to vector<5x1xf32>
    %521 = tpu.reciprocal %520 {approx = true} : vector<5x1xf32> -> vector<5x1xf32>
    %522 = vector.broadcast %521 : vector<5x1xf32> to vector<5x5xf32>
    %523 = arith.mulf %518, %522 : vector<5x5xf32>
    %524 = arith.truncf %523 : vector<5x5xf32> to vector<5x5xbf16>
    %cst_204 = arith.constant dense<0.000000e+00> : vector<5x32xf32>
    %525 = tpu.matmul %524, %510, %cst_204 {dimension_numbers = #tpu.dot_dimension_numbers<[1], [0], [0], [1], [0, 0, 1, 1], [], []>} : vector<5x5xbf16>, vector<5x32xbf16>, vector<5x32xf32> -> vector<5x32xf32>
    %526 = arith.truncf %525 : vector<5x32xf32> to vector<5x32xbf16>
    %527 = vector.extract_strided_slice %355 {offsets = [96, 0], sizes = [32, 128], strides = [1, 1]} : vector<128x128xbf16> to vector<32x128xbf16>
    %cst_205 = arith.constant dense<0.000000e+00> : vector<5x128xf32>
    %528 = tpu.matmul %526, %527, %cst_205 {dimension_numbers = #tpu.dot_dimension_numbers<[1], [0], [0], [1], [0, 0, 1, 1], [], []>} : vector<5x32xbf16>, vector<32x128xbf16>, vector<5x128xf32> -> vector<5x128xf32>
    %529 = arith.addf %507, %528 : vector<5x128xf32>
    %530 = tpu.concatenate %442, %529 in 0 : vector<5x128xf32>, vector<5x128xf32> -> vector<10x128xf32>
    %c1_206 = arith.constant 1 : index
    %c0_207 = arith.constant 0 : index
    %c0_208 = arith.constant 0 : index
    %531 = vector.load %arg14[%c1_206, %c0_207, %c0_208] : memref<2x1x128xf32, #tpu.memory_space<vmem>>, vector<1x1x128xf32>
    %532 = vector.shape_cast %531 : vector<1x1x128xf32> to vector<1x128xf32>
    %533 = vector.broadcast %532 : vector<1x128xf32> to vector<10x128xf32>
    %534 = arith.addf %530, %533 : vector<10x128xf32>
    %535 = arith.addf %304, %534 : vector<10x128xf32>
    %c1_209 = arith.constant 1 : index
    %c0_210 = arith.constant 0 : index
    %c0_211 = arith.constant 0 : index
    %536 = vector.load %arg15[%c1_209, %c0_210, %c0_211] : memref<2x1x128xf32, #tpu.memory_space<vmem>>, vector<1x1x128xf32>
    %537 = vector.shape_cast %536 : vector<1x1x128xf32> to vector<1x128xf32>
    %c1_212 = arith.constant 1 : index
    %c0_213 = arith.constant 0 : index
    %c0_214 = arith.constant 0 : index
    %538 = vector.load %arg16[%c1_212, %c0_213, %c0_214] : memref<2x1x128xf32, #tpu.memory_space<vmem>>, vector<1x1x128xf32>
    %539 = vector.shape_cast %538 : vector<1x1x128xf32> to vector<1x128xf32>
    %cst_215 = arith.constant dense<0.000000e+00> : vector<10xf32>
    %540 = vector.multi_reduction <add>, %535, %cst_215 [1] : vector<10x128xf32> to vector<10xf32>
    %541 = vector.shape_cast %540 : vector<10xf32> to vector<10x1xf32>
    %cst_216 = arith.constant 1.280000e+02 : f32
    %542 = vector.broadcast %cst_216 : f32 to vector<10x1xf32>
    %543 = arith.divf %541, %542 : vector<10x1xf32>
    %544 = vector.broadcast %543 : vector<10x1xf32> to vector<10x128xf32>
    %545 = arith.subf %535, %544 : vector<10x128xf32>
    %546 = arith.mulf %545, %545 : vector<10x128xf32>
    %cst_217 = arith.constant dense<0.000000e+00> : vector<10xf32>
    %547 = vector.multi_reduction <add>, %546, %cst_217 [1] : vector<10x128xf32> to vector<10xf32>
    %548 = vector.shape_cast %547 : vector<10xf32> to vector<10x1xf32>
    %cst_218 = arith.constant 1.280000e+02 : f32
    %549 = vector.broadcast %cst_218 : f32 to vector<10x1xf32>
    %550 = arith.divf %548, %549 : vector<10x1xf32>
    %cst_219 = arith.constant 9.99999997E-7 : f32
    %551 = vector.broadcast %cst_219 : f32 to vector<10x1xf32>
    %552 = arith.addf %550, %551 : vector<10x1xf32>
    %553 = math.rsqrt %552 : vector<10x1xf32>
    %554 = vector.broadcast %553 : vector<10x1xf32> to vector<10x128xf32>
    %555 = arith.mulf %545, %554 : vector<10x128xf32>
    %556 = vector.broadcast %537 : vector<1x128xf32> to vector<10x128xf32>
    %557 = arith.mulf %555, %556 : vector<10x128xf32>
    %558 = vector.broadcast %539 : vector<1x128xf32> to vector<10x128xf32>
    %559 = arith.addf %557, %558 : vector<10x128xf32>
    %560 = arith.truncf %559 : vector<10x128xf32> to vector<10x128xbf16>
    %c1_220 = arith.constant 1 : index
    %c0_221 = arith.constant 0 : index
    %c0_222 = arith.constant 0 : index
    %561 = vector.load %arg17[%c1_220, %c0_221, %c0_222] : memref<2x128x512xbf16, #tpu.memory_space<vmem>>, vector<1x128x512xbf16>
    %562 = vector.shape_cast %561 : vector<1x128x512xbf16> to vector<128x512xbf16>
    %cst_223 = arith.constant dense<0.000000e+00> : vector<10x512xf32>
    %563 = tpu.matmul %560, %562, %cst_223 {dimension_numbers = #tpu.dot_dimension_numbers<[1], [0], [0], [1], [0, 0, 1, 1], [], []>} : vector<10x128xbf16>, vector<128x512xbf16>, vector<10x512xf32> -> vector<10x512xf32>
    %c1_224 = arith.constant 1 : index
    %c0_225 = arith.constant 0 : index
    %c0_226 = arith.constant 0 : index
    %564 = vector.load %arg18[%c1_224, %c0_225, %c0_226] : memref<2x1x512xf32, #tpu.memory_space<vmem>>, vector<1x1x512xf32>
    %565 = vector.shape_cast %564 : vector<1x1x512xf32> to vector<1x512xf32>
    %566 = vector.broadcast %565 : vector<1x512xf32> to vector<10x512xf32>
    %567 = arith.addf %563, %566 : vector<10x512xf32>
    %568 = arith.mulf %567, %567 : vector<10x512xf32>
    %569 = arith.mulf %567, %568 : vector<10x512xf32>
    %cst_227 = arith.constant 4.471500e-02 : f32
    %570 = vector.broadcast %cst_227 : f32 to vector<10x512xf32>
    %571 = arith.mulf %570, %569 : vector<10x512xf32>
    %572 = arith.addf %567, %571 : vector<10x512xf32>
    %cst_228 = arith.constant 0.797884583 : f32
    %573 = vector.broadcast %cst_228 : f32 to vector<10x512xf32>
    %574 = arith.mulf %573, %572 : vector<10x512xf32>
    %575 = math.tanh %574 : vector<10x512xf32>
    %cst_229 = arith.constant 1.000000e+00 : f32
    %576 = vector.broadcast %cst_229 : f32 to vector<10x512xf32>
    %577 = arith.addf %576, %575 : vector<10x512xf32>
    %cst_230 = arith.constant 5.000000e-01 : f32
    %578 = vector.broadcast %cst_230 : f32 to vector<10x512xf32>
    %579 = arith.mulf %578, %577 : vector<10x512xf32>
    %580 = arith.mulf %567, %579 : vector<10x512xf32>
    %581 = arith.truncf %580 : vector<10x512xf32> to vector<10x512xbf16>
    %c1_231 = arith.constant 1 : index
    %c0_232 = arith.constant 0 : index
    %c0_233 = arith.constant 0 : index
    %582 = vector.load %arg19[%c1_231, %c0_232, %c0_233] : memref<2x512x128xbf16, #tpu.memory_space<vmem>>, vector<1x512x128xbf16>
    %583 = vector.shape_cast %582 : vector<1x512x128xbf16> to vector<512x128xbf16>
    %cst_234 = arith.constant dense<0.000000e+00> : vector<10x128xf32>
    %584 = tpu.matmul %581, %583, %cst_234 {dimension_numbers = #tpu.dot_dimension_numbers<[1], [0], [0], [1], [0, 0, 1, 1], [], []>} : vector<10x512xbf16>, vector<512x128xbf16>, vector<10x128xf32> -> vector<10x128xf32>
    %c1_235 = arith.constant 1 : index
    %c0_236 = arith.constant 0 : index
    %c0_237 = arith.constant 0 : index
    %585 = vector.load %arg20[%c1_235, %c0_236, %c0_237] : memref<2x1x128xf32, #tpu.memory_space<vmem>>, vector<1x1x128xf32>
    %586 = vector.shape_cast %585 : vector<1x1x128xf32> to vector<1x128xf32>
    %587 = vector.broadcast %586 : vector<1x128xf32> to vector<10x128xf32>
    %588 = arith.addf %584, %587 : vector<10x128xf32>
    %589 = arith.addf %535, %588 : vector<10x128xf32>
    %590 = vector.extract_strided_slice %589 {offsets = [0, 0], sizes = [1, 128], strides = [1, 1]} : vector<10x128xf32> to vector<1x128xf32>
    %591 = vector.extract_strided_slice %589 {offsets = [5, 0], sizes = [1, 128], strides = [1, 1]} : vector<10x128xf32> to vector<1x128xf32>
    %592 = tpu.concatenate %590, %591 in 0 : vector<1x128xf32>, vector<1x128xf32> -> vector<2x128xf32>
    %c0_238 = arith.constant 0 : index
    %c0_239 = arith.constant 0 : index
    %593 = vector.load %arg21[%c0_238, %c0_239] : memref<1x128xf32, #tpu.memory_space<vmem>>, vector<1x128xf32>
    %c0_240 = arith.constant 0 : index
    %c0_241 = arith.constant 0 : index
    %594 = vector.load %arg22[%c0_240, %c0_241] : memref<1x128xf32, #tpu.memory_space<vmem>>, vector<1x128xf32>
    %cst_242 = arith.constant dense<0.000000e+00> : vector<2xf32>
    %595 = vector.multi_reduction <add>, %592, %cst_242 [1] : vector<2x128xf32> to vector<2xf32>
    %596 = vector.shape_cast %595 : vector<2xf32> to vector<2x1xf32>
    %cst_243 = arith.constant 1.280000e+02 : f32
    %597 = vector.broadcast %cst_243 : f32 to vector<2x1xf32>
    %598 = arith.divf %596, %597 : vector<2x1xf32>
    %599 = vector.broadcast %598 : vector<2x1xf32> to vector<2x128xf32>
    %600 = arith.subf %592, %599 : vector<2x128xf32>
    %601 = arith.mulf %600, %600 : vector<2x128xf32>
    %cst_244 = arith.constant dense<0.000000e+00> : vector<2xf32>
    %602 = vector.multi_reduction <add>, %601, %cst_244 [1] : vector<2x128xf32> to vector<2xf32>
    %603 = vector.shape_cast %602 : vector<2xf32> to vector<2x1xf32>
    %cst_245 = arith.constant 1.280000e+02 : f32
    %604 = vector.broadcast %cst_245 : f32 to vector<2x1xf32>
    %605 = arith.divf %603, %604 : vector<2x1xf32>
    %cst_246 = arith.constant 9.99999997E-7 : f32
    %606 = vector.broadcast %cst_246 : f32 to vector<2x1xf32>
    %607 = arith.addf %605, %606 : vector<2x1xf32>
    %608 = math.rsqrt %607 : vector<2x1xf32>
    %609 = vector.broadcast %608 : vector<2x1xf32> to vector<2x128xf32>
    %610 = arith.mulf %600, %609 : vector<2x128xf32>
    %611 = vector.broadcast %593 : vector<1x128xf32> to vector<2x128xf32>
    %612 = arith.mulf %610, %611 : vector<2x128xf32>
    %613 = vector.broadcast %594 : vector<1x128xf32> to vector<2x128xf32>
    %614 = arith.addf %612, %613 : vector<2x128xf32>
    %615 = arith.truncf %614 : vector<2x128xf32> to vector<2x128xbf16>
    %c0_247 = arith.constant 0 : index
    %c0_248 = arith.constant 0 : index
    %616 = vector.load %arg23[%c0_247, %c0_248] : memref<128x128xbf16, #tpu.memory_space<vmem>>, vector<128x128xbf16>
    %cst_249 = arith.constant dense<0.000000e+00> : vector<2x128xf32>
    %617 = tpu.matmul %615, %616, %cst_249 {dimension_numbers = #tpu.dot_dimension_numbers<[1], [0], [0], [1], [0, 0, 1, 1], [], []>} : vector<2x128xbf16>, vector<128x128xbf16>, vector<2x128xf32> -> vector<2x128xf32>
    %c0_250 = arith.constant 0 : index
    %c0_251 = arith.constant 0 : index
    %618 = vector.load %arg24[%c0_250, %c0_251] : memref<1x128xf32, #tpu.memory_space<vmem>>, vector<1x128xf32>
    %619 = vector.broadcast %618 : vector<1x128xf32> to vector<2x128xf32>
    %620 = arith.addf %617, %619 : vector<2x128xf32>
    %c0_252 = arith.constant 0 : index
    %c0_253 = arith.constant 0 : index
    %621 = vector.load %arg25[%c0_252, %c0_253] : memref<2x128xf32, #tpu.memory_space<vmem>>, vector<2x128xf32>
    tpu.vector_store %arg25[%c0_252, %c0_253], %620 {strides = array<i32>} : memref<2x128xf32, #tpu.memory_space<vmem>>, vector<2x128xf32>,
    return
  }
}

</mosaic_0001>

<bundles_post_ra>
// kernel: vit_forward.1
= control target key start
LH: loop header
LB: loop body
LE: loop exit
PB: predicated region body
PF: predicated region fallthrough
CT: control target
= control target key end

     0   :  { %s9615_s0 = inlined_call_operand.hbm [shape: f32[8,768], index: 0, kind: input, shape index: {}]   ;;  %s9616_s1 = inlined_call_operand.hbm [shape: bf16[768,128], index: 1, kind: input, shape index: {}]   ;;  %s9617_s2 = inlined_call_operand.hbm [shape: f32[1,128], index: 2, kind: input, shape index: {}]   ;;  %s9618_s3 = inlined_call_operand.hbm [shape: f32[1,128], index: 3, kind: input, shape index: {}]   ;;  %s9619_s4 = inlined_call_operand.hbm [shape: f32[5,128], index: 4, kind: input, shape index: {}]   ;;  %s9620_s5 = inlined_call_operand.hbm [shape: f32[2,1,128], index: 5, kind: input, shape index: {}]   ;;  %s9621_s6 = inlined_call_operand.hbm [shape: f32[2,1,128], index: 6, kind: input, shape index: {}]   ;;  %s9622_s7 = inlined_call_operand.hbm [shape: bf16[2,128,128], index: 7, kind: input, shape index: {}]   ;;  %s9623_s8 = inlined_call_operand.hbm [shape: f32[2,1,128], index: 8, kind: input, shape index: {}]   ;;  %s9624_s9 = inlined_call_operand.hbm [shape: bf16[2,128,128], index: 9, kind: input, shape index: {}]   ;;  %s9625_s10 = inlined_call_operand.hbm [shape: f32[2,1,128], index: 10, kind: input, shape index: {}]   ;;  %s9626_s11 = inlined_call_operand.hbm [shape: bf16[2,128,128], index: 11, kind: input, shape index: {}]   ;;  %s9627_s12 = inlined_call_operand.hbm [shape: f32[2,1,128], index: 12, kind: input, shape index: {}]   ;;  %s9628_s13 = inlined_call_operand.hbm [shape: bf16[2,128,128], index: 13, kind: input, shape index: {}]   ;;  %s9629_s14 = inlined_call_operand.hbm [shape: f32[2,1,128], index: 14, kind: input, shape index: {}]   ;;  %s9630_s15 = inlined_call_operand.hbm [shape: f32[2,1,128], index: 15, kind: input, shape index: {}]   ;;  %s9631_s16 = inlined_call_operand.hbm [shape: f32[2,1,128], index: 16, kind: input, shape index: {}]   ;;  %s9632_s17 = inlined_call_operand.hbm [shape: bf16[2,128,512], index: 17, kind: input, shape index: {}]   ;;  %s9633_s18 = inlined_call_operand.hbm [shape: f32[2,1,512], index: 18, kind: input, shape index: {}]   ;;  %s9634_s19 = inlined_call_operand.hbm [shape: bf16[2,512,128], index: 19, kind: input, shape index: {}]   ;;  %s9635_s20 = inlined_call_operand.hbm [shape: f32[2,1,128], index: 20, kind: input, shape index: {}]   ;;  %s9636_s21 = inlined_call_operand.hbm [shape: f32[1,128], index: 21, kind: input, shape index: {}]   ;;  %s9637_s22 = inlined_call_operand.hbm [shape: f32[1,128], index: 22, kind: input, shape index: {}]   ;;  %s9638_s23 = inlined_call_operand.hbm [shape: bf16[128,128], index: 23, kind: input, shape index: {}]   ;;  %s9639_s24 = inlined_call_operand.hbm [shape: f32[1,128], index: 24, kind: input, shape index: {}]   ;;  %s9640_s25 = inlined_call_operand.hbm [shape: f32[2,128], index: 25, kind: output, shape index: {}]  }
   0x1   :  { %9660 = sst [smem:[#allocation56_spill]] %s9615_s0 }
   0x2   :  { %9661 = sst [smem:[#allocation57_spill]] %s9616_s1 }
   0x3   :  { %9662 = sst [smem:[#allocation58_spill]] %s9617_s2 }
   0x4   :  { %9663 = sst [smem:[#allocation59_spill]] %s9618_s3 }
   0x5   :  { %9664 = sst [smem:[#allocation60_spill]] %s9619_s4 }
   0x6   :  { %9665 = sst [smem:[#allocation61_spill]] %s9620_s5 }
   0x7   :  { %9666 = sst [smem:[#allocation62_spill]] %s9621_s6 }
   0x8   :  { %9667 = sst [smem:[#allocation63_spill]] %s9622_s7 }
   0x9   :  { %9668 = sst [smem:[#allocation64_spill]] %s9623_s8 }
   0xa   :  { %9669 = sst [smem:[#allocation65_spill]] %s9624_s9 }
   0xb   :  { %9670 = sst [smem:[#allocation66_spill]] %s9637_s22 }
   0xc   :  { %9671 = sst [smem:[#allocation67_spill]] %s9639_s24 }
   0xd   :  { %9672 = sst [smem:[#allocation68_spill]] %s9640_s25 }
   0xe   :  { %30 = vsyncpa [#allocation3], 0 }
   0xf   :  { %31 = vsyncpa [#allocation6], 0 }
  0x10   :  { %32 = vsyncpa [#allocation9], 0 }
  0x11   :  { %33 = vsyncpa [#allocation12], 0 }
  0x12   :  { %34 = vsyncpa [#allocation15], 0 }
  0x13   :  { %35 = vsyncpa [#allocation18], 0 }
  0x14   :  { %36 = vsyncpa [#allocation21], 0 }
  0x15   :  { %37 = vsyncpa [#allocation24], 0 }
  0x16   :  { %38 = vsyncpa [#allocation27], 0 }
  0x17   :  { %39 = vsyncpa [#allocation30], 0 }
  0x18   :  { %40 = vsyncpa [#allocation33], 0 }
  0x19   :  { %41 = vsyncpa [#allocation36], 0 }
  0x1a   :  { %42 = vsyncpa [#allocation39], 0 }
  0x1b   :  { %43 = vsyncpa [#allocation4], 0  ;;  %s8303_s29 = smov [#allocation5]   ;;  %s9673_s7 = sld [smem:[#allocation57_spill]] }
  0x1c   :  { %s59_s2 = sshll.u32 %s8303_s29, 4  ;;  %s60_s2 = int_to_ptr.vmem [resolvable:$true] %s59_s2 }
  0x21   :  { %s7703_s3 = scalar_lea.hbm %s9673_s7, 6144 }
  0x22   :  { %p7704_p0 = scmp.ne.s32.totalorder %s9673_s7, %s7703_s3  ;;  %p7707_p1 = scmp.lt.u32.totalorder %s7703_s3, %s9673_s7 }
  0x24   :  { %p7709_p2 = pnand %p7707_p1, %p7704_p0 }
  0x26   :  { %7712 = shalt.err (!%p7709_p2)
}
  0x27   :  { %s7713_s4 = scalar_lea.vmem %s60_s2, 6144  ;;  %p7718_p4 = scmp.lt.s32.totalorder %s60_s2, %s60_s2 }
  0x28   :  { %p7714_p3 = scmp.ne.s32.totalorder %s60_s2, %s7713_s4  ;;  %p7719_p5 = scmp.lt.s32.totalorder %s7713_s4, %s7713_s4 }
  0x2a   :  { %p7720_p6 = por %p7719_p5, %p7718_p4 }
  0x2c   :  { %p7721_p7 = pnand %p7720_p6, %p7714_p3 }
  0x2e   :  { %7724 = shalt.err (!%p7721_p7)
}
  0x2f   :  { %s9654_s28 = smov 64   ;;  %s9656_s9 = smov 4  }
  0x30   :  { %65 = dma.hbm_to_vmem [thread:$0]  %s9673_s7, 6144, %s60_s2, [#allocation6], %s9654_s28, %s9654_s28, %s9656_s9  }
  0x31   :  { %s8306_s29 = smov [#allocation8]   ;;  %s8307_s30 = smov [#allocation11]  }
  0x32   :  { %s82_s6 = sshll.u32 %s8306_s29, 4  ;;  %s101_s3 = sshll.u32 %s8307_s30, 4  ;;  %s83_s6 = int_to_ptr.vmem [resolvable:$true] %s82_s6  ;;  %s102_s3 = int_to_ptr.vmem [resolvable:$true] %s101_s3 }
  0x33   :  { %s9674_s8 = sld [smem:[#allocation59_spill]] }
  0x39   :  { %s7725_s27 = scalar_lea.hbm %s9674_s8, 16 }
  0x3a   :  { %p7726_p8 = scmp.ne.s32.totalorder %s9674_s8, %s7725_s27  ;;  %p7729_p9 = scmp.lt.u32.totalorder %s7725_s27, %s9674_s8 }
  0x3c   :  { %p7731_p10 = pnand %p7729_p9, %p7726_p8 }
  0x3e   :  { %7734 = shalt.err (!%p7731_p10)
}
  0x3f   :  { %s7735_s2 = scalar_lea.vmem %s83_s6, 16  ;;  %s7739_s7 = scalar_lea.vmem %s83_s6, 32 }
  0x40   :  { %p7736_p11 = scmp.ne.s32.totalorder %s83_s6, %s7735_s2  ;;  %p7740_p12 = scmp.lt.s32.totalorder %s83_s6, %s83_s6 }
  0x41   :  { %p7741_p13 = scmp.lt.s32.totalorder %s7739_s7, %s7735_s2 }
  0x43   :  { %p7742_p0 = por %p7741_p13, %p7740_p12 }
  0x45   :  { %p7743_p1 = pnand %p7742_p0, %p7736_p11 }
  0x47   :  { %7746 = shalt.err (!%p7743_p1)
}
  0x48   :  { %85 = dma.hbm_to_vmem [thread:$0]  %s9674_s8, 16, %s83_s6, [#allocation9]  }
  0x49   :  { %s9675_s30 = sld [smem:[#allocation61_spill]] }
  0x4f   :  { %s7747_s22 = scalar_lea.hbm %s9675_s30, 32 }
  0x50   :  { %p7748_p2 = scmp.ne.s32.totalorder %s9675_s30, %s7747_s22  ;;  %p7751_p3 = scmp.lt.u32.totalorder %s7747_s22, %s9675_s30 }
  0x52   :  { %p7753_p4 = pnand %p7751_p3, %p7748_p2 }
  0x54   :  { %7756 = shalt.err (!%p7753_p4)
}
  0x55   :  { %s7757_s4 = scalar_lea.vmem %s102_s3, 32  ;;  %p7762_p6 = scmp.lt.s32.totalorder %s102_s3, %s102_s3 }
  0x56   :  { %p7758_p5 = scmp.ne.s32.totalorder %s102_s3, %s7757_s4  ;;  %p7763_p7 = scmp.lt.s32.totalorder %s7757_s4, %s7757_s4 }
  0x58   :  { %p7764_p8 = por %p7763_p7, %p7762_p6 }
  0x5a   :  { %p7765_p9 = pnand %p7764_p8, %p7758_p5 }
  0x5c   :  { %7768 = shalt.err (!%p7765_p9)
}
  0x5d   :  { %s9658_s6 = smov 16   ;;  %s8309_s8 = smov 1  }
  0x5e   :  { %107 = dma.hbm_to_vmem [thread:$0]  %s9675_s30, 32, %s102_s3, [#allocation12], %s9658_s6, %s9658_s6, %s8309_s8  }
  0x5f   :  { %s8310_s5 = smov [#allocation14]   ;;  %s8311_s25 = smov [#allocation17]  }
  0x60   :  { %s125_s0 = sshll.u32 %s8310_s5, 4  ;;  %s149_s29 = sshll.u32 %s8311_s25, 4  ;;  %s126_s0 = int_to_ptr.vmem [resolvable:$true] %s125_s0  ;;  %s150_s29 = int_to_ptr.vmem [resolvable:$true] %s149_s29 }
  0x61   :  { %s9676_s26 = sld [smem:[#allocation63_spill]] }
  0x67   :  { %s7769_s1 = scalar_lea.hbm %s9676_s26, 2048 }
  0x68   :  { %p7770_p10 = scmp.ne.s32.totalorder %s9676_s26, %s7769_s1  ;;  %p7773_p11 = scmp.lt.u32.totalorder %s7769_s1, %s9676_s26 }
  0x6a   :  { %p7775_p12 = pnand %p7773_p11, %p7770_p10 }
  0x6c   :  { %7778 = shalt.err (!%p7775_p12)
}
  0x6d   :  { %s7779_s3 = scalar_lea.vmem %s126_s0, 2048  ;;  %p7784_p0 = scmp.lt.s32.totalorder %s126_s0, %s126_s0 }
  0x6e   :  { %p7780_p13 = scmp.ne.s32.totalorder %s126_s0, %s7779_s3  ;;  %p7785_p1 = scmp.lt.s32.totalorder %s7779_s3, %s7779_s3 }
  0x70   :  { %p7786_p2 = por %p7785_p1, %p7784_p0 }
  0x72   :  { %p7787_p3 = pnand %p7786_p2, %p7780_p13 }
  0x74   :  { %7790 = shalt.err (!%p7787_p3)
}
  0x75   :  { %s9677_s30 = smov 4   ;;  %s9678_s2 = smov 64  }
  0x76   :  { %131 = dma.hbm_to_vmem [thread:$0]  %s9676_s26, 2048, %s126_s0, [#allocation15], %s9678_s2, %s9678_s2, %s9677_s30  }
  0x77   :  { %s9679_s9 = sld [smem:[#allocation65_spill]] }
  0x7d   :  { %s7791_s22 = scalar_lea.hbm %s9679_s9, 2048 }
  0x7e   :  { %p7792_p4 = scmp.ne.s32.totalorder %s9679_s9, %s7791_s22  ;;  %p7795_p5 = scmp.lt.u32.totalorder %s7791_s22, %s9679_s9 }
  0x80   :  { %p7797_p6 = pnand %p7795_p5, %p7792_p4 }
  0x82   :  { %7800 = shalt.err (!%p7797_p6)
}
  0x83   :  { %s7801_s3 = scalar_lea.vmem %s150_s29, 2048  ;;  %p7806_p8 = scmp.lt.s32.totalorder %s150_s29, %s150_s29 }
  0x84   :  { %p7802_p7 = scmp.ne.s32.totalorder %s150_s29, %s7801_s3  ;;  %p7807_p9 = scmp.lt.s32.totalorder %s7801_s3, %s7801_s3 }
  0x86   :  { %p7808_p10 = por %p7807_p9, %p7806_p8 }
  0x88   :  { %p7809_p11 = pnand %p7808_p10, %p7802_p7 }
  0x8a   :  { %7812 = shalt.err (!%p7809_p11)
}
  0x8b   :  { %155 = dma.hbm_to_vmem [thread:$0]  %s9679_s9, 2048, %s150_s29, [#allocation18], %s9678_s2, %s9678_s2, %s9677_s30  }
  0x8c   :  { %s8312_s7 = smov [#allocation20]   ;;  %s8313_s25 = smov [#allocation23]  }
  0x8d   :  { %s173_s5 = sshll.u32 %s8312_s7, 4  ;;  %s197_s28 = sshll.u32 %s8313_s25, 4  ;;  %s174_s5 = int_to_ptr.vmem [resolvable:$true] %s173_s5  ;;  %s198_s28 = int_to_ptr.vmem [resolvable:$true] %s197_s28 }
  0x8e   :  { %s7813_s1 = scalar_lea.hbm %s9626_s11, 2048 }
  0x8f   :  { %p7814_p12 = scmp.ne.s32.totalorder %s9626_s11, %s7813_s1  ;;  %p7817_p13 = scmp.lt.u32.totalorder %s7813_s1, %s9626_s11 }
  0x91   :  { %p7819_p0 = pnand %p7817_p13, %p7814_p12 }
  0x93   :  { %7822 = shalt.err (!%p7819_p0)
}
  0x94   :  { %s7823_s29 = scalar_lea.vmem %s174_s5, 2048  ;;  %p7828_p2 = scmp.lt.s32.totalorder %s174_s5, %s174_s5 }
  0x95   :  { %p7824_p1 = scmp.ne.s32.totalorder %s174_s5, %s7823_s29  ;;  %p7829_p3 = scmp.lt.s32.totalorder %s7823_s29, %s7823_s29 }
  0x97   :  { %p7830_p4 = por %p7829_p3, %p7828_p2 }
  0x99   :  { %p7831_p5 = pnand %p7830_p4, %p7824_p1 }
  0x9b   :  { %7834 = shalt.err (!%p7831_p5)
}
  0x9c   :  { %179 = dma.hbm_to_vmem [thread:$0]  %s9626_s11, 2048, %s174_s5, [#allocation21], %s9678_s2, %s9678_s2, %s9677_s30  }
  0x9d   :  { %s7835_s7 = scalar_lea.hbm %s9628_s13, 2048 }
  0x9e   :  { %p7836_p6 = scmp.ne.s32.totalorder %s9628_s13, %s7835_s7  ;;  %p7839_p7 = scmp.lt.u32.totalorder %s7835_s7, %s9628_s13 }
  0xa0   :  { %p7841_p8 = pnand %p7839_p7, %p7836_p6 }
  0xa2   :  { %7844 = shalt.err (!%p7841_p8)
}
  0xa3   :  { %s7845_s27 = scalar_lea.vmem %s198_s28, 2048  ;;  %p7850_p10 = scmp.lt.s32.totalorder %s198_s28, %s198_s28 }
  0xa4   :  { %p7846_p9 = scmp.ne.s32.totalorder %s198_s28, %s7845_s27  ;;  %p7851_p11 = scmp.lt.s32.totalorder %s7845_s27, %s7845_s27 }
  0xa6   :  { %p7852_p12 = por %p7851_p11, %p7850_p10 }
  0xa8   :  { %p7853_p13 = pnand %p7852_p12, %p7846_p9 }
  0xaa   :  { %7856 = shalt.err (!%p7853_p13)
}
  0xab   :  { %203 = dma.hbm_to_vmem [thread:$0]  %s9628_s13, 2048, %s198_s28, [#allocation24], %s9678_s2, %s9678_s2, %s9677_s30  }
  0xac   :  { %s8314_s4 = smov [#allocation26]   ;;  %s8315_s29 = smov [#allocation29]  }
  0xad   :  { %s221_s3 = sshll.u32 %s8314_s4, 4  ;;  %s245_s9 = sshll.u32 %s8315_s29, 4  ;;  %s222_s3 = int_to_ptr.vmem [resolvable:$true] %s221_s3  ;;  %s246_s9 = int_to_ptr.vmem [resolvable:$true] %s245_s9 }
  0xae   :  { %s7857_s6 = scalar_lea.hbm %s9630_s15, 32 }
  0xaf   :  { %p7858_p0 = scmp.ne.s32.totalorder %s9630_s15, %s7857_s6  ;;  %p7861_p1 = scmp.lt.u32.totalorder %s7857_s6, %s9630_s15 }
  0xb1   :  { %p7863_p2 = pnand %p7861_p1, %p7858_p0 }
  0xb3   :  { %7866 = shalt.err (!%p7863_p2)
}
  0xb4   :  { %s7867_s13 = scalar_lea.vmem %s222_s3, 32  ;;  %p7872_p4 = scmp.lt.s32.totalorder %s222_s3, %s222_s3 }
  0xb5   :  { %p7868_p3 = scmp.ne.s32.totalorder %s222_s3, %s7867_s13  ;;  %p7873_p5 = scmp.lt.s32.totalorder %s7867_s13, %s7867_s13 }
  0xb7   :  { %p7874_p6 = por %p7873_p5, %p7872_p4 }
  0xb9   :  { %p7875_p7 = pnand %p7874_p6, %p7868_p3 }
  0xbb   :  { %7878 = shalt.err (!%p7875_p7)
}
  0xbc   :  { %s9680_s28 = smov 16   ;;  %s7879_s4 = scalar_lea.hbm %s9632_s17, 8192 }
  0xbd   :  { %227 = dma.hbm_to_vmem [thread:$0]  %s9630_s15, 32, %s222_s3, [#allocation27], %s9680_s28, %s9680_s28, %s8309_s8  }
  0xbe   :  { %p7880_p8 = scmp.ne.s32.totalorder %s9632_s17, %s7879_s4  ;;  %p7883_p9 = scmp.lt.u32.totalorder %s7879_s4, %s9632_s17 }
  0xc0   :  { %p7885_p10 = pnand %p7883_p9, %p7880_p8 }
  0xc2   :  { %7888 = shalt.err (!%p7885_p10)
}
  0xc3   :  { %s7889_s7 = scalar_lea.vmem %s246_s9, 8192  ;;  %p7894_p12 = scmp.lt.s32.totalorder %s246_s9, %s246_s9 }
  0xc4   :  { %p7890_p11 = scmp.ne.s32.totalorder %s246_s9, %s7889_s7  ;;  %p7895_p13 = scmp.lt.s32.totalorder %s7889_s7, %s7889_s7 }
  0xc6   :  { %p7896_p0 = por %p7895_p13, %p7894_p12 }
  0xc8   :  { %p7897_p1 = pnand %p7896_p0, %p7890_p11 }
  0xca   :  { %7900 = shalt.err (!%p7897_p1)
}
  0xcb   :  { %s8316_s15 = smov 256   ;;  %s8317_s22 = smov [#allocation32]  }
  0xcc   :  { %251 = dma.hbm_to_vmem [thread:$0]  %s9632_s17, 8192, %s246_s9, [#allocation30], %s8316_s15, %s8316_s15, %s9680_s28  }
  0xcd   :  { %s269_s24 = sshll.u32 %s8317_s22, 4  ;;  %s8318_s13 = smov [#allocation35]   ;;  %s270_s24 = int_to_ptr.vmem [resolvable:$true] %s269_s24 }
  0xce   :  { %s294_s1 = sshll.u32 %s8318_s13, 4  ;;  %s7901_s5 = scalar_lea.hbm %s9634_s19, 8192  ;;  %s295_s1 = int_to_ptr.vmem [resolvable:$true] %s294_s1 }
  0xcf   :  { %p7902_p2 = scmp.ne.s32.totalorder %s9634_s19, %s7901_s5  ;;  %p7905_p3 = scmp.lt.u32.totalorder %s7901_s5, %s9634_s19 }
  0xd1   :  { %p7907_p4 = pnand %p7905_p3, %p7902_p2 }
  0xd3   :  { %7910 = shalt.err (!%p7907_p4)
}
  0xd4   :  { %s7911_s17 = scalar_lea.vmem %s270_s24, 8192  ;;  %p7916_p6 = scmp.lt.s32.totalorder %s270_s24, %s270_s24 }
  0xd5   :  { %p7912_p5 = scmp.ne.s32.totalorder %s270_s24, %s7911_s17  ;;  %p7917_p7 = scmp.lt.s32.totalorder %s7911_s17, %s7911_s17 }
  0xd7   :  { %p7918_p8 = por %p7917_p7, %p7916_p6 }
  0xd9   :  { %p7919_p9 = pnand %p7918_p8, %p7912_p5 }
  0xdb   :  { %7922 = shalt.err (!%p7919_p9)
}
  0xdc   :  { %275 = dma.hbm_to_vmem [thread:$0]  %s9634_s19, 8192, %s270_s24, [#allocation33], %s9678_s2, %s9678_s2, %s9677_s30  }
  0xdd   :  { %s7923_s3 = scalar_lea.hbm %s9636_s21, 16 }
  0xde   :  { %p7924_p10 = scmp.ne.s32.totalorder %s9636_s21, %s7923_s3  ;;  %p7927_p11 = scmp.lt.u32.totalorder %s7923_s3, %s9636_s21 }
  0xe0   :  { %p7929_p12 = pnand %p7927_p11, %p7924_p10 }
  0xe2   :  { %7932 = shalt.err (!%p7929_p12)
}
  0xe3   :  { %s7933_s11 = scalar_lea.vmem %s295_s1, 16  ;;  %s7937_s5 = scalar_lea.vmem %s295_s1, 32 }
  0xe4   :  { %p7934_p13 = scmp.ne.s32.totalorder %s295_s1, %s7933_s11  ;;  %p7938_p0 = scmp.lt.s32.totalorder %s295_s1, %s295_s1 }
  0xe5   :  { %p7939_p1 = scmp.lt.s32.totalorder %s7937_s5, %s7933_s11 }
  0xe7   :  { %p7940_p2 = por %p7939_p1, %p7938_p0 }
  0xe9   :  { %p7941_p3 = pnand %p7940_p2, %p7934_p13 }
  0xeb   :  { %7944 = shalt.err (!%p7941_p3)
}
  0xec   :  { %297 = dma.hbm_to_vmem [thread:$0]  %s9636_s21, 16, %s295_s1, [#allocation36]  }
  0xed   :  { %s8319_s4 = smov [#allocation38]   ;;  %s8320_s0 = smov [#allocation2]  }
  0xee   :  { %s313_s29 = sshll.u32 %s8319_s4, 4  ;;  %s50_s26 = sshll.u32 %s8320_s0, 4  ;;  %s314_s29 = int_to_ptr.vmem [resolvable:$true] %s313_s29  ;;  %s51_s26 = int_to_ptr.vmem [resolvable:$true] %s50_s26 }
  0xef   :  { %s7945_s6 = scalar_lea.hbm %s9638_s23, 1024 }
  0xf0   :  { %p7946_p4 = scmp.ne.s32.totalorder %s9638_s23, %s7945_s6  ;;  %p7949_p5 = scmp.lt.u32.totalorder %s7945_s6, %s9638_s23 }
  0xf2   :  { %p7951_p6 = pnand %p7949_p5, %p7946_p4 }
  0xf4   :  { %7954 = shalt.err (!%p7951_p6)
}
  0xf5   :  { %s7955_s21 = scalar_lea.vmem %s314_s29, 1024  ;;  %p7960_p8 = scmp.lt.s32.totalorder %s314_s29, %s314_s29 }
  0xf6   :  { %p7956_p7 = scmp.ne.s32.totalorder %s314_s29, %s7955_s21  ;;  %p7961_p9 = scmp.lt.s32.totalorder %s7955_s21, %s7955_s21 }
  0xf8   :  { %p7962_p10 = por %p7961_p9, %p7960_p8 }
  0xfa   :  { %p7963_p11 = pnand %p7962_p10, %p7956_p7 }
  0xfc   :  { %7966 = shalt.err (!%p7963_p11)
}
  0xfd   :  { %319 = dma.hbm_to_vmem [thread:$0]  %s9638_s23, 1024, %s314_s29, [#allocation39], %s9678_s2, %s9678_s2, %s9677_s30  }
  0xfe   :  { %s9681_s11 = sld [smem:[#allocation56_spill]] }
 0x104   :  { %s7967_s5 = scalar_lea.hbm %s9681_s11, 768 }
 0x105   :  { %p7968_p12 = scmp.ne.s32.totalorder %s9681_s11, %s7967_s5  ;;  %p7971_p13 = scmp.lt.u32.totalorder %s7967_s5, %s9681_s11 }
 0x107   :  { %p7973_p0 = pnand %p7971_p13, %p7968_p12 }
 0x109   :  { %7976 = shalt.err (!%p7973_p0)
}
 0x10a   :  { %s7977_s17 = scalar_lea.vmem %s51_s26, 768  ;;  %p7982_p2 = scmp.lt.s32.totalorder %s51_s26, %s51_s26 }
 0x10b   :  { %p7978_p1 = scmp.ne.s32.totalorder %s51_s26, %s7977_s17  ;;  %p7983_p3 = scmp.lt.s32.totalorder %s7977_s17, %s7977_s17 }
 0x10d   :  { %p7984_p4 = por %p7983_p3, %p7982_p2 }
 0x10f   :  { %p7985_p5 = pnand %p7984_p4, %p7978_p1 }
 0x111   :  { %7988 = shalt.err (!%p7985_p5)
}
 0x112   :  { %53 = dma.hbm_to_vmem [thread:$0]  %s9681_s11, 768, %s51_s26, [#allocation3]  }
 0x113   :  { %s8321_s9 = smov [#allocation7]   ;;  %s8322_s7 = smov [#allocation10]  }
 0x114   :  { %s72_s6 = sshll.u32 %s8321_s9, 4  ;;  %s92_s15 = sshll.u32 %s8322_s7, 4  ;;  %s73_s6 = int_to_ptr.vmem [resolvable:$true] %s72_s6  ;;  %s93_s15 = int_to_ptr.vmem [resolvable:$true] %s92_s15 }
 0x115   :  { %s9682_s21 = sld [smem:[#allocation58_spill]] }
 0x11b   :  { %s7989_s1 = scalar_lea.hbm %s9682_s21, 16 }
 0x11c   :  { %p7990_p6 = scmp.ne.s32.totalorder %s9682_s21, %s7989_s1  ;;  %p7993_p7 = scmp.lt.u32.totalorder %s7989_s1, %s9682_s21 }
 0x11e   :  { %p7995_p8 = pnand %p7993_p7, %p7990_p6 }
 0x120   :  { %7998 = shalt.err (!%p7995_p8)
}
 0x121   :  { %s7999_s26 = scalar_lea.vmem %s73_s6, 16  ;;  %s8003_s11 = scalar_lea.vmem %s73_s6, 32 }
 0x122   :  { %p8000_p9 = scmp.ne.s32.totalorder %s73_s6, %s7999_s26  ;;  %p8004_p10 = scmp.lt.s32.totalorder %s73_s6, %s73_s6 }
 0x123   :  { %p8005_p11 = scmp.lt.s32.totalorder %s8003_s11, %s7999_s26 }
 0x125   :  { %p8006_p12 = por %p8005_p11, %p8004_p10 }
 0x127   :  { %p8007_p13 = pnand %p8006_p12, %p8000_p9 }
 0x129   :  { %8010 = shalt.err (!%p8007_p13)
}
 0x12a   :  { %75 = dma.hbm_to_vmem [thread:$0]  %s9682_s21, 16, %s73_s6, [#allocation6]  }
 0x12b   :  { %s9683_s17 = sld [smem:[#allocation60_spill]] }
 0x131   :  { %s8011_s23 = scalar_lea.hbm %s9683_s17, 128 }
 0x132   :  { %p8012_p0 = scmp.ne.s32.totalorder %s9683_s17, %s8011_s23  ;;  %p8015_p1 = scmp.lt.u32.totalorder %s8011_s23, %s9683_s17 }
 0x134   :  { %p8017_p2 = pnand %p8015_p1, %p8012_p0 }
 0x136   :  { %8020 = shalt.err (!%p8017_p2)
}
 0x137   :  { %s8021_s25 = scalar_lea.vmem %s93_s15, 128  ;;  %p8026_p4 = scmp.lt.s32.totalorder %s93_s15, %s93_s15 }
 0x138   :  { %p8022_p3 = scmp.ne.s32.totalorder %s93_s15, %s8021_s25  ;;  %p8027_p5 = scmp.lt.s32.totalorder %s8021_s25, %s8021_s25 }
 0x13a   :  { %p8028_p6 = por %p8027_p5, %p8026_p4 }
 0x13c   :  { %p8029_p7 = pnand %p8028_p6, %p8022_p3 }
 0x13e   :  { %8032 = shalt.err (!%p8029_p7)
}
 0x13f   :  { %95 = dma.hbm_to_vmem [thread:$0]  %s9683_s17, 128, %s93_s15, [#allocation9]  }
 0x140   :  { %s8323_s1 = smov [#allocation13]   ;;  %s8324_s13 = smov [#allocation16]  }
 0x141   :  { %s113_s22 = sshll.u32 %s8323_s1, 4  ;;  %s137_s27 = sshll.u32 %s8324_s13, 4  ;;  %s114_s22 = int_to_ptr.vmem [resolvable:$true] %s113_s22  ;;  %s8678_s27 = int_to_ptr.vmem [resolvable:$true] %s137_s27 }
 0x142   :  { %s9684_s11 = sld [smem:[#allocation62_spill]] }
 0x148   :  { %s8033_s19 = scalar_lea.hbm %s9684_s11, 32 }
 0x149   :  { %p8034_p8 = scmp.ne.s32.totalorder %s9684_s11, %s8033_s19  ;;  %p8037_p9 = scmp.lt.u32.totalorder %s8033_s19, %s9684_s11 }
 0x14b   :  { %p8039_p10 = pnand %p8037_p9, %p8034_p8 }
 0x14d   :  { %8042 = shalt.err (!%p8039_p10)
}
 0x14e   :  { %s8043_s15 = scalar_lea.vmem %s114_s22, 32  ;;  %p8048_p12 = scmp.lt.s32.totalorder %s114_s22, %s114_s22 }
 0x14f   :  { %p8044_p11 = scmp.ne.s32.totalorder %s114_s22, %s8043_s15  ;;  %p8049_p13 = scmp.lt.s32.totalorder %s8043_s15, %s8043_s15 }
 0x151   :  { %p8050_p0 = por %p8049_p13, %p8048_p12 }
 0x153   :  { %p8051_p1 = pnand %p8050_p0, %p8044_p11 }
 0x155   :  { %8054 = shalt.err (!%p8051_p1)
}
 0x156   :  { %119 = dma.hbm_to_vmem [thread:$0]  %s9684_s11, 32, %s114_s22, [#allocation12], %s9680_s28, %s9680_s28, %s8309_s8  }
 0x157   :  { %s9685_s3 = sld [smem:[#allocation64_spill]] }
 0x15d   :  { %s8055_s25 = scalar_lea.hbm %s9685_s3, 32 }
 0x15e   :  { %p8056_p2 = scmp.ne.s32.totalorder %s9685_s3, %s8055_s25  ;;  %p8059_p3 = scmp.lt.u32.totalorder %s8055_s25, %s9685_s3 }
 0x160   :  { %p8061_p4 = pnand %p8059_p3, %p8056_p2 }
 0x162   :  { %8064 = shalt.err (!%p8061_p4)
}
 0x163   :  { %s8065_s5 = scalar_lea.vmem %s8678_s27, 32  ;;  %p8070_p6 = scmp.lt.s32.totalorder %s8678_s27, %s8678_s27 }
 0x164   :  { %p8066_p5 = scmp.ne.s32.totalorder %s8678_s27, %s8065_s5  ;;  %p8071_p7 = scmp.lt.s32.totalorder %s8065_s5, %s8065_s5 }
 0x166   :  { %p8072_p8 = por %p8071_p7, %p8070_p6 }
 0x168   :  { %p8073_p9 = pnand %p8072_p8, %p8066_p5 }
 0x16a   :  { %8076 = shalt.err (!%p8073_p9)
}
 0x16b   :  { %143 = dma.hbm_to_vmem [thread:$0]  %s9685_s3, 32, %s8678_s27, [#allocation15], %s9680_s28, %s9680_s28, %s8309_s8  }
 0x16c   :  { %s8325_s11 = smov [#allocation19]   ;;  %s8326_s24 = smov [#allocation22]  }
 0x16d   :  { %s161_s19 = sshll.u32 %s8325_s11, 4  ;;  %s185_s4 = sshll.u32 %s8326_s24, 4  ;;  %s162_s19 = int_to_ptr.vmem [resolvable:$true] %s161_s19  ;;  %s8715_s4 = int_to_ptr.vmem [resolvable:$true] %s185_s4 }
 0x16e   :  { %s8077_s15 = scalar_lea.hbm %s9625_s10, 32 }
 0x16f   :  { %p8078_p10 = scmp.ne.s32.totalorder %s9625_s10, %s8077_s15  ;;  %p8081_p11 = scmp.lt.u32.totalorder %s8077_s15, %s9625_s10 }
 0x171   :  { %p8083_p12 = pnand %p8081_p11, %p8078_p10 }
 0x173   :  { %8086 = shalt.err (!%p8083_p12)
}
 0x174   :  { %s8087_s27 = scalar_lea.vmem %s162_s19, 32  ;;  %p8092_p0 = scmp.lt.s32.totalorder %s162_s19, %s162_s19 }
 0x175   :  { %p8088_p13 = scmp.ne.s32.totalorder %s162_s19, %s8087_s27  ;;  %p8093_p1 = scmp.lt.s32.totalorder %s8087_s27, %s8087_s27 }
 0x177   :  { %p8094_p2 = por %p8093_p1, %p8092_p0 }
 0x179   :  { %p8095_p3 = pnand %p8094_p2, %p8088_p13 }
 0x17b   :  { %8098 = shalt.err (!%p8095_p3)
}
 0x17c   :  { %167 = dma.hbm_to_vmem [thread:$0]  %s9625_s10, 32, %s162_s19, [#allocation18], %s9680_s28, %s9680_s28, %s8309_s8  }
 0x17d   :  { %s8099_s1 = scalar_lea.hbm %s9627_s12, 32 }
 0x17e   :  { %p8100_p4 = scmp.ne.s32.totalorder %s9627_s12, %s8099_s1  ;;  %p8103_p5 = scmp.lt.u32.totalorder %s8099_s1, %s9627_s12 }
 0x180   :  { %p8105_p6 = pnand %p8103_p5, %p8100_p4 }
 0x182   :  { %8108 = shalt.err (!%p8105_p6)
}
 0x183   :  { %s8109_s11 = scalar_lea.vmem %s8715_s4, 32  ;;  %p8114_p8 = scmp.lt.s32.totalorder %s8715_s4, %s8715_s4 }
 0x184   :  { %p8110_p7 = scmp.ne.s32.totalorder %s8715_s4, %s8109_s11  ;;  %p8115_p9 = scmp.lt.s32.totalorder %s8109_s11, %s8109_s11 }
 0x186   :  { %p8116_p10 = por %p8115_p9, %p8114_p8 }
 0x188   :  { %p8117_p11 = pnand %p8116_p10, %p8110_p7 }
 0x18a   :  { %8120 = shalt.err (!%p8117_p11)
}
 0x18b   :  { %191 = dma.hbm_to_vmem [thread:$0]  %s9627_s12, 32, %s8715_s4, [#allocation21], %s9680_s28, %s9680_s28, %s8309_s8  }
 0x18c   :  { %s8327_s24 = smov [#allocation25]   ;;  %s8328_s23 = smov [#allocation28]  }
 0x18d   :  { %s209_s0 = sshll.u32 %s8327_s24, 4  ;;  %s233_s15 = sshll.u32 %s8328_s23, 4  ;;  %s210_s0 = int_to_ptr.vmem [resolvable:$true] %s209_s0  ;;  %s8752_s15 = int_to_ptr.vmem [resolvable:$true] %s233_s15 }
 0x18e   :  { %s8121_s9 = scalar_lea.hbm %s9629_s14, 32 }
 0x18f   :  { %p8122_p12 = scmp.ne.s32.totalorder %s9629_s14, %s8121_s9  ;;  %p8125_p13 = scmp.lt.u32.totalorder %s8121_s9, %s9629_s14 }
 0x191   :  { %p8127_p0 = pnand %p8125_p13, %p8122_p12 }
 0x193   :  { %8130 = shalt.err (!%p8127_p0)
}
 0x194   :  { %s8131_s12 = scalar_lea.vmem %s210_s0, 32  ;;  %p8136_p2 = scmp.lt.s32.totalorder %s210_s0, %s210_s0 }
 0x195   :  { %p8132_p1 = scmp.ne.s32.totalorder %s210_s0, %s8131_s12  ;;  %p8137_p3 = scmp.lt.s32.totalorder %s8131_s12, %s8131_s12 }
 0x197   :  { %p8138_p4 = por %p8137_p3, %p8136_p2 }
 0x199   :  { %p8139_p5 = pnand %p8138_p4, %p8132_p1 }
 0x19b   :  { %8142 = shalt.err (!%p8139_p5)
}
 0x19c   :  { %215 = dma.hbm_to_vmem [thread:$0]  %s9629_s14, 32, %s210_s0, [#allocation24], %s9680_s28, %s9680_s28, %s8309_s8  }
 0x19d   :  { %s8143_s13 = scalar_lea.hbm %s9631_s16, 32 }
 0x19e   :  { %p8144_p6 = scmp.ne.s32.totalorder %s9631_s16, %s8143_s13  ;;  %p8147_p7 = scmp.lt.u32.totalorder %s8143_s13, %s9631_s16 }
 0x1a0   :  { %p8149_p8 = pnand %p8147_p7, %p8144_p6 }
 0x1a2   :  { %8152 = shalt.err (!%p8149_p8)
}
 0x1a3   :  { %s8153_s10 = scalar_lea.vmem %s8752_s15, 32  ;;  %p8158_p10 = scmp.lt.s32.totalorder %s8752_s15, %s8752_s15 }
 0x1a4   :  { %p8154_p9 = scmp.ne.s32.totalorder %s8752_s15, %s8153_s10  ;;  %p8159_p11 = scmp.lt.s32.totalorder %s8153_s10, %s8153_s10 }
 0x1a6   :  { %p8160_p12 = por %p8159_p11, %p8158_p10 }
 0x1a8   :  { %p8161_p13 = pnand %p8160_p12, %p8154_p9 }
 0x1aa   :  { %8164 = shalt.err (!%p8161_p13)
}
 0x1ab   :  { %239 = dma.hbm_to_vmem [thread:$0]  %s9631_s16, 32, %s8752_s15, [#allocation27], %s9680_s28, %s9680_s28, %s8309_s8  }
 0x1ac   :  { %s8329_s24 = smov [#allocation31]   ;;  %s8330_s23 = smov [#allocation34]  }
 0x1ad   :  { %s257_s0 = sshll.u32 %s8329_s24, 4  ;;  %s281_s17 = sshll.u32 %s8330_s23, 4  ;;  %s258_s0 = int_to_ptr.vmem [resolvable:$true] %s257_s0  ;;  %s8789_s17 = int_to_ptr.vmem [resolvable:$true] %s281_s17 }
 0x1ae   :  { %s8165_s7 = scalar_lea.hbm %s9633_s18, 128 }
 0x1af   :  { %p8166_p0 = scmp.ne.s32.totalorder %s9633_s18, %s8165_s7  ;;  %p8169_p1 = scmp.lt.u32.totalorder %s8165_s7, %s9633_s18 }
 0x1b1   :  { %p8171_p2 = pnand %p8169_p1, %p8166_p0 }
 0x1b3   :  { %8174 = shalt.err (!%p8171_p2)
}
 0x1b4   :  { %s8175_s16 = scalar_lea.vmem %s258_s0, 128  ;;  %p8180_p4 = scmp.lt.s32.totalorder %s258_s0, %s258_s0 }
 0x1b5   :  { %p8176_p3 = scmp.ne.s32.totalorder %s258_s0, %s8175_s16  ;;  %p8181_p5 = scmp.lt.s32.totalorder %s8175_s16, %s8175_s16 }
 0x1b7   :  { %p8182_p6 = por %p8181_p5, %p8180_p4 }
 0x1b9   :  { %p8183_p7 = pnand %p8182_p6, %p8176_p3 }
 0x1bb   :  { %8186 = shalt.err (!%p8183_p7)
}
 0x1bc   :  { %263 = dma.hbm_to_vmem [thread:$0]  %s9633_s18, 128, %s258_s0, [#allocation30], %s9678_s2, %s9678_s2, %s9677_s30  }
 0x1bd   :  { %s8187_s1 = scalar_lea.hbm %s9635_s20, 32 }
 0x1be   :  { %p8188_p8 = scmp.ne.s32.totalorder %s9635_s20, %s8187_s1  ;;  %p8191_p9 = scmp.lt.u32.totalorder %s8187_s1, %s9635_s20 }
 0x1c0   :  { %p8193_p10 = pnand %p8191_p9, %p8188_p8 }
 0x1c2   :  { %8196 = shalt.err (!%p8193_p10)
}
 0x1c3   :  { %s8197_s11 = scalar_lea.vmem %s8789_s17, 32  ;;  %p8202_p12 = scmp.lt.s32.totalorder %s8789_s17, %s8789_s17 }
 0x1c4   :  { %p8198_p11 = scmp.ne.s32.totalorder %s8789_s17, %s8197_s11  ;;  %p8203_p13 = scmp.lt.s32.totalorder %s8197_s11, %s8197_s11 }
 0x1c6   :  { %p8204_p0 = por %p8203_p13, %p8202_p12 }
 0x1c8   :  { %p8205_p1 = pnand %p8204_p0, %p8198_p11 }
 0x1ca   :  { %8208 = shalt.err (!%p8205_p1)
}
 0x1cb   :  { %287 = dma.hbm_to_vmem [thread:$0]  %s9635_s20, 32, %s8789_s17, [#allocation33], %s9680_s28, %s9680_s28, %s8309_s8  }
 0x1cc   :  { %s8331_s10 = smov [#allocation37]   ;;  %s8332_s19 = smov [#allocation40]  }
 0x1cd   :  { %s304_s14 = sshll.u32 %s8331_s10, 4  ;;  %s326_s24 = sshll.u32 %s8332_s19, 4  ;;  %s305_s14 = int_to_ptr.vmem [resolvable:$true] %s304_s14  ;;  %s327_s24 = int_to_ptr.vmem [resolvable:$true] %s326_s24 }
 0x1ce   :  { %s9686_s29 = sld [smem:[#allocation66_spill]] }
 0x1d4   :  { %s8209_s9 = scalar_lea.hbm %s9686_s29, 16 }
 0x1d5   :  { %p8210_p2 = scmp.ne.s32.totalorder %s9686_s29, %s8209_s9  ;;  %p8213_p3 = scmp.lt.u32.totalorder %s8209_s9, %s9686_s29 }
 0x1d7   :  { %p8215_p4 = pnand %p8213_p3, %p8210_p2 }
 0x1d9   :  { %8218 = shalt.err (!%p8215_p4)
}
 0x1da   :  { %s8219_s20 = scalar_lea.vmem %s305_s14, 16  ;;  %s8223_s8 = scalar_lea.vmem %s305_s14, 32 }
 0x1db   :  { %p8220_p5 = scmp.ne.s32.totalorder %s305_s14, %s8219_s20  ;;  %p8224_p6 = scmp.lt.s32.totalorder %s305_s14, %s305_s14 }
 0x1dc   :  { %p8225_p7 = scmp.lt.s32.totalorder %s8223_s8, %s8219_s20 }
 0x1de   :  { %p8226_p8 = por %p8225_p7, %p8224_p6 }
 0x1e0   :  { %p8227_p9 = pnand %p8226_p8, %p8220_p5 }
 0x1e2   :  { %8230 = shalt.err (!%p8227_p9)
}
 0x1e3   :  { %307 = dma.hbm_to_vmem [thread:$0]  %s9686_s29, 16, %s305_s14, [#allocation36]  }
 0x1e4   :  { %s9687_s15 = sld [smem:[#allocation67_spill]] }
 0x1ea   :  { %s8231_s4 = scalar_lea.hbm %s9687_s15, 16 }
 0x1eb   :  { %p8232_p10 = scmp.ne.s32.totalorder %s9687_s15, %s8231_s4  ;;  %p8235_p11 = scmp.lt.u32.totalorder %s8231_s4, %s9687_s15 }
 0x1ed   :  { %p8237_p12 = pnand %p8235_p11, %p8232_p10 }
 0x1ef   :  { %8240 = shalt.err (!%p8237_p12)
}
 0x1f0   :  { %s8241_s5 = scalar_lea.vmem %s327_s24, 16  ;;  %s8245_s22 = scalar_lea.vmem %s327_s24, 32 }
 0x1f1   :  { %p8242_p13 = scmp.ne.s32.totalorder %s327_s24, %s8241_s5  ;;  %p8246_p0 = scmp.lt.s32.totalorder %s327_s24, %s327_s24 }
 0x1f2   :  { %p8247_p1 = scmp.lt.s32.totalorder %s8245_s22, %s8241_s5 }
 0x1f4   :  { %p8248_p2 = por %p8247_p1, %p8246_p0 }
 0x1f6   :  { %p8249_p3 = pnand %p8248_p2, %p8242_p13 }
 0x1f8   :  { %8252 = shalt.err (!%p8249_p3)
}
 0x1f9   :  { %329 = dma.hbm_to_vmem [thread:$0]  %s9687_s15, 16, %s327_s24, [#allocation39]  }
 0x1fa   :  { %8275 = dma.done.wait [#allocation3], 768  }
 0x1fb   :  { %8276 = vsyncadd [#allocation3], 4294966528 }
 0x1fc   :  { %8277 = dma.done.wait [#allocation6], 6160  }
 0x1fd   :  { %8278 = vsyncadd [#allocation6], 4294961136 }
 0x1fe   :  { %8279 = dma.done.wait [#allocation9], 144  }
 0x1ff   :  { %8280 = vsyncadd [#allocation9], 4294967152 }
 0x200   :  { %8281 = dma.done.wait [#allocation12], 64  }
 0x201   :  { %8282 = vsyncadd [#allocation12], 4294967232 }
 0x202   :  { %8283 = dma.done.wait [#allocation15], 2080  }
 0x203   :  { %8284 = vsyncadd [#allocation15], 4294965216 }
 0x204   :  { %8285 = dma.done.wait [#allocation18], 2080  }
 0x205   :  { %8286 = vsyncadd [#allocation18], 4294965216 }
 0x206   :  { %8287 = dma.done.wait [#allocation21], 2080  }
 0x207   :  { %8288 = vsyncadd [#allocation21], 4294965216 }
 0x208   :  { %8289 = dma.done.wait [#allocation24], 2080  }
 0x209   :  { %8290 = vsyncadd [#allocation24], 4294965216 }
 0x20a   :  { %8291 = dma.done.wait [#allocation27], 64  }
 0x20b   :  { %8292 = vsyncadd [#allocation27], 4294967232 }
 0x20c   :  { %8293 = dma.done.wait [#allocation30], 8320  }
 0x20d   :  { %8294 = vsyncadd [#allocation30], 4294958976 }
 0x20e   :  { %8295 = dma.done.wait [#allocation33], 8224  }
 0x20f   :  { %8296 = vsyncadd [#allocation33], 4294959072 }
 0x210   :  { %8297 = dma.done.wait [#allocation36], 32  }
 0x211   :  { %8298 = vsyncadd [#allocation36], 4294967264 }
 0x212   :  { %8299 = dma.done.wait [#allocation39], 1040  }
 0x213   :  { %8300 = vsyncadd [#allocation39], 4294966256  ;;  %v7309_v0 = vld [vmem:[#allocation5 + $0x40] sm:$0xff]   ;;  %v7313_v4 = vld [vmem:[#allocation5 + $0x48] sm:$0xff]   ;;  %vm961_vm0 = vcmask 1041408   ;;  %vm951_vm1 = vcmask 1040384  }
 0x214   :  { %v7310_v1 = vld [vmem:[#allocation5] sm:$0xff]   ;;  %6435 = vmatprep.subr.bf16.mxu0 %v7309_v0  ;;  %v7314_v5 = vld [vmem:[#allocation5 + $0x8] sm:$0xff]   ;;  %v7317_v8 = vld [vmem:[#allocation5 + $0x50] sm:$0xff]   ;;  %vm953_vm2 = vcmask 1044480   ;;  %vm955_vm3 = vcmask 1045504   ;;  %vm8334_vm4 = vmmov 0  }
 0x215   :  { %v7311_v2 = vld [vmem:[#allocation5 + $0xc0] sm:$0xff]   ;;  %6436 = vmatpush3.bf16.msra.mxu0 %v7310_v1  ;;  %v7315_v6 = vld [vmem:[#allocation5 + $0xc8] sm:$0xff]   ;;  %v7318_v9 = vld [vmem:[#allocation5 + $0x10] sm:$0xff]   ;;  %vm1357_vm5 = vcmask 261120   ;;  %vm1422_vm6 = vcmask 1042432   ;;  %vm1405_vm7 = vcmask 36864  }
 0x216   :  { %v7312_v3 = vld [vmem:[#allocation5 + $0x80] sm:$0xff]   ;;  %6457 = vmatprep.subr.bf16.mxu1 %v7311_v2  ;;  %6437 = vmatprep.subr.bf16.mxu0 %v7313_v4  ;;  %v7316_v7 = vld [vmem:[#allocation5 + $0x88] sm:$0xff]   ;;  %v7319_v10 = vld [vmem:[#allocation5 + $0xd0] sm:$0xff]   ;;  %s8336_s18 = smov 96   ;;  %vm1418_vm8 = vcmask 39936   ;;  %s8337_s30 = smov 32  }
 0x217   :  { %6458 = vmatpush3.bf16.msra.mxu1 %v7312_v3  ;;  %v7320_v11 = vld [vmem:[#allocation5 + $0x90] sm:$0xff]   ;;  %v7321_v12 = vld [vmem:[#allocation5 + $0x58] sm:$0xff]   ;;  %v7325_v16 = vld [vmem:[#allocation5 + $0x60] sm:$0xff]  }
 0x218   :  { %6459 = vmatprep.subr.bf16.mxu1 %v7315_v6  ;;  %v7322_v13 = vld [vmem:[#allocation5 + $0x18] sm:$0xff]   ;;  %v7326_v17 = vld [vmem:[#allocation5 + $0x20] sm:$0xff]   ;;  %v7329_v20 = vld [vmem:[#allocation5 + $0x68] sm:$0xff]  }
 0x219   :  { %6438 = vmatpush3.bf16.msra.mxu0 %v7314_v5  ;;  %v7323_v14 = vld [vmem:[#allocation5 + $0xd8] sm:$0xff]   ;;  %v7327_v18 = vld [vmem:[#allocation5 + $0xe0] sm:$0xff]   ;;  %v7330_v21 = vld [vmem:[#allocation5 + $0x28] sm:$0xff]  }
 0x21a   :  { %6439 = vmatprep.subr.bf16.mxu0 %v7317_v8  ;;  %v7324_v15 = vld [vmem:[#allocation5 + $0x98] sm:$0xff]   ;;  %v7328_v19 = vld [vmem:[#allocation5 + $0xa0] sm:$0xff]   ;;  %v7331_v22 = vld [vmem:[#allocation5 + $0xe8] sm:$0xff]  }
 0x21b   :  { %6460 = vmatpush3.bf16.msra.mxu1 %v7316_v7  ;;  %v7332_v23 = vld [vmem:[#allocation5 + $0xa8] sm:$0xff]   ;;  %v7333_v24 = vld [vmem:[#allocation5 + $0x70] sm:$0xff]   ;;  %v7337_v28 = vld [vmem:[#allocation5 + $0x78] sm:$0xff]  }
 0x21c   :  { %6461 = vmatprep.subr.bf16.mxu1 %v7319_v10  ;;  %v7334_v25 = vld [vmem:[#allocation5 + $0x30] sm:$0xff]   ;;  %v7338_v29 = vld [vmem:[#allocation5 + $0x38] sm:$0xff]   ;;  %v7341_v36 = vld [vmem:[#allocation5 + $0x140] sm:$0xff]  }
 0x21d   :  { %6440 = vmatpush3.bf16.msra.mxu0 %v7318_v9  ;;  %v7335_v26 = vld [vmem:[#allocation5 + $0xf0] sm:$0xff]   ;;  %v7339_v30 = vld [vmem:[#allocation5 + $0xf8] sm:$0xff]   ;;  %v409_v37 = vld [vmem:[#allocation2 + $0x18] sm:$0xff]  ;;  %v943_v9 = vlaneseq }
 0x21e   :  { %6441 = vmatprep.subr.bf16.mxu0 %v7321_v12  ;;  %v7336_v27 = vld [vmem:[#allocation5 + $0xb0] sm:$0xff]   ;;  %v407_v31 = vld [vmem:[#allocation2 + $0x8] sm:$0xff]  ;;  %v512_v38 = vpack.c.bf16 %v409_v37, %v409_v37  ;;  %v7342_v39 = vld [vmem:[#allocation5 + $0x100] sm:$0xff]  }
 0x21f   :  { %6462 = vmatpush3.bf16.msra.mxu1 %v7320_v11  ;;  %v510_v32 = vpack.c.bf16 %v407_v31, %v407_v31  ;;  %v7340_v33 = vld [vmem:[#allocation5 + $0xb8] sm:$0xff]   ;;  %v406_v34 = vld [vmem:[#allocation2] sm:$0xff]  ;;  %v408_v40 = vld [vmem:[#allocation2 + $0x10] sm:$0xff]  ;;  %v8850_v11 = vshrl.u32 %v943_v9, 7 }
 0x220   :  { %6463 = vmatprep.subr.bf16.mxu1 %v7323_v14  ;;  %v509_v35 = vpack.c.bf16 %v406_v34, %v406_v34  ;;  %881 = vmatprep.mubr.bf16.mxu1 %v512_v38  ;;  %v511_v41 = vpack.c.bf16 %v408_v40, %v408_v40  ;;  %v7343_v42 = vld [vmem:[#allocation5 + $0x148] sm:$0xff]   ;;  %v7345_v44 = vld [vmem:[#allocation5 + $0x150] sm:$0xff]   ;;  %v7347_v46 = vld [vmem:[#allocation5 + $0x158] sm:$0xff]   ;;  %v8333_v34 = vmov 0.0  }
 0x221   :  { %6442 = vmatpush3.bf16.msra.mxu0 %v7322_v13  ;;  %841 = vmatprep.mubr.bf16.mxu0 %v510_v32  ;;  %v7344_v43 = vld [vmem:[#allocation5 + $0x108] sm:$0xff]   ;;  %v7346_v45 = vld [vmem:[#allocation5 + $0x110] sm:$0xff]   ;;  %v7348_v47 = vld [vmem:[#allocation5 + $0x118] sm:$0xff]  }
 0x222   :  { %6443 = vmatprep.subr.bf16.mxu0 %v7325_v16  ;;  %v7349_v48 = vld [vmem:[#allocation5 + $0x160] sm:$0xff]   ;;  %v7351_v50 = vld [vmem:[#allocation5 + $0x168] sm:$0xff]   ;;  %v411_v51 = vld [vmem:[#allocation2 + $0x28] sm:$0xff] }
 0x223   :  { %6464 = vmatpush3.bf16.msra.mxu1 %v7324_v15  ;;  %v7350_v49 = vld [vmem:[#allocation5 + $0x120] sm:$0xff]   ;;  %v7352_v52 = vld [vmem:[#allocation5 + $0x128] sm:$0xff]   ;;  %v514_v53 = vpack.c.bf16 %v411_v51, %v411_v51  ;;  %v7353_v54 = vld [vmem:[#allocation5 + $0x170] sm:$0xff]  }
 0x224   :  { %6465 = vmatprep.subr.bf16.mxu1 %v7327_v18  ;;  %v7354_v55 = vld [vmem:[#allocation5 + $0x130] sm:$0xff]   ;;  %v7355_v56 = vld [vmem:[#allocation5 + $0x178] sm:$0xff]   ;;  %v6117_v61 = vld [vmem:[#allocation7] ss:$0 sm:$0xff] }
 0x225   :  { %6444 = vmatpush3.bf16.msra.mxu0 %v7326_v17  ;;  %v7356_v57 = vld [vmem:[#allocation5 + $0x138] sm:$0xff]   ;;  %v410_v58 = vld [vmem:[#allocation2 + $0x20] sm:$0xff]  ;;  %v930_v10 = vld [vmem:[#allocation10] sm:$0x1f] }
 0x226   :  { %6445 = vmatprep.subr.bf16.mxu0 %v7329_v20  ;;  %v513_v59 = vpack.c.bf16 %v410_v58, %v410_v58  ;;  %v929_v13 = vld [vmem:[#allocation8] sm:$0x1]  ;;  %v933_v16 = vrot.slane %v930_v10, 1  ;;  %v936_v17 = vrot.slane %v930_v10, 5  ;;  %v7357_v32 = vld [vmem:[#allocation14] sm:$0xff]  }
 0x227   :  { %6466 = vmatpush3.bf16.msra.mxu1 %v7328_v19  ;;  %v931_v20 = vadd.f32 %v930_v10, %v929_v13  ;;  %v7366_v51 = vld [vmem:[#allocation17 + $0x20] sm:$0xff]   ;;  %v7374_v13 = vld [vmem:[#allocation20 + $0x8] sm:$0xff]  }
 0x228   :  { %6467 = vmatprep.subr.bf16.mxu1 %v7331_v22  ;;  %v7373_v10 = vld [vmem:[#allocation20] sm:$0xff]  }
 0x229   :  { %6446 = vmatpush3.bf16.msra.mxu0 %v7330_v21  ;;  %v8853_v21 = vsub.s32 0, %v8850_v11 }
 0x22a   :  { %6447 = vmatprep.subr.bf16.mxu0 %v7333_v24 }
 0x22b   :  { %6468 = vmatpush3.bf16.msra.mxu1 %v7332_v23 }
 0x22c   :  { %6469 = vmatprep.subr.bf16.mxu1 %v7335_v26 }
 0x22d   :  { %6448 = vmatpush3.bf16.msra.mxu0 %v7334_v25  ;;  %v946_v25 = vrot.slane %v931_v20, %v8853_v21 }
 0x22e   :  { %6449 = vmatprep.subr.bf16.mxu0 %v7337_v28 }
 0x22f   :  { %6470 = vmatpush3.bf16.msra.mxu1 %v7336_v27 }
 0x230   :  { %6471 = vmatprep.subr.bf16.mxu1 %v7339_v30 }
 0x231   :  { %6450 = vmatpush3.bf16.msra.mxu0 %v7338_v29 }
 0x232   :  { %6479 = vmatprep.subr.bf16.mxu0 %v7341_v36 }
 0x233   :  { %6472 = vmatpush3.bf16.msra.mxu1 %v7340_v33  ;;  %v7358_v33 = vld [vmem:[#allocation17] sm:$0xff]  }
 0x234   :  { %842 = vmatmul.mubr.bf16.vlgmr.msra.gmra.mrb[0].mxu0 %v509_v35  ;;  %6764 = vmatprep.subr.bf16.mxu1 %v8333_v34  ;;  %v7359_v35 = vld [vmem:[#allocation14 + $0x8] sm:$0xff]  }
 0x235   :  { %6480 = vmatpush3.bf16.msra.mxu0 %v7342_v39  ;;  %921 = vmatprep.mubr.bf16.mxu0 %v514_v53  ;;  %v7368_v53 = vld [vmem:[#allocation17 + $0x28] sm:$0xff]  }
 0x236   :  { %882 = vmatmul.mubr.bf16.vlgmr.msra.gmra.mrb[0].mxu1 %v511_v41  ;;  %6481 = vmatprep.subr.bf16.mxu0 %v7343_v42 }
 0x237   :  { %6765 = vmatpush3.bf16.msra.mxu1 %v7357_v32  ;;  %6780 = vmatprep.mubr.msk.bf16.mxu1 %vm8334_vm4, %v8333_v34 }
 0x238   :  { %6766 = vmatprep.subr.bf16.mxu1 %v8333_v34 }
 0x239   :  { %6482 = vmatpush3.bf16.msra.mxu0 %v7344_v43 }
 0x23a   :  { %6483 = vmatprep.subr.bf16.mxu0 %v7345_v44 }
 0x23b   :  { %6767 = vmatpush3.bf16.msra.mxu1 %v7359_v35 }
 0x23c   :  { %6768 = vmatprep.subr.bf16.mxu1 %v8333_v34 }
 0x23d   :  { %6484 = vmatpush3.bf16.msra.mxu0 %v7346_v45  ;;  %v7360_v45 = vld [vmem:[#allocation17 + $0x8] sm:$0xff]  }
 0x23e   :  { %6485 = vmatprep.subr.bf16.mxu0 %v7347_v46  ;;  %v7361_v46 = vld [vmem:[#allocation14 + $0x10] sm:$0xff]  }
 0x23f   :  { %6769 = vmatpush3.bf16.msra.mxu1 %v7361_v46 }
 0x240   :  { %6770 = vmatprep.subr.bf16.mxu1 %v8333_v34 }
 0x241   :  { %6486 = vmatpush3.bf16.msra.mxu0 %v7348_v47  ;;  %v7362_v47 = vld [vmem:[#allocation17 + $0x10] sm:$0xff]  }
 0x242   :  { %6487 = vmatprep.subr.bf16.mxu0 %v7349_v48  ;;  %v7363_v48 = vld [vmem:[#allocation14 + $0x18] sm:$0xff]  }
 0x243   :  { %6771 = vmatpush3.bf16.msra.mxu1 %v7363_v48 }
 0x244   :  { %6772 = vmatprep.subr.bf16.mxu1 %v8333_v34 }
 0x245   :  { %6488 = vmatpush3.bf16.msra.mxu0 %v7350_v49  ;;  %v7364_v49 = vld [vmem:[#allocation17 + $0x18] sm:$0xff]  }
 0x246   :  { %6489 = vmatprep.subr.bf16.mxu0 %v7351_v50  ;;  %v7365_v50 = vld [vmem:[#allocation14 + $0x20] sm:$0xff]  }
 0x247   :  { %6773 = vmatpush3.bf16.msra.mxu1 %v7365_v50 }
 0x248   :  { %6774 = vmatprep.subr.bf16.mxu1 %v8333_v34 }
 0x249   :  { %6490 = vmatpush3.bf16.msra.mxu0 %v7352_v52  ;;  %v7367_v52 = vld [vmem:[#allocation14 + $0x28] sm:$0xff]  }
 0x24a   :  { %6491 = vmatprep.subr.bf16.mxu0 %v7353_v54  ;;  %v7369_v54 = vld [vmem:[#allocation14 + $0x30] sm:$0xff]  }
 0x24b   :  { %6775 = vmatpush3.bf16.msra.mxu1 %v7367_v52 }
 0x24c   :  { %6776 = vmatprep.subr.bf16.mxu1 %v8333_v34 }
 0x24d   :  { %6492 = vmatpush3.bf16.msra.mxu0 %v7354_v55  ;;  %v7370_v55 = vld [vmem:[#allocation17 + $0x30] sm:$0xff]  }
 0x24e   :  { %6493 = vmatprep.subr.bf16.mxu0 %v7355_v56  ;;  %v7371_v56 = vld [vmem:[#allocation14 + $0x38] sm:$0xff]  }
 0x24f   :  { %6777 = vmatpush3.bf16.msra.mxu1 %v7369_v54 }
 0x250   :  { %6778 = vmatprep.subr.bf16.mxu1 %v8333_v34 }
 0x251   :  { %6494 = vmatpush3.bf16.msra.mxu0 %v7356_v57  ;;  %v7372_v57 = vld [vmem:[#allocation17 + $0x38] sm:$0xff]  }
 0x252   :  { %6784 = vmatprep.subr.bf16.mxu0 %v8333_v34 }
 0x253   :  { %6779 = vmatpush3.bf16.msra.mxu1 %v7371_v56 }
 0x254   :  { %922 = vmatmul.mubr.bf16.vlgmr.msra.gmra.mrb[4].mxu0 %v513_v59  ;;  %6804 = vmatprep.subr.bf16.mxu1 %v8333_v34 }
 0x255   :  { %6785 = vmatpush3.bf16.msra.mxu0 %v7358_v33  ;;  %6800 = vmatprep.mubr.msk.bf16.mxu0 %vm8334_vm4, %v8333_v34 }
 0x256   :  { %6786 = vmatprep.subr.bf16.mxu0 %v8333_v34 }
 0x259   :  { %6787 = vmatpush3.bf16.msra.mxu0 %v7360_v45 }
 0x25a   :  { %6788 = vmatprep.subr.bf16.mxu0 %v8333_v34 }
 0x25d   :  { %6789 = vmatpush3.bf16.msra.mxu0 %v7362_v47 }
 0x25e   :  { %6790 = vmatprep.subr.bf16.mxu0 %v8333_v34 }
 0x261   :  { %6791 = vmatpush3.bf16.msra.mxu0 %v7364_v49 }
 0x262   :  { %6792 = vmatprep.subr.bf16.mxu0 %v8333_v34 }
 0x265   :  { %6793 = vmatpush3.bf16.msra.mxu0 %v7366_v51 }
 0x266   :  { %6794 = vmatprep.subr.bf16.mxu0 %v8333_v34 }
 0x269   :  { %6795 = vmatpush3.bf16.msra.mxu0 %v7368_v53 }
 0x26a   :  { %6796 = vmatprep.subr.bf16.mxu0 %v8333_v34 }
 0x26d   :  { %6797 = vmatpush3.bf16.msra.mxu0 %v7370_v55 }
 0x26e   :  { %6798 = vmatprep.subr.bf16.mxu0 %v8333_v34 }
 0x271   :  { %6799 = vmatpush3.bf16.msra.mxu0 %v7372_v57 }
 0x272   :  { %6824 = vmatprep.subr.bf16.mxu0 %v8333_v34 }
 0x307   :  { %v6451_v60 = vpop.f32.mrb[0].mxu0 }
 0x308   :  { %v6452_v62 = vpop.f32.mrb[1].mxu0 }
 0x309   :  { %v6453_v63 = vadd.f32 %v6452_v62, %v6451_v60  ;;  %v6454_v0 = vpop.f32.mrb[2].mxu0  ;;  %v6473_v1 = vpop.f32.mrb[0].mxu1 }
 0x30a   :  { %v6455_v2 = vpop.f32.mrb[3].mxu0  ;;  %v6474_v4 = vpop.f32.mrb[1].mxu1 }
 0x30b   :  { %v844_v3 = vadd.f32 %v6453_v63, %v6117_v61  ;;  %v6475_v5 = vadd.f32 %v6474_v4, %v6473_v1  ;;  %v6476_v6 = vpop.f32.mrb[2].mxu1  ;;  %v6166_v2 = vld [vmem:[#allocation11] ss:$0 sm:$0xff] }
 0x30c   :  { %v6477_v7 = vpop.f32.mrb[3].mxu1  ;;  %v6167_v6 = vld [vmem:[#allocation13] ss:$0 sm:$0xff] }
 0x30d   :  { %v884_v8 = vadd.f32 %v6475_v5, %v844_v3 }
 0x327   :  { %v6495_v12 = vpop.f32.mrb[4].mxu0 }
 0x328   :  { %v6496_v14 = vpop.f32.mrb[5].mxu0 }
 0x329   :  { %v6497_v15 = vadd.f32 %v6496_v14, %v6495_v12  ;;  %v6498_v18 = vpop.f32.mrb[6].mxu0  ;;  %v7375_v14 = vld [vmem:[#allocation20 + $0x10] sm:$0xff]  }
 0x32a   :  { %v6499_v19 = vpop.f32.mrb[7].mxu0  ;;  %v7379_v18 = vld [vmem:[#allocation20 + $0x30] sm:$0xff]  }
 0x32b   :  { %v924_v22 = vadd.f32 %v6497_v15, %v884_v8  ;;  %v7376_v15 = vld [vmem:[#allocation20 + $0x18] sm:$0xff]  }
 0x32c   :  { %v7380_v19 = vld [vmem:[#allocation20 + $0x38] sm:$0xff]  }
 0x32d   :  { %v935_v23 = vadd.f32 %v933_v16, %v924_v22  ;;  %v938_v24 = vadd.f32 %v936_v17, %v924_v22  ;;  %v7377_v16 = vld [vmem:[#allocation20 + $0x20] sm:$0xff]   ;;  %v7378_v17 = vld [vmem:[#allocation20 + $0x28] sm:$0xff]  }
 0x32f   :  { %v940_v26 = vrot.slane %v935_v23, 7  ;;  %v8856_v27 = vrot.slane %v938_v24, 6  ;;  %v6177_v23 = vld [vmem:[#allocation19] ss:$0 sm:$0xff] }
 0x331   :  { %v962_v28 = vsel %vm961_vm0, %v8856_v27, 0.0  ;;  %v952_v29 = vsel %vm951_vm1, %v931_v20, %v940_v26  ;;  %v6168_v20 = vld [vmem:[#allocation16] ss:$0 sm:$0xff] }
 0x332   :  { %963 = vadd.xlane.f32.xlu0 %v962_v28  ;;  %v954_v30 = vsel %vm953_vm2, %v952_v29, %v946_v25 }
 0x333   :  { %v8863_v31 = vsel %vm955_vm3, %v954_v30, %v8856_v27 }
 0x336   :  { %959 = vadd.xlane.f32.xlu0 %v8863_v31 }
 0x3bf   :  { %v964_v36 = vpop.xlane.xlu0 %963 }
 0x3c0   :  { %v967_v37 = vmul.f32 0.0078125, %v964_v36 }
 0x3c2   :  { %v969_v40 = vsub.f32 %v8856_v27, %v967_v37 }
 0x3c3   :  { %v960_v38 = vpop.xlane.xlu0 %959 }
 0x3c4   :  { %v966_v39 = vmul.f32 0.0078125, %v960_v38  ;;  %v971_v43 = vmul.f32 %v969_v40, %v969_v40 }
 0x3c6   :  { %v968_v41 = vsub.f32 %v8863_v31, %v966_v39  ;;  %v974_v44 = vsel %vm961_vm0, %v971_v43, 0.0  ;;  %v8335_v43 = vmov 65535  }
 0x3c8   :  { %v970_v42 = vmul.f32 %v968_v41, %v968_v41 }
 0x3ca   :  { %972 = vadd.xlane.f32.xlu1 %v970_v42 }
 0x3ce   :  { %975 = vadd.xlane.f32.xlu1 %v974_v44  ;;  %v1423_v44 = vsel %vm961_vm0, 4294967295, %v8335_v43 }
 0x3cf   :  { %v8917_v50 = vsel %vm1422_vm6, %v1423_v44, 0 }
 0x457   :  { %v973_v58 = vpop.xlane.xlu1 %972 }
 0x458   :  { %v977_v59 = vmul.f32 0.0078125, %v973_v58 }
 0x45a   :  { %v979_v60 = vadd.f32 1e-06, %v977_v59 }
 0x45b   :  { %v976_v61 = vpop.xlane.xlu1 %975 }
 0x45c   :  { %7589 = vrsqrt.f32 %v979_v60  ;;  %v978_v62 = vmul.f32 0.0078125, %v976_v61 }
 0x45e   :  { %v980_v63 = vadd.f32 1e-06, %v978_v62 }
 0x460   :  { %7591 = vrsqrt.f32 %v980_v63 }
 0x466   :  { %v7590_v0 = vpop.eup %7589 }
 0x467   :  { %v983_v1 = vmul.f32 %v7590_v0, %v968_v41  ;;  %v6186_v41 = vld [vmem:[#allocation22] ss:$0 sm:$0xff] }
 0x469   :  { %v991_v5 = vmul.f32 %v6166_v2, %v983_v1 }
 0x46a   :  { %v7592_v3 = vpop.eup %7591 }
 0x46b   :  { %v984_v4 = vmul.f32 %v7592_v3, %v969_v40  ;;  %v999_v8 = vadd.f32 %v6167_v6, %v991_v5 }
 0x46d   :  { %v992_v7 = vmul.f32 %v6166_v2, %v984_v4 }
 0x46f   :  { %v1000_v9 = vadd.f32 %v6167_v6, %v992_v7 }
 0x471   :  { %v1001_v12 = vpack.c.bf16 %v1000_v9, %v999_v8 }
 0x473   :  { %6781 = vmatmul.mubr.bf16.vlgmr.msra.gmra.mrb[4].mxu1 %v1001_v12  ;;  %6801 = vmatmul.mubr.bf16.vlgmr.msra.gmra.mrb[8].mxu0 %v1001_v12 }
 0x474   :  { %6805 = vmatpush3.bf16.msra.mxu1 %v7373_v10  ;;  %6820 = vmatprep.mubr.msk.bf16.mxu1 %vm8334_vm4, %v8333_v34 }
 0x475   :  { %6806 = vmatprep.subr.bf16.mxu1 %v8333_v34  ;;  %6826 = vmatprep.mubr.msk.bf16.mxu0 %vm8334_vm4, %v8333_v34 }
 0x478   :  { %6807 = vmatpush3.bf16.msra.mxu1 %v7374_v13 }
 0x479   :  { %6808 = vmatprep.subr.bf16.mxu1 %v8333_v34 }
 0x47c   :  { %6809 = vmatpush3.bf16.msra.mxu1 %v7375_v14 }
 0x47d   :  { %6810 = vmatprep.subr.bf16.mxu1 %v8333_v34 }
 0x480   :  { %6811 = vmatpush3.bf16.msra.mxu1 %v7376_v15 }
 0x481   :  { %6812 = vmatprep.subr.bf16.mxu1 %v8333_v34 }
 0x484   :  { %6813 = vmatpush3.bf16.msra.mxu1 %v7377_v16 }
 0x485   :  { %6814 = vmatprep.subr.bf16.mxu1 %v8333_v34 }
 0x488   :  { %6815 = vmatpush3.bf16.msra.mxu1 %v7378_v17 }
 0x489   :  { %6816 = vmatprep.subr.bf16.mxu1 %v8333_v34 }
 0x48c   :  { %6817 = vmatpush3.bf16.msra.mxu1 %v7379_v18 }
 0x48d   :  { %6818 = vmatprep.subr.bf16.mxu1 %v8333_v34 }
 0x490   :  { %6819 = vmatpush3.bf16.msra.mxu1 %v7380_v19 }
 0x491   :  { %6842 = vmatprep.subr.bf16.mxu1 %v8333_v34 }
 0x493   :  { %6821 = vmatmul.mubr.bf16.vlgmr.msra.gmra.mrb[8].mxu1 %v1001_v12 }
 0x494   :  { %6844 = vmatprep.mubr.msk.bf16.mxu1 %vm8334_vm4, %v8333_v34 }
 0x546   :  { %v1107_v22 = vpop.f32.mrb[4].mxu1  ;;  %v1219_v24 = vpop.f32.mrb[8].mxu0 }
 0x547   :  { %v6782_v25 = vpop.f32.mrb[5].mxu1  ;;  %v6802_v26 = vpop.f32.mrb[9].mxu0  ;;  %v1108_v30 = vadd.f32 %v6168_v20, %v1107_v22  ;;  %v1220_v32 = vadd.f32 %v6177_v23, %v1219_v24  ;;  %v8948_v24 = vld [vmem:[#allocation23 + $0x10] sm:$0xff]  }
 0x548   :  { %v1110_v28 = vpop.f32.mrb[6].mxu1  ;;  %v1222_v29 = vpop.f32.mrb[10].mxu0 }
 0x549   :  { %v1111_v33 = vadd.f32 %v6168_v20, %v1110_v28  ;;  %v1223_v35 = vadd.f32 %v6177_v23, %v1222_v29  ;;  %v6783_v36 = vpop.f32.mrb[7].mxu1  ;;  %v6803_v37 = vpop.f32.mrb[11].mxu0 }
 0x54a   :  { %v8962_v37 = vld [vmem:[#allocation23 + $0x18] sm:$0xff]  }
 0x54b   :  { %v8905_v38 = vpack.c.bf16 %v1111_v33, %v1108_v30  ;;  %v8907_v39 = vpack.c.bf16 %v1223_v35, %v1220_v32 }
 0x54d   :  { %v1362_v40 = vsel %vm1357_vm5, %v8907_v39, 0 }
 0x54e   :  { %6825 = vmatpush3.bf16.xpose.msra.mxu0 %v1362_v40 }
 0x54f   :  { %6830 = vmatprep.subr.bf16.mxu0 %v8333_v34 }
 0x555   :  { %6827 = vmatmul.mubr.msk.bf16.vlgmr.msra.gmra.mrb[12].mxu0 %vm1357_vm5, %v8905_v38 }
 0x556   :  { %6832 = vmatprep.mubr.msk.bf16.mxu0 %vm8334_vm4, %v8333_v34 }
 0x566   :  { %v1331_v42 = vpop.f32.mrb[8].mxu1 }
 0x567   :  { %v6822_v45 = vpop.f32.mrb[9].mxu1  ;;  %v1332_v47 = vadd.f32 %v6186_v41, %v1331_v42 }
 0x568   :  { %v1334_v46 = vpop.f32.mrb[10].mxu1 }
 0x569   :  { %v1335_v48 = vadd.f32 %v6186_v41, %v1334_v46  ;;  %v6823_v49 = vpop.f32.mrb[11].mxu1  ;;  %v8966_v41 = vld [vmem:[#allocation23] sm:$0xff]   ;;  %v8970_v46 = vld [vmem:[#allocation23 + $0x8] sm:$0xff]  }
 0x56b   :  { %v8919_v51 = vpack.c.bf16 %v1335_v48, %v1332_v47 }
 0x56d   :  { %v1426_v52 = vand.u32 %v8917_v50, %v8919_v51 }
 0x56f   :  { %6831 = vmatpush3.bf16.msra.mxu0 %v1426_v52 }
 0x570   :  { %6836 = vmatprep.subr.bf16.mxu0 %v8333_v34 }
 0x628   :  { %v1398_v53 = vpop.f32.mrb[12].mxu0 }
 0x629   :  { %v1404_v54 = vmul.f32 0.17677669, %v1398_v53  ;;  %v6828_v55 = vpop.f32.mrb[13].mxu0 }
 0x62a   :  { %v1401_v56 = vpop.f32.mrb[14].mxu0 }
 0x62b   :  { %v6829_v57 = vpop.f32.mrb[15].mxu0  ;;  %v1406_v58 = vsel %vm1405_vm7, %v1404_v54, -inf }
 0x62c   :  { %1407 = vmax.xlane.f32.xlu0 %v1406_v58 }
 0x642   :  { %1473 = vrot.lane.b32.xlu0 %v8907_v39, %s8336_s18 }
 0x6b9   :  { %v1408_v59 = vpop.xlane.xlu0 %1407 }
 0x6ba   :  { %v1409_v60 = vsub.f32 %v1404_v54, %v1408_v59 }
 0x6bc   :  { %v1410_v61 = vmul.f32 1.442695, %v1409_v60 }
 0x6bd   :  { %v1474_v3 = vpop.permute.xlu0 %1473 }
 0x6be   :  { %7593 = vpow2.f32 %v1410_v61  ;;  %v1479_v5 = vsel %vm1357_vm5, %v1474_v3, 0  ;;  %v8990_v61 = vld [vmem:[#allocation23 + $0x20] sm:$0xff]   ;;  %v2037_v3 = vshrl.u32 %v8907_v39, 16 }
 0x6c8   :  { %v7594_v62 = vpop.eup %7593 }
 0x6c9   :  { %v1412_v63 = vsel %vm1405_vm7, %v7594_v62, 0.0 }
 0x6ca   :  { %1413 = vadd.xlane.f32.xlu1 %v1412_v63 }
 0x6db   :  { %1470 = vrot.lane.b32.xlu1 %v8905_v38, %s8336_s18 }
 0x757   :  { %v1414_v0 = vpop.xlane.xlu1 %1413 }
 0x758   :  { %7595 = vrcp.f32 %v1414_v0 }
 0x75b   :  { %v1471_v6 = vpop.permute.xlu1 %1470 }
 0x762   :  { %v7596_v1 = vpop.eup %7595 }
 0x763   :  { %v1416_v2 = vmul.f32 %v7596_v1, %v7594_v62 }
 0x765   :  { %v1417_v4 = vpack.c.bf16 %v1416_v2, %v1416_v2 }
 0x767   :  { %6833 = vmatmul.mubr.msk.bf16.vlgmr.msra.gmra.mrb[16].mxu0 %vm1418_vm8, %v1417_v4  ;;  %v2040_v4 = vshll.u32 %v8907_v39, 16 }
 0x768   :  { %6837 = vmatpush3.bf16.xpose.msra.mxu0 %v1479_v5  ;;  %6838 = vmatprep.mubr.msk.bf16.mxu0 %vm8334_vm4, %v8333_v34 }
 0x769   :  { %6848 = vmatprep.subr.bf16.mxu0 %v8333_v34 }
 0x76f   :  { %6839 = vmatmul.mubr.msk.bf16.vlgmr.msra.gmra.mrb[20].mxu0 %vm1357_vm5, %v1471_v6 }
 0x770   :  { %6852 = vmatprep.mubr.msk.bf16.mxu0 %vm8334_vm4, %v8333_v34  ;;  %6849 = vmatpush3.bf16.msra.mxu0 %v8948_v24 }
 0x771   :  { %6850 = vmatprep.subr.bf16.mxu0 %v8333_v34 }
 0x774   :  { %6851 = vmatpush3.bf16.msra.mxu0 %v8962_v37 }
 0x775   :  { %6856 = vmatprep.subr.bf16.mxu0 %v8333_v34 }
 0x83a   :  { %v8938_v7 = vpop.f32.mrb[16].mxu0 }
 0x83b   :  { %v6834_v8 = vpop.f32.mrb[17].mxu0  ;;  %v1468_v55 = vpack.c.bf16 %v8938_v7, %v8938_v7 }
 0x83c   :  { %v1465_v9 = vpop.f32.mrb[18].mxu0  ;;  %v2039_v8 = vrot.slane %v2037_v3, 2 }
 0x83d   :  { %v6835_v10 = vpop.f32.mrb[19].mxu0  ;;  %v2042_v9 = vrot.slane %v2040_v4, 3 }
 0x83e   :  { %v2103_v10 = vshrl.u32 %v8919_v51, 16 }
 0x842   :  { %v1515_v12 = vpop.f32.mrb[20].mxu0 }
 0x843   :  { %v1521_v13 = vmul.f32 0.17677669, %v1515_v12  ;;  %v6840_v14 = vpop.f32.mrb[21].mxu0  ;;  %v2106_v12 = vshll.u32 %v8919_v51, 16 }
 0x844   :  { %v1518_v15 = vpop.f32.mrb[22].mxu0  ;;  %v2033_v14 = vshll.u32 %v8905_v38, 16 }
 0x845   :  { %v6841_v16 = vpop.f32.mrb[23].mxu0  ;;  %v1522_v17 = vsel %vm1405_vm7, %v1521_v13, -inf }
 0x846   :  { %1523 = vmax.xlane.f32.xlu1 %v1522_v17  ;;  %v2105_v16 = vrot.slane %v2103_v10, 2  ;;  %v2108_v17 = vrot.slane %v2106_v12, 3 }
 0x857   :  { %1696 = vrot.lane.b32.xlu1 %v8907_v39, %s9678_s2 }
 0x85b   :  { %1694 = vrot.lane.b32.xlu1 %v8905_v38, %s9678_s2 }
 0x8d3   :  { %v1524_v18 = vpop.xlane.xlu1 %1523 }
 0x8d4   :  { %v1525_v19 = vsub.f32 %v1521_v13, %v1524_v18  ;;  %v9005_v13 = vor.u32 %v2042_v9, %v2039_v8 }
 0x8d6   :  { %v1526_v20 = vmul.f32 1.442695, %v1525_v19  ;;  %v2048_v18 = vsel %vm1357_vm5, %v9005_v13, 0 }
 0x8d7   :  { %v1697_v32 = vpop.permute.xlu1 %1696 }
 0x8d8   :  { %7597 = vpow2.f32 %v1526_v20  ;;  %v1702_v35 = vsel %vm1357_vm5, %v1697_v32, 0  ;;  %v2035_v20 = vrot.slane %v2033_v14, 3 }
 0x8db   :  { %v1695_v36 = vpop.permute.xlu1 %1694 }
 0x8e2   :  { %v7598_v22 = vpop.eup %7597 }
 0x8e3   :  { %v1528_v23 = vsel %vm1405_vm7, %v7598_v22, 0.0 }
 0x8e4   :  { %1529 = vadd.xlane.f32.xlu0 %v1528_v23 }
 0x8fa   :  { %1535 = vrot.lane.b32.xlu0 %v8919_v51, %s8336_s18 }
 0x971   :  { %v1530_v25 = vpop.xlane.xlu0 %1529 }
 0x972   :  { %7599 = vrcp.f32 %v1530_v25  ;;  %v9026_v25 = vld [vmem:[#allocation23 + $0x28] sm:$0xff]  }
 0x975   :  { %v1536_v26 = vpop.permute.xlu0 %1535 }
 0x976   :  { %v1541_v28 = vand.u32 %v1536_v26, %v8917_v50 }
 0x978   :  { %6843 = vmatpush3.bf16.msra.mxu1 %v1541_v28 }
 0x979   :  { %6864 = vmatprep.subr.bf16.mxu1 %v8333_v34 }
 0x97c   :  { %v7600_v29 = vpop.eup %7599 }
 0x97d   :  { %v1532_v30 = vmul.f32 %v7600_v29, %v7598_v22  ;;  %v9015_v22 = vor.u32 %v2108_v17, %v2105_v16 }
 0x97f   :  { %v1533_v33 = vpack.c.bf16 %v1532_v30, %v1532_v30 }
 0x981   :  { %6845 = vmatmul.mubr.msk.bf16.vlgmr.msra.gmra.mrb[12].mxu1 %vm1418_vm8, %v1533_v33 }
 0x982   :  { %6865 = vmatpush3.bf16.xpose.msra.mxu1 %v1702_v35  ;;  %6866 = vmatprep.mubr.msk.bf16.mxu1 %vm8334_vm4, %v8333_v34 }
 0x983   :  { %6870 = vmatprep.subr.bf16.mxu1 %v8333_v34 }
 0x989   :  { %6867 = vmatmul.mubr.msk.bf16.vlgmr.msra.gmra.mrb[16].mxu1 %vm1357_vm5, %v1695_v36 }
 0x98a   :  { %6872 = vmatprep.mubr.msk.bf16.mxu1 %vm8334_vm4, %v8333_v34 }
 0xa54   :  { %v1577_v40 = vpop.f32.mrb[12].mxu1 }
 0xa55   :  { %v1583_v42 = vpack.c.bf16 %v1577_v40, %v1577_v40  ;;  %v6846_v43 = vpop.f32.mrb[13].mxu1 }
 0xa56   :  { %v1580_v44 = vpop.f32.mrb[14].mxu1 }
 0xa57   :  { %v6847_v45 = vpop.f32.mrb[15].mxu1  ;;  %6853 = vmatmul.mubr.msk.bf16.vlgmr.msra.gmra.mrb[24].mxu0 %vm1357_vm5, %v1583_v42 }
 0xa58   :  { %6857 = vmatpush3.bf16.msra.mxu0 %v8966_v41  ;;  %6860 = vmatprep.mubr.msk.bf16.mxu0 %vm8334_vm4, %v8333_v34 }
 0xa59   :  { %6858 = vmatprep.subr.bf16.mxu0 %v8333_v34 }
 0xa5c   :  { %v1738_v47 = vpop.f32.mrb[16].mxu1  ;;  %6859 = vmatpush3.bf16.msra.mxu0 %v8970_v46 }
 0xa5d   :  { %v1744_v48 = vmul.f32 0.17677669, %v1738_v47  ;;  %v6868_v49 = vpop.f32.mrb[17].mxu1  ;;  %6876 = vmatprep.subr.bf16.mxu0 %v8333_v34 }
 0xa5e   :  { %v1741_v52 = vpop.f32.mrb[18].mxu1 }
 0xa5f   :  { %v6869_v53 = vpop.f32.mrb[19].mxu1  ;;  %v1745_v54 = vsel %vm1405_vm7, %v1744_v48, -inf }
 0xa60   :  { %1746 = vmax.xlane.f32.xlu1 %v1745_v54 }
 0xa63   :  { %6861 = vmatmul.mubr.msk.bf16.vlgmr.msra.gmra.mrb[24].mxu0 %vm1357_vm5, %v1468_v55 }
 0xa64   :  { %6880 = vmatprep.mubr.msk.bf16.mxu0 %vm8334_vm4, %v8333_v34  ;;  %6877 = vmatpush3.bf16.msra.mxu0 %v8990_v61 }
 0xa65   :  { %6878 = vmatprep.subr.bf16.mxu0 %v8333_v34 }
 0xa68   :  { %6879 = vmatpush3.bf16.msra.mxu0 %v9026_v25 }
 0xa69   :  { %6890 = vmatprep.subr.bf16.mxu0 %v8333_v34 }
 0xa71   :  { %1864 = vrot.lane.b32.xlu1 %v8907_v39, %s8337_s30  ;;  %v2030_v39 = vshrl.u32 %v8905_v38, 16 }
 0xa73   :  { %v2032_v19 = vrot.slane %v2030_v39, 2 }
 0xa75   :  { %1862 = vrot.lane.b32.xlu1 %v8905_v38, %s8337_s30  ;;  %v9017_v23 = vor.u32 %v2035_v20, %v2032_v19  ;;  %v2114_v38 = vand.u32 %v9015_v22, %v8917_v50 }
 0xaed   :  { %v1747_v56 = vpop.xlane.xlu1 %1746 }
 0xaee   :  { %v1748_v57 = vsub.f32 %v1744_v48, %v1747_v56 }
 0xaf0   :  { %v1749_v58 = vmul.f32 1.442695, %v1748_v57 }
 0xaf1   :  { %v1865_v5 = vpop.permute.xlu1 %1864 }
 0xaf2   :  { %7601 = vpow2.f32 %v1749_v58  ;;  %v1870_v7 = vsel %vm1357_vm5, %v1865_v5, 0 }
 0xaf5   :  { %v1863_v15 = vpop.permute.xlu1 %1862 }
 0xafc   :  { %v7602_v59 = vpop.eup %7601 }
 0xafd   :  { %v1751_v60 = vsel %vm1405_vm7, %v7602_v59, 0.0 }
 0xafe   :  { %1752 = vadd.xlane.f32.xlu0 %v1751_v60 }
 0xb14   :  { %1757 = vrot.lane.b32.xlu0 %v8919_v51, %s9678_s2 }
 0xb8b   :  { %v1753_v62 = vpop.xlane.xlu0 %1752 }
 0xb8c   :  { %7603 = vrcp.f32 %v1753_v62 }
 0xb8f   :  { %v1758_v63 = vpop.permute.xlu0 %1757 }
 0xb90   :  { %v1763_v0 = vand.u32 %v1758_v63, %v8917_v50  ;;  %v9048_v63 = vld [vmem:[#allocation23 + $0x30] sm:$0xff]  }
 0xb92   :  { %6871 = vmatpush3.bf16.msra.mxu1 %v1763_v0 }
 0xb93   :  { %6884 = vmatprep.subr.bf16.mxu1 %v8333_v34 }
 0xb96   :  { %v7604_v1 = vpop.eup %7603 }
 0xb97   :  { %v1755_v2 = vmul.f32 %v7604_v1, %v7602_v59  ;;  %v9052_v1 = vld [vmem:[#allocation23 + $0x38] sm:$0xff]  }
 0xb99   :  { %v1756_v6 = vpack.c.bf16 %v1755_v2, %v1755_v2 }
 0xb9b   :  { %6873 = vmatmul.mubr.msk.bf16.vlgmr.msra.gmra.mrb[20].mxu1 %vm1418_vm8, %v1756_v6 }
 0xb9c   :  { %6885 = vmatpush3.bf16.xpose.msra.mxu1 %v1870_v7  ;;  %6886 = vmatprep.mubr.msk.bf16.mxu1 %vm8334_vm4, %v8333_v34 }
 0xb9d   :  { %6904 = vmatprep.subr.bf16.mxu1 %v8333_v34 }
 0xba3   :  { %6887 = vmatmul.mubr.msk.bf16.vlgmr.msra.gmra.mrb[24].mxu1 %vm1357_vm5, %v1863_v15 }
 0xba4   :  { %6905 = vmatpush3.bf16.xpose.msra.mxu1 %v2048_v18  ;;  %6906 = vmatprep.mubr.msk.bf16.mxu1 %vm8334_vm4, %v8333_v34 }
 0xba5   :  { %6910 = vmatprep.subr.bf16.mxu1 %v8333_v34 }
 0xbab   :  { %6907 = vmatmul.mubr.msk.bf16.vlgmr.msra.gmra.mrb[28].mxu1 %vm1357_vm5, %v9017_v23 }
 0xbac   :  { %6911 = vmatpush3.bf16.msra.mxu1 %v2114_v38  ;;  %6912 = vmatprep.mubr.msk.bf16.mxu1 %vm8334_vm4, %v8333_v34 }
 0xbad   :  { %6922 = vmatprep.subr.bf16.mxu1 %v8333_v34 }
 0xc6e   :  { %v1799_v26 = vpop.f32.mrb[20].mxu1 }
 0xc6f   :  { %v1805_v28 = vpack.c.bf16 %v1799_v26, %v1799_v26  ;;  %v6874_v29 = vpop.f32.mrb[21].mxu1 }
 0xc70   :  { %v1802_v30 = vpop.f32.mrb[22].mxu1 }
 0xc71   :  { %v6875_v32 = vpop.f32.mrb[23].mxu1  ;;  %6881 = vmatmul.mubr.msk.bf16.vlgmr.msra.gmra.mrb[24].mxu0 %vm1357_vm5, %v1805_v28 }
 0xc72   :  { %6892 = vmatprep.mubr.msk.bf16.mxu0 %vm8334_vm4, %v8333_v34 }
 0xc76   :  { %v1906_v33 = vpop.f32.mrb[24].mxu1 }
 0xc77   :  { %v1912_v35 = vmul.f32 0.17677669, %v1906_v33  ;;  %v6888_v36 = vpop.f32.mrb[25].mxu1 }
 0xc78   :  { %v1909_v40 = vpop.f32.mrb[26].mxu1 }
 0xc79   :  { %v6889_v42 = vpop.f32.mrb[27].mxu1  ;;  %v1913_v43 = vsel %vm1405_vm7, %v1912_v35, -inf }
 0xc7a   :  { %1914 = vmax.xlane.f32.xlu0 %v1913_v43 }
 0xc7e   :  { %v2084_v44 = vpop.f32.mrb[28].mxu1 }
 0xc7f   :  { %v6908_v45 = vpop.f32.mrb[29].mxu1 }
 0xc80   :  { %v2087_v47 = vpop.f32.mrb[30].mxu1 }
 0xc81   :  { %v6909_v48 = vpop.f32.mrb[31].mxu1 }
 0xc90   :  { %1925 = vrot.lane.b32.xlu0 %v8919_v51, %s8337_s30  ;;  %v2090_v51 = vmul.f32 0.17677669, %v2084_v44 }
 0xc92   :  { %v2091_v58 = vsel %vm1405_vm7, %v2090_v51, -inf }
 0xc94   :  { %2157 = vrot.lane.b32.xlu0 %v9017_v23, %s8336_s18 }
 0xd07   :  { %v1915_v49 = vpop.xlane.xlu0 %1914 }
 0xd08   :  { %v1916_v52 = vsub.f32 %v1912_v35, %v1915_v49 }
 0xd0a   :  { %v1917_v53 = vmul.f32 1.442695, %v1916_v52 }
 0xd0b   :  { %v1926_v54 = vpop.permute.xlu0 %1925 }
 0xd0c   :  { %7605 = vpow2.f32 %v1917_v53  ;;  %v1931_v55 = vand.u32 %v1926_v54, %v8917_v50 }
 0xd0e   :  { %6891 = vmatpush3.bf16.msra.mxu0 %v1931_v55 }
 0xd0f   :  { %6896 = vmatprep.subr.bf16.mxu0 %v8333_v34  ;;  %v2158_v9 = vpop.permute.xlu0 %2157 }
 0xd16   :  { %v7606_v56 = vpop.eup %7605 }
 0xd17   :  { %v1919_v57 = vsel %vm1405_vm7, %v7606_v56, 0.0 }
 0xd18   :  { %1920 = vadd.xlane.f32.xlu1 %v1919_v57 }
 0xd29   :  { %2159 = vrot.lane.b32.xlu1 %v9005_v13, %s8336_s18 }
 0xd4d   :  { %2092 = vmax.xlane.f32.xlu1 %v2091_v58 }
 0xd5e   :  { %2220 = vrot.lane.b32.xlu1 %v9015_v22, %s8336_s18 }
 0xd62   :  { %2355 = vrot.lane.b32.xlu1 %v9017_v23, %s9678_s2 }
 0xda5   :  { %v1921_v59 = vpop.xlane.xlu1 %1920 }
 0xda6   :  { %7607 = vrcp.f32 %v1921_v59 }
 0xda9   :  { %v2160_v2 = vpop.permute.xlu1 %2159 }
 0xdaa   :  { %v2165_v7 = vsel %vm1357_vm5, %v2160_v2, 0 }
 0xdb0   :  { %v7608_v60 = vpop.eup %7607 }
 0xdb1   :  { %v1923_v62 = vmul.f32 %v7608_v60, %v7606_v56 }
 0xdb3   :  { %v1924_v0 = vpack.c.bf16 %v1923_v62, %v1923_v62 }
 0xdb5   :  { %6893 = vmatmul.mubr.msk.bf16.vlgmr.msra.gmra.mrb[28].mxu0 %vm1418_vm8, %v1924_v0 }
 0xdb6   :  { %6897 = vmatpush3.bf16.msra.mxu0 %v9048_v63  ;;  %6900 = vmatprep.mubr.msk.bf16.mxu0 %vm8334_vm4, %v8333_v34 }
 0xdb7   :  { %6898 = vmatprep.subr.bf16.mxu0 %v8333_v34 }
 0xdba   :  { %6899 = vmatpush3.bf16.msra.mxu0 %v9052_v1 }
 0xdbb   :  { %6916 = vmatprep.subr.bf16.mxu0 %v8333_v34 }
 0xdda   :  { %v2093_v10 = vpop.xlane.xlu1 %2092 }
 0xddb   :  { %v2094_v12 = vsub.f32 %v2090_v51, %v2093_v10 }
 0xddd   :  { %v2095_v39 = vmul.f32 1.442695, %v2094_v12 }
 0xdde   :  { %v2221_v42 = vpop.permute.xlu1 %2220 }
 0xddf   :  { %7609 = vpow2.f32 %v2095_v39  ;;  %v2226_v45 = vand.u32 %v2221_v42, %v8917_v50 }
 0xde2   :  { %v2356_v55 = vpop.permute.xlu1 %2355 }
 0xde9   :  { %v7610_v28 = vpop.eup %7609 }
 0xe88   :  { %v1967_v3 = vpop.f32.mrb[28].mxu0 }
 0xe89   :  { %v1973_v4 = vpack.c.bf16 %v1967_v3, %v1967_v3  ;;  %v6894_v5 = vpop.f32.mrb[29].mxu0 }
 0xe8a   :  { %v1970_v6 = vpop.f32.mrb[30].mxu0 }
 0xe8b   :  { %v6895_v8 = vpop.f32.mrb[31].mxu0  ;;  %6901 = vmatmul.mubr.msk.bf16.vlgmr.msra.gmra.mrb[24].mxu0 %vm1357_vm5, %v1973_v4 }
 0xe8c   :  { %6917 = vmatpush3.bf16.xpose.msra.mxu0 %v2165_v7  ;;  %6918 = vmatprep.mubr.msk.bf16.mxu0 %vm8334_vm4, %v8333_v34 }
 0xe8d   :  { %6928 = vmatprep.subr.bf16.mxu0 %v8333_v34 }
 0xe93   :  { %6919 = vmatmul.mubr.msk.bf16.vlgmr.msra.gmra.mrb[32].mxu0 %vm1357_vm5, %v2158_v9 }
 0xe94   :  { %6929 = vmatpush3.bf16.msra.mxu0 %v8948_v24  ;;  %6932 = vmatprep.mubr.msk.bf16.mxu0 %vm8334_vm4, %v8333_v34 }
 0xe95   :  { %6930 = vmatprep.subr.bf16.mxu0 %v8333_v34 }
 0xe98   :  { %6931 = vmatpush3.bf16.msra.mxu0 %v8962_v37  ;;  %v2097_v37 = vsel %vm1405_vm7, %v7610_v28, 0.0 }
 0xe99   :  { %6936 = vmatprep.subr.bf16.mxu0 %v8333_v34 }
 0xf5e   :  { %v9071_v14 = vpop.f32.mrb[24].mxu0 }
 0xf5f   :  { %v6902_v15 = vpop.f32.mrb[25].mxu0 }
 0xf60   :  { %v2026_v16 = vpop.f32.mrb[26].mxu0 }
 0xf61   :  { %v6903_v17 = vpop.f32.mrb[27].mxu0 }
 0xf66   :  { %v2201_v18 = vpop.f32.mrb[32].mxu0 }
 0xf67   :  { %v2207_v24 = vmul.f32 0.17677669, %v2201_v18  ;;  %v6920_v19 = vpop.f32.mrb[33].mxu0 }
 0xf68   :  { %v2204_v20 = vpop.f32.mrb[34].mxu0 }
 0xf69   :  { %v6921_v38 = vpop.f32.mrb[35].mxu0  ;;  %v2208_v26 = vsel %vm1405_vm7, %v2207_v24, -inf }
 0xf6a   :  { %2209 = vmax.xlane.f32.xlu0 %v2208_v26 }
 0xf6e   :  { %2098 = vadd.xlane.f32.xlu0 %v2097_v37 }
 0xff7   :  { %v2210_v29 = vpop.xlane.xlu0 %2209 }
 0xff8   :  { %v2211_v30 = vsub.f32 %v2207_v24, %v2210_v29 }
 0xffa   :  { %v2212_v32 = vmul.f32 1.442695, %v2211_v30 }
 0xffb   :  { %v2099_v33 = vpop.xlane.xlu0 %2098 }
 0xffc   :  { %7611 = vpow2.f32 %v2212_v32 }
 0xffd   :  { %7613 = vrcp.f32 %v2099_v33 }
0x1006   :  { %v7612_v35 = vpop.eup %7611 }
0x1007   :  { %v7614_v36 = vpop.eup %7613  ;;  %v2214_v40 = vsel %vm1405_vm7, %v7612_v35, 0.0 }
0x1008   :  { %v2101_v43 = vmul.f32 %v7614_v36, %v7610_v28  ;;  %2215 = vadd.xlane.f32.xlu0 %v2214_v40 }
0x100a   :  { %v2102_v44 = vpack.c.bf16 %v2101_v43, %v2101_v43 }
0x100c   :  { %6913 = vmatmul.mubr.msk.bf16.vlgmr.msra.gmra.mrb[32].mxu1 %vm1418_vm8, %v2102_v44 }
0x100d   :  { %6923 = vmatpush3.bf16.msra.mxu1 %v2226_v45  ;;  %6924 = vmatprep.mubr.msk.bf16.mxu1 %vm8334_vm4, %v8333_v34 }
0x100e   :  { %6944 = vmatprep.subr.bf16.mxu1 %v8333_v34 }
0x101e   :  { %2357 = vrot.lane.b32.xlu0 %v9005_v13, %s9678_s2 }
0x1095   :  { %v2216_v47 = vpop.xlane.xlu0 %2215 }
0x1096   :  { %7615 = vrcp.f32 %v2216_v47 }
0x1099   :  { %v2358_v52 = vpop.permute.xlu0 %2357 }
0x109a   :  { %v2363_v54 = vsel %vm1357_vm5, %v2358_v52, 0 }
0x10a0   :  { %v7616_v48 = vpop.eup %7615 }
0x10a1   :  { %v2218_v49 = vmul.f32 %v7616_v48, %v7612_v35 }
0x10a3   :  { %v2219_v53 = vpack.c.bf16 %v2218_v49, %v2218_v49 }
0x10a5   :  { %6925 = vmatmul.mubr.msk.bf16.vlgmr.msra.gmra.mrb[36].mxu1 %vm1418_vm8, %v2219_v53 }
0x10a6   :  { %6945 = vmatpush3.bf16.xpose.msra.mxu1 %v2363_v54  ;;  %6946 = vmatprep.mubr.msk.bf16.mxu1 %vm8334_vm4, %v8333_v34 }
0x10a7   :  { %6950 = vmatprep.subr.bf16.mxu1 %v8333_v34 }
0x10ad   :  { %6947 = vmatmul.mubr.msk.bf16.vlgmr.msra.gmra.mrb[40].mxu1 %vm1357_vm5, %v2356_v55 }
0x10ae   :  { %6952 = vmatprep.mubr.msk.bf16.mxu1 %vm8334_vm4, %v8333_v34 }
0x10df   :  { %v2150_v56 = vpop.f32.mrb[32].mxu1 }
0x10e0   :  { %v6914_v57 = vpop.f32.mrb[33].mxu1  ;;  %v2156_v9 = vpack.c.bf16 %v2150_v56, %v2150_v56 }
0x10e1   :  { %v2153_v51 = vpop.f32.mrb[34].mxu1 }
0x10e2   :  { %v6915_v58 = vpop.f32.mrb[35].mxu1 }
0x10e3   :  { %v6227_v58 = vld [vmem:[#allocation25] ss:$0 sm:$0xff] }
0x1178   :  { %v2262_v59 = vpop.f32.mrb[36].mxu1 }
0x1179   :  { %v2268_v60 = vpack.c.bf16 %v2262_v59, %v2262_v59  ;;  %v6926_v62 = vpop.f32.mrb[37].mxu1 }
0x117a   :  { %v2265_v0 = vpop.f32.mrb[38].mxu1 }
0x117b   :  { %v6927_v2 = vpop.f32.mrb[39].mxu1  ;;  %6933 = vmatmul.mubr.msk.bf16.vlgmr.msra.gmra.mrb[36].mxu0 %vm1357_vm5, %v2268_v60 }
0x117c   :  { %6937 = vmatpush3.bf16.msra.mxu0 %v8966_v41  ;;  %6940 = vmatprep.mubr.msk.bf16.mxu0 %vm8334_vm4, %v8333_v34 }
0x117d   :  { %6938 = vmatprep.subr.bf16.mxu0 %v8333_v34 }
0x1180   :  { %v2399_v3 = vpop.f32.mrb[40].mxu1  ;;  %6939 = vmatpush3.bf16.msra.mxu0 %v8970_v46 }
0x1181   :  { %v2405_v4 = vmul.f32 0.17677669, %v2399_v3  ;;  %v6948_v5 = vpop.f32.mrb[41].mxu1  ;;  %6956 = vmatprep.subr.bf16.mxu0 %v8333_v34 }
0x1182   :  { %v2402_v6 = vpop.f32.mrb[42].mxu1 }
0x1183   :  { %v6949_v7 = vpop.f32.mrb[43].mxu1  ;;  %v2406_v8 = vsel %vm1405_vm7, %v2405_v4, -inf  ;;  %v7389_v6 = vld [vmem:[#allocation29] ss:$16 sps:$4 sm:$0xff]  }
0x1184   :  { %2407 = vmax.xlane.f32.xlu1 %v2406_v8  ;;  %v7391_v7 = vld [vmem:[#allocation29 + $0x4] ss:$16 sps:$4 sm:$0xff]   ;;  %v7392_v8 = vld [vmem:[#allocation29 + $0x8] ss:$16 sps:$4 sm:$0xff]  }
0x1187   :  { %6941 = vmatmul.mubr.msk.bf16.vlgmr.msra.gmra.mrb[36].mxu0 %vm1357_vm5, %v2156_v9  ;;  %v7394_v9 = vld [vmem:[#allocation29 + $0xc] ss:$16 sps:$4 sm:$0xff]  }
0x1188   :  { %6957 = vmatpush3.bf16.msra.mxu0 %v8990_v61  ;;  %6960 = vmatprep.mubr.msk.bf16.mxu0 %vm8334_vm4, %v8333_v34 }
0x1189   :  { %6958 = vmatprep.subr.bf16.mxu0 %v8333_v34 }
0x118c   :  { %6959 = vmatpush3.bf16.msra.mxu0 %v9026_v25 }
0x118d   :  { %6970 = vmatprep.subr.bf16.mxu0 %v8333_v34 }
0x1195   :  { %2513 = vrot.lane.b32.xlu1 %v9005_v13, %s8337_s30 }
0x1199   :  { %2511 = vrot.lane.b32.xlu1 %v9017_v23, %s8337_s30 }
0x1211   :  { %v2408_v41 = vpop.xlane.xlu1 %2407 }
0x1212   :  { %v2409_v46 = vsub.f32 %v2405_v4, %v2408_v41  ;;  %v7400_v41 = vld [vmem:[#allocation29 + $0x2c] ss:$16 sps:$4 sm:$0xff]  }
0x1214   :  { %v2410_v10 = vmul.f32 1.442695, %v2409_v46  ;;  %v7398_v46 = vld [vmem:[#allocation29 + $0x28] ss:$16 sps:$4 sm:$0xff]  }
0x1215   :  { %v2514_v16 = vpop.permute.xlu1 %2513 }
0x1216   :  { %7617 = vpow2.f32 %v2410_v10  ;;  %v2519_v18 = vsel %vm1357_vm5, %v2514_v16, 0  ;;  %v7403_v16 = vld [vmem:[#allocation29 + $0x44] ss:$16 sps:$4 sm:$0xff]  }
0x1219   :  { %v2512_v24 = vpop.permute.xlu1 %2511 }
0x1220   :  { %v7618_v61 = vpop.eup %7617 }
0x1221   :  { %v2412_v12 = vsel %vm1405_vm7, %v7618_v61, 0.0 }
0x1222   :  { %2413 = vadd.xlane.f32.xlu0 %v2412_v12 }
0x1238   :  { %2418 = vrot.lane.b32.xlu0 %v9015_v22, %s9678_s2 }
0x12af   :  { %v2414_v25 = vpop.xlane.xlu0 %2413 }
0x12b0   :  { %7619 = vrcp.f32 %v2414_v25 }
0x12b3   :  { %v2419_v39 = vpop.permute.xlu0 %2418 }
0x12b4   :  { %v2424_v15 = vand.u32 %v2419_v39, %v8917_v50 }
0x12b6   :  { %6951 = vmatpush3.bf16.msra.mxu1 %v2424_v15 }
0x12b7   :  { %6964 = vmatprep.subr.bf16.mxu1 %v8333_v34 }
0x12ba   :  { %v7620_v13 = vpop.eup %7619 }
0x12bb   :  { %v2416_v23 = vmul.f32 %v7620_v13, %v7618_v61 }
0x12bd   :  { %v2417_v17 = vpack.c.bf16 %v2416_v23, %v2416_v23 }
0x12bf   :  { %6953 = vmatmul.mubr.msk.bf16.vlgmr.msra.gmra.mrb[44].mxu1 %vm1418_vm8, %v2417_v17  ;;  %v7406_v17 = vld [vmem:[#allocation29 + $0x4c] ss:$16 sps:$4 sm:$0xff]  }
0x12c0   :  { %6965 = vmatpush3.bf16.xpose.msra.mxu1 %v2519_v18  ;;  %6966 = vmatprep.mubr.msk.bf16.mxu1 %vm8334_vm4, %v8333_v34  ;;  %v7401_v18 = vld [vmem:[#allocation29 + $0x40] ss:$16 sps:$4 sm:$0xff]  }
0x12c1   :  { %2939 = vmatprep.subr.bf16.mxu1 %v7391_v7  ;;  %v7437_v7 = vld [vmem:[#allocation32 + $0x40] sm:$0xff]  }
0x12c7   :  { %6967 = vmatmul.mubr.msk.bf16.vlgmr.msra.gmra.mrb[48].mxu1 %vm1357_vm5, %v2512_v24  ;;  %v7404_v24 = vld [vmem:[#allocation29 + $0x48] ss:$16 sps:$4 sm:$0xff]  }
0x12c8   :  { %2940 = vmatpush1.bf16.msra.mxu1 %v7389_v6 }
0x1392   :  { %v2460_v19 = vpop.f32.mrb[44].mxu1 }
0x1393   :  { %v2466_v20 = vpack.c.bf16 %v2460_v19, %v2460_v19  ;;  %v6954_v38 = vpop.f32.mrb[45].mxu1  ;;  %v7409_v19 = vld [vmem:[#allocation29 + $0x64] ss:$16 sps:$4 sm:$0xff]  }
0x1394   :  { %v2463_v26 = vpop.f32.mrb[46].mxu1  ;;  %v7407_v38 = vld [vmem:[#allocation29 + $0x60] ss:$16 sps:$4 sm:$0xff]  }
0x1395   :  { %v6955_v28 = vpop.f32.mrb[47].mxu1  ;;  %6961 = vmatmul.mubr.msk.bf16.vlgmr.msra.gmra.mrb[36].mxu0 %vm1357_vm5, %v2466_v20  ;;  %v7412_v20 = vld [vmem:[#allocation29 + $0x6c] ss:$16 sps:$4 sm:$0xff]   ;;  %v7410_v26 = vld [vmem:[#allocation29 + $0x68] ss:$16 sps:$4 sm:$0xff]  }
0x1396   :  { %6972 = vmatprep.mubr.msk.bf16.mxu0 %vm8334_vm4, %v8333_v34  ;;  %v7415_v28 = vld [vmem:[#allocation29 + $0x84] ss:$16 sps:$4 sm:$0xff]  }
0x139a   :  { %v2555_v37 = vpop.f32.mrb[48].mxu1 }
0x139b   :  { %v2561_v29 = vmul.f32 0.17677669, %v2555_v37  ;;  %v6968_v30 = vpop.f32.mrb[49].mxu1  ;;  %v7418_v37 = vld [vmem:[#allocation29 + $0x8c] ss:$16 sps:$4 sm:$0xff]  }
0x139c   :  { %v2558_v32 = vpop.f32.mrb[50].mxu1  ;;  %v7416_v30 = vld [vmem:[#allocation29 + $0x88] ss:$16 sps:$4 sm:$0xff]  }
0x139d   :  { %v6969_v33 = vpop.f32.mrb[51].mxu1  ;;  %v2562_v35 = vsel %vm1405_vm7, %v2561_v29, -inf  ;;  %v7421_v32 = vld [vmem:[#allocation29 + $0xa4] ss:$16 sps:$4 sm:$0xff]  }
0x139e   :  { %2563 = vmax.xlane.f32.xlu1 %v2562_v35  ;;  %v7424_v33 = vld [vmem:[#allocation29 + $0xac] ss:$16 sps:$4 sm:$0xff]   ;;  %v7419_v35 = vld [vmem:[#allocation29 + $0xa0] ss:$16 sps:$4 sm:$0xff]  }
0x142b   :  { %v2564_v36 = vpop.xlane.xlu1 %2563 }
0x142c   :  { %v2565_v40 = vsub.f32 %v2561_v29, %v2564_v36  ;;  %v7413_v29 = vld [vmem:[#allocation29 + $0x80] ss:$16 sps:$4 sm:$0xff]   ;;  %v7422_v36 = vld [vmem:[#allocation29 + $0xa8] ss:$16 sps:$4 sm:$0xff]  }
0x142e   :  { %v2566_v42 = vmul.f32 1.442695, %v2565_v40  ;;  %v7425_v40 = vld [vmem:[#allocation29 + $0xc0] ss:$16 sps:$4 sm:$0xff]  }
0x1430   :  { %7621 = vpow2.f32 %v2566_v42  ;;  %v7427_v42 = vld [vmem:[#allocation29 + $0xc4] ss:$16 sps:$4 sm:$0xff]  }
0x143a   :  { %v7622_v43 = vpop.eup %7621 }
0x143b   :  { %v2568_v44 = vsel %vm1405_vm7, %v7622_v43, 0.0 }
0x143c   :  { %2569 = vadd.xlane.f32.xlu0 %v2568_v44  ;;  %v7430_v44 = vld [vmem:[#allocation29 + $0xcc] ss:$16 sps:$4 sm:$0xff]  }
0x1452   :  { %2574 = vrot.lane.b32.xlu0 %v9015_v22, %s8337_s30 }
0x14c9   :  { %v2570_v45 = vpop.xlane.xlu0 %2569 }
0x14ca   :  { %7623 = vrcp.f32 %v2570_v45  ;;  %v7433_v45 = vld [vmem:[#allocation29 + $0xe4] ss:$16 sps:$4 sm:$0xff]  }
0x14cd   :  { %v2575_v47 = vpop.permute.xlu0 %2574 }
0x14ce   :  { %v2580_v48 = vand.u32 %v2575_v47, %v8917_v50  ;;  %v7436_v47 = vld [vmem:[#allocation29 + $0xec] ss:$16 sps:$4 sm:$0xff]  }
0x14d0   :  { %6971 = vmatpush3.bf16.msra.mxu0 %v2580_v48  ;;  %v7431_v48 = vld [vmem:[#allocation29 + $0xe0] ss:$16 sps:$4 sm:$0xff]  }
0x14d1   :  { %6976 = vmatprep.subr.bf16.mxu0 %v8333_v34 }
0x14d4   :  { %v7624_v49 = vpop.eup %7623 }
0x14d5   :  { %v2572_v52 = vmul.f32 %v7624_v49, %v7622_v43  ;;  %v7428_v43 = vld [vmem:[#allocation29 + $0xc8] ss:$16 sps:$4 sm:$0xff]  }
0x14d6   :  { %v7434_v49 = vld [vmem:[#allocation29 + $0xe8] ss:$16 sps:$4 sm:$0xff]  }
0x14d7   :  { %v2573_v53 = vpack.c.bf16 %v2572_v52, %v2572_v52  ;;  %v8338_v52 = vmov 0  }
0x14d8   :  { %2971 = vmatprep.mubr.bf16.mxu1 %v8338_v52 }
0x14d9   :  { %6973 = vmatmul.mubr.msk.bf16.vlgmr.msra.gmra.mrb[40].mxu0 %vm1418_vm8, %v2573_v53 }
0x14da   :  { %6977 = vmatpush3.bf16.msra.mxu0 %v9048_v63  ;;  %6980 = vmatprep.mubr.msk.bf16.mxu0 %vm8334_vm4, %v8333_v34 }
0x14db   :  { %6978 = vmatprep.subr.bf16.mxu0 %v8333_v34 }
0x14de   :  { %6979 = vmatpush3.bf16.msra.mxu0 %v9052_v1 }
0x14df   :  { %2982 = vmatprep.subr.bf16.mxu0 %v7394_v9  ;;  %v7439_v9 = vld [vmem:[#allocation32] sm:$0xff]  }
0x15ac   :  { %v2616_v22 = vpop.f32.mrb[40].mxu0 }
0x15ad   :  { %v2622_v54 = vpack.c.bf16 %v2616_v22, %v2616_v22  ;;  %v6974_v55 = vpop.f32.mrb[41].mxu0 }
0x15ae   :  { %v2619_v56 = vpop.f32.mrb[42].mxu0 }
0x15af   :  { %v6975_v57 = vpop.f32.mrb[43].mxu0  ;;  %6981 = vmatmul.mubr.msk.bf16.vlgmr.msra.gmra.mrb[36].mxu0 %vm1357_vm5, %v2622_v54 }
0x15b0   :  { %2983 = vmatpush1.bf16.msra.mxu0 %v7392_v8  ;;  %3014 = vmatprep.mubr.bf16.mxu0 %v8338_v52  ;;  %v7438_v8 = vld [vmem:[#allocation32 + $0xc0] sm:$0xff]  }
0x15b1   :  { %2984 = vmatprep.subr.bf16.mxu0 %v7400_v41  ;;  %v7441_v41 = vld [vmem:[#allocation32 + $0x48] sm:$0xff]  }
0x15b4   :  { %2985 = vmatpush1.bf16.msra.mxu0 %v7398_v46  ;;  %v7443_v46 = vld [vmem:[#allocation32 + $0x8] sm:$0xff]  }
0x15b5   :  { %2986 = vmatprep.subr.bf16.mxu0 %v7406_v17  ;;  %v7454_v17 = vld [vmem:[#allocation32 + $0xe0] sm:$0xff]  }
0x15b8   :  { %2987 = vmatpush1.bf16.msra.mxu0 %v7404_v24  ;;  %v7456_v24 = vld [vmem:[#allocation32 + $0xa0] sm:$0xff]  }
0x15b9   :  { %2988 = vmatprep.subr.bf16.mxu0 %v7412_v20  ;;  %v7458_v20 = vld [vmem:[#allocation32 + $0xe8] sm:$0xff]  }
0x15bc   :  { %2989 = vmatpush1.bf16.msra.mxu0 %v7410_v26  ;;  %v7460_v26 = vld [vmem:[#allocation32 + $0xa8] sm:$0xff]  }
0x15bd   :  { %2990 = vmatprep.subr.bf16.mxu0 %v7418_v37  ;;  %v7462_v37 = vld [vmem:[#allocation32 + $0xf0] sm:$0xff]  }
0x15c0   :  { %2991 = vmatpush1.bf16.msra.mxu0 %v7416_v30  ;;  %v7464_v30 = vld [vmem:[#allocation32 + $0xb0] sm:$0xff]  }
0x15c1   :  { %2992 = vmatprep.subr.bf16.mxu0 %v7424_v33  ;;  %v7466_v33 = vld [vmem:[#allocation32 + $0xf8] sm:$0xff]  }
0x15c4   :  { %2993 = vmatpush1.bf16.msra.mxu0 %v7422_v36  ;;  %v7468_v36 = vld [vmem:[#allocation32 + $0xb8] sm:$0xff]  }
0x15c5   :  { %2994 = vmatprep.subr.bf16.mxu0 %v7430_v44  ;;  %v2773_v44 = vsub.s32 3, %v8850_v11 }
0x15c8   :  { %2995 = vmatpush1.bf16.msra.mxu0 %v7428_v43  ;;  %v2765_v43 = vsub.s32 1, %v8850_v11 }
0x15c9   :  { %2996 = vmatprep.subr.bf16.mxu0 %v7436_v47 }
0x15cc   :  { %2997 = vmatpush1.bf16.msra.mxu0 %v7434_v49 }
0x15cd   :  { %6606 = vmatprep.subr.bf16.mxu0 %v7438_v8 }
0x1682   :  { %v2660_v51 = vpop.f32.mrb[36].mxu0 }
0x1683   :  { %v2668_v59 = vrot.slane %v2660_v51, 3  ;;  %v6982_v60 = vpop.f32.mrb[37].mxu0 }
0x1684   :  { %v2663_v62 = vpop.f32.mrb[38].mxu0 }
0x1685   :  { %v2670_v63 = vsel %vm953_vm2, %v9071_v14, %v2668_v59  ;;  %v2679_v0 = vadd.f32 %v6227_v58, %v2668_v59  ;;  %v6983_v2 = vpop.f32.mrb[39].mxu0  ;;  %v7397_v14 = vld [vmem:[#allocation29 + $0x24] ss:$16 sps:$4 sm:$0xff]   ;;  %v6228_v59 = vld [vmem:[#allocation26] ss:$0 sm:$0xff] }
0x1686   :  { %v2678_v1 = vadd.f32 %v6227_v58, %v2670_v63  ;;  %2941 = vmatprep.subr.bf16.mxu1 %v7397_v14  ;;  %v7440_v14 = vld [vmem:[#allocation32 + $0x80] sm:$0xff]  }
0x1687   :  { %v9139_v3 = vadd.f32 %v2679_v0, %v8856_v27  ;;  %v7395_v27 = vld [vmem:[#allocation29 + $0x20] ss:$16 sps:$4 sm:$0xff]   ;;  %v6229_v0 = vld [vmem:[#allocation28] ss:$0 sm:$0xff] }
0x1688   :  { %v9144_v5 = vadd.f32 %v2678_v1, %v8863_v31  ;;  %2942 = vmatpush1.bf16.msra.mxu1 %v7395_v27  ;;  %v7442_v27 = vld [vmem:[#allocation32 + $0xc8] sm:$0xff]  }
0x1689   :  { %v2686_v4 = vsel %vm961_vm0, %v9139_v3, 0.0  ;;  %2943 = vmatprep.subr.bf16.mxu1 %v7403_v16  ;;  %v7453_v16 = vld [vmem:[#allocation32 + $0x60] sm:$0xff]  }
0x168a   :  { %2687 = vadd.xlane.f32.xlu1 %v2686_v4 }
0x168c   :  { %2944 = vmatpush1.bf16.msra.mxu1 %v7401_v18  ;;  %v7455_v18 = vld [vmem:[#allocation32 + $0x20] sm:$0xff]  }
0x168d   :  { %2945 = vmatprep.subr.bf16.mxu1 %v7409_v19  ;;  %v7457_v19 = vld [vmem:[#allocation32 + $0x68] sm:$0xff]  }
0x168e   :  { %2684 = vadd.xlane.f32.xlu1 %v9144_v5 }
0x1690   :  { %2946 = vmatpush1.bf16.msra.mxu1 %v7407_v38  ;;  %v7459_v38 = vld [vmem:[#allocation32 + $0x28] sm:$0xff]  }
0x1691   :  { %2947 = vmatprep.subr.bf16.mxu1 %v7415_v28  ;;  %v7461_v28 = vld [vmem:[#allocation32 + $0x70] sm:$0xff]  }
0x1694   :  { %2948 = vmatpush1.bf16.msra.mxu1 %v7413_v29  ;;  %v7463_v29 = vld [vmem:[#allocation32 + $0x30] sm:$0xff]  }
0x1695   :  { %2949 = vmatprep.subr.bf16.mxu1 %v7421_v32  ;;  %v7465_v32 = vld [vmem:[#allocation32 + $0x78] sm:$0xff]  }
0x1698   :  { %2950 = vmatpush1.bf16.msra.mxu1 %v7419_v35  ;;  %v7467_v35 = vld [vmem:[#allocation32 + $0x38] sm:$0xff]  }
0x1699   :  { %2951 = vmatprep.subr.bf16.mxu1 %v7427_v42  ;;  %v2757_v42 = vld [vmem:[#allocation31] sm:$0xf] }
0x169a   :  { %v2774_v49 = vrot.slane %v2757_v42, %v2773_v44 }
0x169c   :  { %2952 = vmatpush1.bf16.msra.mxu1 %v7425_v40  ;;  %v2769_v40 = vsub.s32 2, %v8850_v11 }
0x169d   :  { %2953 = vmatprep.subr.bf16.mxu1 %v7433_v45  ;;  %v2762_v45 = vrot.slane %v2757_v42, %v8853_v21 }
0x169e   :  { %v2770_v47 = vrot.slane %v2757_v42, %v2769_v40 }
0x16a0   :  { %2954 = vmatpush1.bf16.msra.mxu1 %v7431_v48  ;;  %v2766_v48 = vrot.slane %v2757_v42, %v2765_v43 }
0x16a1   :  { %6584 = vmatprep.subr.bf16.mxu1 %v7437_v7 }
0x1717   :  { %v2688_v31 = vpop.xlane.xlu1 %2687 }
0x1718   :  { %v2690_v10 = vmul.f32 0.0078125, %v2688_v31  ;;  %v7444_v31 = vld [vmem:[#allocation32 + $0x88] sm:$0xff]  }
0x171a   :  { %v9148_v25 = vsub.f32 %v9139_v3, %v2690_v10  ;;  %v7445_v10 = vld [vmem:[#allocation32 + $0x50] sm:$0xff]  }
0x171b   :  { %v2685_v61 = vpop.xlane.xlu1 %2684 }
0x171c   :  { %v2689_v12 = vmul.f32 0.0078125, %v2685_v61  ;;  %v2694_v13 = vmul.f32 %v9148_v25, %v9148_v25  ;;  %v7446_v61 = vld [vmem:[#allocation32 + $0xd0] sm:$0xff]  }
0x171e   :  { %v9151_v39 = vsub.f32 %v9144_v5, %v2689_v12  ;;  %v2697_v23 = vsel %vm961_vm0, %v2694_v13, 0.0  ;;  %v7447_v12 = vld [vmem:[#allocation32 + $0x10] sm:$0xff]   ;;  %v7451_v13 = vld [vmem:[#allocation32 + $0x18] sm:$0xff]  }
0x1720   :  { %v2693_v15 = vmul.f32 %v9151_v39, %v9151_v39 }
0x1722   :  { %2695 = vadd.xlane.f32.xlu1 %v2693_v15  ;;  %v7450_v15 = vld [vmem:[#allocation32 + $0xd8] sm:$0xff]  }
0x1726   :  { %2698 = vadd.xlane.f32.xlu1 %v2697_v23  ;;  %v7452_v23 = vld [vmem:[#allocation32 + $0x98] sm:$0xff]  }
0x17af   :  { %v2696_v53 = vpop.xlane.xlu1 %2695 }
0x17b0   :  { %v2700_v22 = vmul.f32 0.0078125, %v2696_v53 }
0x17b2   :  { %v2702_v54 = vadd.f32 1e-06, %v2700_v22 }
0x17b3   :  { %v2699_v55 = vpop.xlane.xlu1 %2698 }
0x17b4   :  { %7625 = vrsqrt.f32 %v2702_v54  ;;  %v2701_v56 = vmul.f32 0.0078125, %v2699_v55 }
0x17b6   :  { %v2703_v57 = vadd.f32 1e-06, %v2701_v56 }
0x17b8   :  { %7627 = vrsqrt.f32 %v2703_v57 }
0x17be   :  { %v7626_v51 = vpop.eup %7625 }
0x17bf   :  { %v2706_v58 = vmul.f32 %v7626_v51, %v9151_v39  ;;  %v7449_v39 = vld [vmem:[#allocation32 + $0x58] sm:$0xff]  }
0x17c1   :  { %v2714_v63 = vmul.f32 %v6228_v59, %v2706_v58 }
0x17c2   :  { %v7628_v60 = vpop.eup %7627 }
0x17c3   :  { %v2707_v62 = vmul.f32 %v7628_v60, %v9148_v25  ;;  %v2722_v1 = vadd.f32 %v6229_v0, %v2714_v63  ;;  %v7448_v25 = vld [vmem:[#allocation32 + $0x90] sm:$0xff]  }
0x17c5   :  { %v2715_v2 = vmul.f32 %v6228_v59, %v2707_v62 }
0x17c7   :  { %v2723_v4 = vadd.f32 %v6229_v0, %v2715_v2 }
0x17c9   :  { %v2724_v6 = vpack.c.bf16 %v2723_v4, %v2722_v1 }
0x17cb   :  { %2972 = vmatmul.mubr.bf16.vlgmr.msra.gmra.mrb[52].mxu1 %v2724_v6  ;;  %3015 = vmatmul.mubr.bf16.vlgmr.msra.gmra.mrb[44].mxu0 %v2724_v6 }
0x17cc   :  { %6585 = vmatpush3.bf16.msra.mxu1 %v7439_v9  ;;  %6607 = vmatpush3.bf16.msra.mxu0 %v7440_v14 }
0x17cd   :  { %6586 = vmatprep.subr.bf16.mxu1 %v7441_v41  ;;  %6608 = vmatprep.subr.bf16.mxu0 %v7442_v27 }
0x17d0   :  { %6587 = vmatpush3.bf16.msra.mxu1 %v7443_v46  ;;  %6609 = vmatpush3.bf16.msra.mxu0 %v7444_v31 }
0x17d1   :  { %6588 = vmatprep.subr.bf16.mxu1 %v7445_v10  ;;  %6610 = vmatprep.subr.bf16.mxu0 %v7446_v61 }
0x17d4   :  { %6589 = vmatpush3.bf16.msra.mxu1 %v7447_v12  ;;  %6611 = vmatpush3.bf16.msra.mxu0 %v7448_v25 }
0x17d5   :  { %6590 = vmatprep.subr.bf16.mxu1 %v7449_v39  ;;  %6612 = vmatprep.subr.bf16.mxu0 %v7450_v15 }
0x17d8   :  { %6591 = vmatpush3.bf16.msra.mxu1 %v7451_v13  ;;  %6613 = vmatpush3.bf16.msra.mxu0 %v7452_v23 }
0x17d9   :  { %6592 = vmatprep.subr.bf16.mxu1 %v7453_v16  ;;  %6614 = vmatprep.subr.bf16.mxu0 %v7454_v17 }
0x17dc   :  { %6593 = vmatpush3.bf16.msra.mxu1 %v7455_v18  ;;  %6615 = vmatpush3.bf16.msra.mxu0 %v7456_v24 }
0x17dd   :  { %6594 = vmatprep.subr.bf16.mxu1 %v7457_v19  ;;  %6616 = vmatprep.subr.bf16.mxu0 %v7458_v20 }
0x17e0   :  { %6595 = vmatpush3.bf16.msra.mxu1 %v7459_v38  ;;  %6617 = vmatpush3.bf16.msra.mxu0 %v7460_v26 }
0x17e1   :  { %6596 = vmatprep.subr.bf16.mxu1 %v7461_v28  ;;  %6618 = vmatprep.subr.bf16.mxu0 %v7462_v37 }
0x17e4   :  { %6597 = vmatpush3.bf16.msra.mxu1 %v7463_v29  ;;  %6619 = vmatpush3.bf16.msra.mxu0 %v7464_v30 }
0x17e5   :  { %6598 = vmatprep.subr.bf16.mxu1 %v7465_v32  ;;  %6620 = vmatprep.subr.bf16.mxu0 %v7466_v33 }
0x17e8   :  { %6599 = vmatpush3.bf16.msra.mxu1 %v7467_v35  ;;  %6621 = vmatpush3.bf16.msra.mxu0 %v7468_v36 }
0x17e9   :  { %6984 = vmatprep.subr.bf16.mxu1 %v8333_v34  ;;  %7004 = vmatprep.subr.bf16.mxu0 %v8333_v34 }
0x189e   :  { %v2973_v53 = vpop.f32.mrb[52].mxu1  ;;  %v3016_v22 = vpop.f32.mrb[44].mxu0 }
0x189f   :  { %v9174_v54 = vadd.f32 %v2973_v53, %v2762_v45  ;;  %v9176_v55 = vadd.f32 %v3016_v22, %v2770_v47  ;;  %v2975_v56 = vpop.f32.mrb[53].mxu1  ;;  %v3018_v57 = vpop.f32.mrb[45].mxu0 }
0x18a0   :  { %v9178_v51 = vadd.f32 %v2975_v56, %v2766_v48  ;;  %v9180_v58 = vadd.f32 %v3018_v57, %v2774_v49  ;;  %v2977_v59 = vpop.f32.mrb[54].mxu1  ;;  %v3020_v60 = vpop.f32.mrb[46].mxu0 }
0x18a1   :  { %v3025_v62 = vmul.f32 %v9174_v54, %v9174_v54  ;;  %v3027_v63 = vmul.f32 %v9176_v55, %v9176_v55  ;;  %v9186_v0 = vadd.f32 %v2977_v59, %v2762_v45  ;;  %v9188_v2 = vadd.f32 %v3020_v60, %v2770_v47  ;;  %v2979_v1 = vpop.f32.mrb[55].mxu1  ;;  %v3022_v4 = vpop.f32.mrb[47].mxu0 }
0x18a2   :  { %v3026_v6 = vmul.f32 %v9178_v51, %v9178_v51  ;;  %v3028_v7 = vmul.f32 %v9180_v58, %v9180_v58  ;;  %v9194_v8 = vadd.f32 %v2979_v1, %v2766_v48  ;;  %v9196_v9 = vadd.f32 %v3022_v4, %v2774_v49 }
0x18a3   :  { %v3033_v14 = vmul.f32 %v3025_v62, %v9174_v54  ;;  %v3035_v41 = vmul.f32 %v3027_v63, %v9176_v55  ;;  %v3029_v27 = vmul.f32 %v9186_v0, %v9186_v0  ;;  %v3031_v46 = vmul.f32 %v9188_v2, %v9188_v2 }
0x18a4   :  { %v3034_v31 = vmul.f32 %v3026_v6, %v9178_v51  ;;  %v3036_v10 = vmul.f32 %v3028_v7, %v9180_v58  ;;  %v3030_v61 = vmul.f32 %v9194_v8, %v9194_v8  ;;  %v3032_v12 = vmul.f32 %v9196_v9, %v9196_v9 }
0x18a5   :  { %v3041_v25 = vmul.f32 0.044715, %v3033_v14  ;;  %v3043_v39 = vmul.f32 0.044715, %v3035_v41  ;;  %v3037_v15 = vmul.f32 %v3029_v27, %v9186_v0  ;;  %v3039_v13 = vmul.f32 %v3031_v46, %v9188_v2 }
0x18a6   :  { %v3042_v23 = vmul.f32 0.044715, %v3034_v31  ;;  %v3044_v16 = vmul.f32 0.044715, %v3036_v10  ;;  %v3038_v17 = vmul.f32 %v3030_v61, %v9194_v8  ;;  %v3040_v18 = vmul.f32 %v3032_v12, %v9196_v9 }
0x18a7   :  { %v3049_v24 = vadd.f32 %v3041_v25, %v9174_v54  ;;  %v3051_v19 = vadd.f32 %v3043_v39, %v9176_v55  ;;  %v3045_v20 = vmul.f32 0.044715, %v3037_v15  ;;  %v3047_v38 = vmul.f32 0.044715, %v3039_v13 }
0x18a8   :  { %v3050_v26 = vadd.f32 %v3042_v23, %v9178_v51  ;;  %v3052_v28 = vadd.f32 %v3044_v16, %v9180_v58  ;;  %v3046_v37 = vmul.f32 0.044715, %v3038_v17  ;;  %v3048_v29 = vmul.f32 0.044715, %v3040_v18 }
0x18a9   :  { %v3057_v30 = vmul.f32 0.7978846, %v3049_v24  ;;  %v3059_v32 = vmul.f32 0.7978846, %v3051_v19  ;;  %v3053_v33 = vadd.f32 %v3045_v20, %v9186_v0  ;;  %v3055_v35 = vadd.f32 %v3047_v38, %v9188_v2 }
0x18aa   :  { %v3058_v36 = vmul.f32 0.7978846, %v3050_v26  ;;  %v3060_v42 = vmul.f32 0.7978846, %v3052_v28  ;;  %v3054_v45 = vadd.f32 %v3046_v37, %v9194_v8  ;;  %v3056_v47 = vadd.f32 %v3048_v29, %v9196_v9 }
0x18ab   :  { %7629 = vtanh.f32 %v3057_v30  ;;  %v3061_v48 = vmul.f32 0.7978846, %v3053_v33  ;;  %v3063_v49 = vmul.f32 0.7978846, %v3055_v35 }
0x18ac   :  { %7631 = vtanh.f32 %v3059_v32  ;;  %v3062_v53 = vmul.f32 0.7978846, %v3054_v45  ;;  %v3064_v22 = vmul.f32 0.7978846, %v3056_v47 }
0x18ad   :  { %7633 = vtanh.f32 %v3058_v36 }
0x18ae   :  { %7635 = vtanh.f32 %v3060_v42 }
0x18af   :  { %7637 = vtanh.f32 %v3061_v48 }
0x18b0   :  { %7639 = vtanh.f32 %v3063_v49 }
0x18b1   :  { %7641 = vtanh.f32 %v3062_v53 }
0x18b2   :  { %7643 = vtanh.f32 %v3064_v22 }
0x18b5   :  { %v7630_v56 = vpop.eup %7629 }
0x18b6   :  { %v7632_v57 = vpop.eup %7631  ;;  %v3073_v59 = vadd.f32 1.0, %v7630_v56 }
0x18b7   :  { %v7634_v60 = vpop.eup %7633  ;;  %v3075_v62 = vadd.f32 1.0, %v7632_v57 }
0x18b8   :  { %v7636_v63 = vpop.eup %7635  ;;  %v3074_v1 = vadd.f32 1.0, %v7634_v60  ;;  %v3081_v14 = vmul.f32 0.5, %v3073_v59  ;;  %v7469_v59 = vld [vmem:[#allocation14 + $0x40] sm:$0xff]  }
0x18b9   :  { %v7638_v4 = vpop.eup %7637  ;;  %v3076_v6 = vadd.f32 1.0, %v7636_v63  ;;  %v3083_v46 = vmul.f32 0.5, %v3075_v62  ;;  %v7470_v60 = vld [vmem:[#allocation17 + $0x40] sm:$0xff]  }
0x18ba   :  { %v7640_v7 = vpop.eup %7639  ;;  %v3077_v41 = vadd.f32 1.0, %v7638_v4  ;;  %v3082_v25 = vmul.f32 0.5, %v3074_v1  ;;  %v3089_v23 = vmul.f32 %v3081_v14, %v9174_v54  ;;  %v7471_v62 = vld [vmem:[#allocation14 + $0x48] sm:$0xff]  }
0x18bb   :  { %v7642_v27 = vpop.eup %7641  ;;  %v3079_v31 = vadd.f32 1.0, %v7640_v7  ;;  %v3084_v13 = vmul.f32 0.5, %v3076_v6  ;;  %v3091_v18 = vmul.f32 %v3083_v46, %v9176_v55  ;;  %v7473_v46 = vld [vmem:[#allocation14 + $0x50] sm:$0xff]  }
0x18bc   :  { %v7644_v10 = vpop.eup %7643  ;;  %v3085_v61 = vmul.f32 0.5, %v3077_v41  ;;  %v3078_v12 = vadd.f32 1.0, %v7642_v27  ;;  %v3090_v20 = vmul.f32 %v3082_v25, %v9178_v51  ;;  %v7472_v27 = vld [vmem:[#allocation17 + $0x48] sm:$0xff]   ;;  %v7478_v25 = vld [vmem:[#allocation17 + $0x60] sm:$0xff]  }
0x18bd   :  { %v3087_v39 = vmul.f32 0.5, %v3079_v31  ;;  %v3080_v15 = vadd.f32 1.0, %v7644_v10  ;;  %v3092_v28 = vmul.f32 %v3084_v13, %v9180_v58  ;;  %v7474_v31 = vld [vmem:[#allocation17 + $0x50] sm:$0xff]  }
0x18be   :  { %v3093_v16 = vmul.f32 %v3085_v61, %v9186_v0  ;;  %v3086_v17 = vmul.f32 0.5, %v3078_v12  ;;  %v6262_v0 = vld [vmem:[#allocation34] ss:$0 sm:$0xff]  ;;  %v7475_v10 = vld [vmem:[#allocation14 + $0x58] sm:$0xff]   ;;  %v7477_v12 = vld [vmem:[#allocation14 + $0x60] sm:$0xff]  }
0x18bf   :  { %v3095_v24 = vmul.f32 %v3087_v39, %v9188_v2  ;;  %v3088_v19 = vmul.f32 0.5, %v3080_v15  ;;  %v7476_v61 = vld [vmem:[#allocation17 + $0x58] sm:$0xff]   ;;  %v7479_v39 = vld [vmem:[#allocation14 + $0x68] sm:$0xff]   ;;  %v7481_v13 = vld [vmem:[#allocation14 + $0x70] sm:$0xff]  }
0x18c0   :  { %v3094_v38 = vmul.f32 %v3086_v17, %v9194_v8  ;;  %v3097_v26 = vpack.c.bf16 %v3093_v16, %v3089_v23  ;;  %v7480_v15 = vld [vmem:[#allocation17 + $0x68] sm:$0xff]   ;;  %v7482_v23 = vld [vmem:[#allocation17 + $0x70] sm:$0xff]   ;;  %v7484_v17 = vld [vmem:[#allocation17 + $0x78] sm:$0xff]  }
0x18c1   :  { %v3096_v37 = vmul.f32 %v3088_v19, %v9196_v9  ;;  %v3099_v29 = vpack.c.bf16 %v3095_v24, %v3091_v18  ;;  %v7483_v16 = vld [vmem:[#allocation14 + $0x78] sm:$0xff]  }
0x18c2   :  { %v3098_v30 = vpack.c.bf16 %v3094_v38, %v3090_v20 }
0x18c3   :  { %v3100_v54 = vpack.c.bf16 %v3096_v37, %v3092_v28 }
0x18c4   :  { %3396 = vmatprep.mubr.bf16.mxu1 %v3098_v30 }
0x18c5   :  { %3437 = vmatprep.mubr.bf16.mxu0 %v3100_v54  ;;  %3397 = vmatmul.mubr.bf16.vlgmr.msra.gmra.mrb[56].mxu1 %v3097_v26 }
0x18c6   :  { %3438 = vmatmul.mubr.bf16.vlgmr.msra.gmra.mrb[48].mxu0 %v3099_v29  ;;  %7000 = vmatprep.mubr.msk.bf16.mxu1 %vm8334_vm4, %v8333_v34  ;;  %v6295_v29 = vld [vmem:[#allocation11 + $0x1] ss:$0 sm:$0xff] }
0x18c7   :  { %7020 = vmatprep.mubr.msk.bf16.mxu0 %vm8334_vm4, %v8333_v34  ;;  %6985 = vmatpush3.bf16.msra.mxu1 %v7469_v59 }
0x18c8   :  { %7005 = vmatpush3.bf16.msra.mxu0 %v7470_v60  ;;  %6986 = vmatprep.subr.bf16.mxu1 %v8333_v34 }
0x18c9   :  { %7006 = vmatprep.subr.bf16.mxu0 %v8333_v34 }
0x18cb   :  { %6987 = vmatpush3.bf16.msra.mxu1 %v7471_v62 }
0x18cc   :  { %6988 = vmatprep.subr.bf16.mxu1 %v8333_v34  ;;  %7007 = vmatpush3.bf16.msra.mxu0 %v7472_v27 }
0x18cd   :  { %7008 = vmatprep.subr.bf16.mxu0 %v8333_v34 }
0x18cf   :  { %6989 = vmatpush3.bf16.msra.mxu1 %v7473_v46  ;;  %v6315_v46 = vld [vmem:[#allocation22 + $0x1] ss:$0 sm:$0xff] }
0x18d0   :  { %7009 = vmatpush3.bf16.msra.mxu0 %v7474_v31  ;;  %6990 = vmatprep.subr.bf16.mxu1 %v8333_v34 }
0x18d1   :  { %7010 = vmatprep.subr.bf16.mxu0 %v8333_v34 }
0x18d3   :  { %6991 = vmatpush3.bf16.msra.mxu1 %v7475_v10 }
0x18d4   :  { %7011 = vmatpush3.bf16.msra.mxu0 %v7476_v61  ;;  %6992 = vmatprep.subr.bf16.mxu1 %v8333_v34 }
0x18d5   :  { %7012 = vmatprep.subr.bf16.mxu0 %v8333_v34 }
0x18d7   :  { %6993 = vmatpush3.bf16.msra.mxu1 %v7477_v12 }
0x18d8   :  { %7013 = vmatpush3.bf16.msra.mxu0 %v7478_v25  ;;  %6994 = vmatprep.subr.bf16.mxu1 %v8333_v34 }
0x18d9   :  { %7014 = vmatprep.subr.bf16.mxu0 %v8333_v34 }
0x18db   :  { %6995 = vmatpush3.bf16.msra.mxu1 %v7479_v39 }
0x18dc   :  { %7015 = vmatpush3.bf16.msra.mxu0 %v7480_v15  ;;  %6996 = vmatprep.subr.bf16.mxu1 %v8333_v34 }
0x18dd   :  { %7016 = vmatprep.subr.bf16.mxu0 %v8333_v34 }
0x18df   :  { %6997 = vmatpush3.bf16.msra.mxu1 %v7481_v13 }
0x18e0   :  { %7017 = vmatpush3.bf16.msra.mxu0 %v7482_v23  ;;  %6998 = vmatprep.subr.bf16.mxu1 %v8333_v34 }
0x18e1   :  { %7018 = vmatprep.subr.bf16.mxu0 %v8333_v34 }
0x18e3   :  { %6999 = vmatpush3.bf16.msra.mxu1 %v7483_v16 }
0x18e4   :  { %7019 = vmatpush3.bf16.msra.mxu0 %v7484_v17  ;;  %7024 = vmatprep.subr.bf16.mxu1 %v8333_v34 }
0x18e5   :  { %7044 = vmatprep.subr.bf16.mxu0 %v8333_v34 }
0x1998   :  { %v6600_v55 = vpop.f32.mrb[56].mxu1 }
0x1999   :  { %v6622_v51 = vpop.f32.mrb[48].mxu0  ;;  %v6601_v2 = vpop.f32.mrb[57].mxu1 }
0x199a   :  { %v6602_v58 = vadd.f32 %v6601_v2, %v6600_v55  ;;  %v6623_v8 = vpop.f32.mrb[49].mxu0  ;;  %v6603_v9 = vpop.f32.mrb[58].mxu1 }
0x199b   :  { %v6624_v32 = vadd.f32 %v6623_v8, %v6622_v51  ;;  %v6625_v33 = vpop.f32.mrb[50].mxu0  ;;  %v6604_v35 = vpop.f32.mrb[59].mxu1  ;;  %v6296_v51 = vld [vmem:[#allocation13 + $0x1] ss:$0 sm:$0xff]  ;;  %v7485_v8 = vld [vmem:[#allocation20 + $0x40] sm:$0xff]  }
0x199c   :  { %v3399_v36 = vadd.f32 %v6602_v58, %v6262_v0  ;;  %v6605_v42 = vadd.f32 %v6604_v35, %v6603_v9  ;;  %v6626_v45 = vpop.f32.mrb[51].mxu0  ;;  %v7488_v35 = vld [vmem:[#allocation20 + $0x58] sm:$0xff]  }
0x199d   :  { %v6627_v47 = vadd.f32 %v6626_v45, %v6625_v33  ;;  %v7487_v33 = vld [vmem:[#allocation20 + $0x50] sm:$0xff]  }
0x199e   :  { %v3440_v48 = vadd.f32 %v6624_v32, %v3399_v36  ;;  %v3402_v49 = vadd.f32 %v6605_v42, %v6262_v0  ;;  %v7486_v32 = vld [vmem:[#allocation20 + $0x48] sm:$0xff]   ;;  %v7489_v36 = vld [vmem:[#allocation20 + $0x60] sm:$0xff]   ;;  %v7491_v45 = vld [vmem:[#allocation20 + $0x70] sm:$0xff]  }
0x199f   :  { %v7490_v42 = vld [vmem:[#allocation20 + $0x68] sm:$0xff]  }
0x19a0   :  { %v3443_v53 = vadd.f32 %v6627_v47, %v3402_v49  ;;  %v9235_v22 = vadd.f32 %v3440_v48, %v9144_v5  ;;  %v7492_v47 = vld [vmem:[#allocation20 + $0x78] sm:$0xff]  }
0x19a1   :  { %v6297_v48 = vld [vmem:[#allocation16 + $0x1] ss:$0 sm:$0xff] }
0x19a2   :  { %v9238_v56 = vadd.f32 %v3443_v53, %v9139_v3  ;;  %3452 = vadd.xlane.f32.xlu0 %v9235_v22  ;;  %v6306_v53 = vld [vmem:[#allocation19 + $0x1] ss:$0 sm:$0xff] }
0x19a4   :  { %v3454_v57 = vsel %vm961_vm0, %v9238_v56, 0.0 }
0x19a5   :  { %3455 = vadd.xlane.f32.xlu1 %v3454_v57 }
0x1a2f   :  { %v3453_v3 = vpop.xlane.xlu0 %3452 }
0x1a30   :  { %v3457_v5 = vmul.f32 0.0078125, %v3453_v3 }
0x1a32   :  { %v3459_v63 = vsub.f32 %v9235_v22, %v3457_v5  ;;  %v3456_v1 = vpop.xlane.xlu1 %3455 }
0x1a33   :  { %v3458_v4 = vmul.f32 0.0078125, %v3456_v1 }
0x1a34   :  { %v3461_v6 = vmul.f32 %v3459_v63, %v3459_v63 }
0x1a35   :  { %v3460_v7 = vsub.f32 %v9238_v56, %v3458_v4 }
0x1a36   :  { %3463 = vadd.xlane.f32.xlu1 %v3461_v6 }
0x1a37   :  { %v3462_v14 = vmul.f32 %v3460_v7, %v3460_v7 }
0x1a39   :  { %v3465_v41 = vsel %vm961_vm0, %v3462_v14, 0.0 }
0x1a3a   :  { %3466 = vadd.xlane.f32.xlu1 %v3465_v41 }
0x1ac3   :  { %v3464_v18 = vpop.xlane.xlu1 %3463 }
0x1ac4   :  { %v3468_v24 = vmul.f32 0.0078125, %v3464_v18 }
0x1ac6   :  { %v3470_v19 = vadd.f32 1e-06, %v3468_v24 }
0x1ac7   :  { %v3467_v20 = vpop.xlane.xlu1 %3466 }
0x1ac8   :  { %7645 = vrsqrt.f32 %v3470_v19  ;;  %v3469_v38 = vmul.f32 0.0078125, %v3467_v20 }
0x1aca   :  { %v3471_v26 = vadd.f32 1e-06, %v3469_v38 }
0x1acc   :  { %7647 = vrsqrt.f32 %v3471_v26 }
0x1ad2   :  { %v7646_v28 = vpop.eup %7645 }
0x1ad3   :  { %v3474_v37 = vmul.f32 %v7646_v28, %v3459_v63 }
0x1ad5   :  { %v3482_v55 = vmul.f32 %v6295_v29, %v3474_v37 }
0x1ad6   :  { %v7648_v30 = vpop.eup %7647 }
0x1ad7   :  { %v3475_v54 = vmul.f32 %v7648_v30, %v3460_v7  ;;  %v3490_v2 = vadd.f32 %v6296_v51, %v3482_v55 }
0x1ad9   :  { %v3483_v0 = vmul.f32 %v6295_v29, %v3475_v54 }
0x1adb   :  { %v3491_v58 = vadd.f32 %v6296_v51, %v3483_v0 }
0x1add   :  { %v3492_v9 = vpack.c.bf16 %v3491_v58, %v3490_v2 }
0x1adf   :  { %7001 = vmatmul.mubr.bf16.vlgmr.msra.gmra.mrb[60].mxu1 %v3492_v9  ;;  %7021 = vmatmul.mubr.bf16.vlgmr.msra.gmra.mrb[52].mxu0 %v3492_v9 }
0x1ae0   :  { %7025 = vmatpush3.bf16.msra.mxu1 %v7485_v8  ;;  %7040 = vmatprep.mubr.msk.bf16.mxu1 %vm8334_vm4, %v8333_v34 }
0x1ae1   :  { %7026 = vmatprep.subr.bf16.mxu1 %v8333_v34  ;;  %7046 = vmatprep.mubr.msk.bf16.mxu0 %vm8334_vm4, %v8333_v34 }
0x1ae4   :  { %7027 = vmatpush3.bf16.msra.mxu1 %v7486_v32 }
0x1ae5   :  { %7028 = vmatprep.subr.bf16.mxu1 %v8333_v34 }
0x1ae8   :  { %7029 = vmatpush3.bf16.msra.mxu1 %v7487_v33 }
0x1ae9   :  { %7030 = vmatprep.subr.bf16.mxu1 %v8333_v34 }
0x1aec   :  { %7031 = vmatpush3.bf16.msra.mxu1 %v7488_v35 }
0x1aed   :  { %7032 = vmatprep.subr.bf16.mxu1 %v8333_v34 }
0x1af0   :  { %7033 = vmatpush3.bf16.msra.mxu1 %v7489_v36 }
0x1af1   :  { %7034 = vmatprep.subr.bf16.mxu1 %v8333_v34 }
0x1af4   :  { %7035 = vmatpush3.bf16.msra.mxu1 %v7490_v42 }
0x1af5   :  { %7036 = vmatprep.subr.bf16.mxu1 %v8333_v34 }
0x1af8   :  { %7037 = vmatpush3.bf16.msra.mxu1 %v7491_v45 }
0x1af9   :  { %7038 = vmatprep.subr.bf16.mxu1 %v8333_v34 }
0x1afc   :  { %7039 = vmatpush3.bf16.msra.mxu1 %v7492_v47 }
0x1afd   :  { %7062 = vmatprep.subr.bf16.mxu1 %v8333_v34 }
0x1aff   :  { %7041 = vmatmul.mubr.bf16.vlgmr.msra.gmra.mrb[64].mxu1 %v3492_v9 }
0x1b00   :  { %7064 = vmatprep.mubr.msk.bf16.mxu1 %vm8334_vm4, %v8333_v34 }
0x1bb2   :  { %v3600_v49 = vpop.f32.mrb[60].mxu1  ;;  %v3714_v57 = vpop.f32.mrb[52].mxu0 }
0x1bb3   :  { %v7002_v59 = vpop.f32.mrb[61].mxu1  ;;  %v7022_v60 = vpop.f32.mrb[53].mxu0  ;;  %v3601_v5 = vadd.f32 %v6297_v48, %v3600_v49  ;;  %v3715_v63 = vadd.f32 %v6306_v53, %v3714_v57 }
0x1bb4   :  { %v3603_v62 = vpop.f32.mrb[62].mxu1  ;;  %v3717_v3 = vpop.f32.mrb[54].mxu0 }
0x1bb5   :  { %v3604_v1 = vadd.f32 %v6297_v48, %v3603_v62  ;;  %v3718_v4 = vadd.f32 %v6306_v53, %v3717_v3  ;;  %v7003_v6 = vpop.f32.mrb[63].mxu1  ;;  %v7023_v7 = vpop.f32.mrb[55].mxu0  ;;  %v9318_v3 = vld [vmem:[#allocation23 + $0x50] sm:$0xff]  }
0x1bb7   :  { %v9276_v14 = vpack.c.bf16 %v3604_v1, %v3601_v5  ;;  %v9278_v41 = vpack.c.bf16 %v3718_v4, %v3715_v63 }
0x1bb9   :  { %3962 = vrot.lane.b32.xlu0 %v9276_v14, %s8336_s18  ;;  %v3859_v27 = vsel %vm1357_vm5, %v9278_v41, 0 }
0x1bba   :  { %7045 = vmatpush3.bf16.xpose.msra.mxu0 %v3859_v27 }
0x1bbb   :  { %7050 = vmatprep.subr.bf16.mxu0 %v8333_v34 }
0x1bc1   :  { %7047 = vmatmul.mubr.msk.bf16.vlgmr.msra.gmra.mrb[56].mxu0 %vm1357_vm5, %v9276_v14 }
0x1bc2   :  { %7052 = vmatprep.mubr.msk.bf16.mxu0 %vm8334_vm4, %v8333_v34 }
0x1bd2   :  { %v3828_v31 = vpop.f32.mrb[64].mxu1 }
0x1bd3   :  { %v7042_v10 = vpop.f32.mrb[65].mxu1  ;;  %v3829_v12 = vadd.f32 %v6315_v46, %v3828_v31 }
0x1bd4   :  { %v3831_v61 = vpop.f32.mrb[66].mxu1  ;;  %v9334_v10 = vld [vmem:[#allocation23 + $0x40] sm:$0xff]  }
0x1bd5   :  { %v3832_v25 = vadd.f32 %v6315_v46, %v3831_v61  ;;  %v7043_v39 = vpop.f32.mrb[67].mxu1  ;;  %v9330_v46 = vld [vmem:[#allocation23 + $0x58] sm:$0xff]  }
0x1bd7   :  { %v9289_v15 = vpack.c.bf16 %v3832_v25, %v3829_v12 }
0x1bd9   :  { %v3918_v13 = vand.u32 %v9289_v15, %v8917_v50 }
0x1bdb   :  { %7051 = vmatpush3.bf16.msra.mxu0 %v3918_v13  ;;  %v9338_v13 = vld [vmem:[#allocation23 + $0x48] sm:$0xff]  }
0x1bdc   :  { %7056 = vmatprep.subr.bf16.mxu0 %v8333_v34 }
0x1c2b   :  { %v3963_v2 = vpop.permute.xlu0 %3962 }
0x1c94   :  { %v3895_v23 = vpop.f32.mrb[56].mxu0 }
0x1c95   :  { %v3901_v16 = vmul.f32 0.17677669, %v3895_v23  ;;  %v7048_v17 = vpop.f32.mrb[57].mxu0 }
0x1c96   :  { %v3898_v18 = vpop.f32.mrb[58].mxu0 }
0x1c97   :  { %v7049_v24 = vpop.f32.mrb[59].mxu0  ;;  %v3902_v19 = vsel %vm1405_vm7, %v3901_v16, -inf }
0x1c98   :  { %3903 = vmax.xlane.f32.xlu1 %v3902_v19 }
0x1d25   :  { %v3904_v20 = vpop.xlane.xlu1 %3903 }
0x1d26   :  { %v3905_v38 = vsub.f32 %v3901_v16, %v3904_v20 }
0x1d28   :  { %v3906_v26 = vmul.f32 1.442695, %v3905_v38 }
0x1d2a   :  { %7649 = vpow2.f32 %v3906_v26 }
0x1d34   :  { %v7650_v28 = vpop.eup %7649 }
0x1d35   :  { %v3908_v37 = vsel %vm1405_vm7, %v7650_v28, 0.0 }
0x1d36   :  { %3909 = vadd.xlane.f32.xlu1 %v3908_v37 }
0x1d47   :  { %3965 = vrot.lane.b32.xlu1 %v9278_v41, %s8336_s18 }
0x1dc3   :  { %v3910_v29 = vpop.xlane.xlu1 %3909 }
0x1dc4   :  { %7651 = vrcp.f32 %v3910_v29 }
0x1dc7   :  { %v3966_v55 = vpop.permute.xlu1 %3965 }
0x1dc8   :  { %v3971_v0 = vsel %vm1357_vm5, %v3966_v55, 0  ;;  %v9360_v55 = vld [vmem:[#allocation23 + $0x60] sm:$0xff]  }
0x1dce   :  { %v7652_v30 = vpop.eup %7651 }
0x1dcf   :  { %v3912_v54 = vmul.f32 %v7652_v30, %v7650_v28 }
0x1dd1   :  { %v3913_v51 = vpack.c.bf16 %v3912_v54, %v3912_v54 }
0x1dd3   :  { %7053 = vmatmul.mubr.msk.bf16.vlgmr.msra.gmra.mrb[60].mxu0 %vm1418_vm8, %v3913_v51 }
0x1dd4   :  { %7057 = vmatpush3.bf16.xpose.msra.mxu0 %v3971_v0  ;;  %7058 = vmatprep.mubr.msk.bf16.mxu0 %vm8334_vm4, %v8333_v34 }
0x1dd5   :  { %7068 = vmatprep.subr.bf16.mxu0 %v8333_v34 }
0x1ddb   :  { %7059 = vmatmul.mubr.msk.bf16.vlgmr.msra.gmra.mrb[64].mxu0 %vm1357_vm5, %v3963_v2 }
0x1ddc   :  { %7072 = vmatprep.mubr.msk.bf16.mxu0 %vm8334_vm4, %v8333_v34  ;;  %7069 = vmatpush3.bf16.msra.mxu0 %v9318_v3 }
0x1ddd   :  { %7070 = vmatprep.subr.bf16.mxu0 %v8333_v34 }
0x1de0   :  { %7071 = vmatpush3.bf16.msra.mxu0 %v9330_v46 }
0x1de1   :  { %7076 = vmatprep.subr.bf16.mxu0 %v8333_v34 }
0x1ea6   :  { %v9306_v58 = vpop.f32.mrb[60].mxu0 }
0x1ea7   :  { %v7054_v8 = vpop.f32.mrb[61].mxu0  ;;  %v3960_v20 = vpack.c.bf16 %v9306_v58, %v9306_v58  ;;  %v4529_v58 = vshrl.u32 %v9278_v41, 16 }
0x1ea8   :  { %v3957_v9 = vpop.f32.mrb[62].mxu0  ;;  %v4532_v8 = vshll.u32 %v9278_v41, 16 }
0x1ea9   :  { %v7055_v32 = vpop.f32.mrb[63].mxu0 }
0x1eae   :  { %v4007_v33 = vpop.f32.mrb[64].mxu0 }
0x1eaf   :  { %v4013_v35 = vmul.f32 0.17677669, %v4007_v33  ;;  %v7060_v36 = vpop.f32.mrb[65].mxu0 }
0x1eb0   :  { %v4010_v42 = vpop.f32.mrb[66].mxu0  ;;  %v4534_v36 = vrot.slane %v4532_v8, 3 }
0x1eb1   :  { %v7061_v45 = vpop.f32.mrb[67].mxu0  ;;  %v4014_v47 = vsel %vm1405_vm7, %v4013_v35, -inf  ;;  %v4595_v42 = vshrl.u32 %v9289_v15, 16 }
0x1eb2   :  { %4015 = vmax.xlane.f32.xlu1 %v4014_v47  ;;  %v4598_v45 = vshll.u32 %v9289_v15, 16 }
0x1ec3   :  { %4027 = vrot.lane.b32.xlu1 %v9289_v15, %s8336_s18 }
0x1ec7   :  { %4186 = vrot.lane.b32.xlu1 %v9276_v14, %s9678_s2 }
0x1f3f   :  { %v4016_v48 = vpop.xlane.xlu1 %4015 }
0x1f40   :  { %v4017_v49 = vsub.f32 %v4013_v35, %v4016_v48  ;;  %v4531_v35 = vrot.slane %v4529_v58, 2  ;;  %v4525_v48 = vshll.u32 %v9276_v14, 16 }
0x1f42   :  { %v4018_v53 = vmul.f32 1.442695, %v4017_v49  ;;  %v9373_v47 = vor.u32 %v4534_v36, %v4531_v35  ;;  %v9417_v36 = vld [vmem:[#allocation23 + $0x70] sm:$0xff]  }
0x1f43   :  { %v4028_v57 = vpop.permute.xlu1 %4027 }
0x1f44   :  { %7653 = vpow2.f32 %v4018_v53  ;;  %v4033_v59 = vand.u32 %v4028_v57, %v8917_v50  ;;  %v4597_v53 = vrot.slane %v4595_v42, 2  ;;  %v4600_v57 = vrot.slane %v4598_v45, 3  ;;  %v9421_v45 = vld [vmem:[#allocation23 + $0x78] sm:$0xff]  }
0x1f46   :  { %7063 = vmatpush3.bf16.msra.mxu1 %v4033_v59  ;;  %v4540_v59 = vsel %vm1357_vm5, %v9373_v47, 0 }
0x1f47   :  { %7084 = vmatprep.subr.bf16.mxu1 %v8333_v34  ;;  %v4187_v27 = vpop.permute.xlu1 %4186 }
0x1f4e   :  { %v7654_v60 = vpop.eup %7653 }
0x1f4f   :  { %v4020_v62 = vsel %vm1405_vm7, %v7654_v60, 0.0 }
0x1f50   :  { %4021 = vadd.xlane.f32.xlu0 %v4020_v62  ;;  %v4527_v62 = vrot.slane %v4525_v48, 3 }
0x1f66   :  { %4188 = vrot.lane.b32.xlu0 %v9278_v41, %s9678_s2 }
0x1fdd   :  { %v4022_v5 = vpop.xlane.xlu0 %4021 }
0x1fde   :  { %7655 = vrcp.f32 %v4022_v5  ;;  %v9383_v5 = vor.u32 %v4600_v57, %v4597_v53 }
0x1fe1   :  { %v4189_v4 = vpop.permute.xlu0 %4188 }
0x1fe2   :  { %v4194_v7 = vsel %vm1357_vm5, %v4189_v4, 0 }
0x1fe8   :  { %v7656_v63 = vpop.eup %7655 }
0x1fe9   :  { %v4024_v1 = vmul.f32 %v7656_v63, %v7654_v60 }
0x1feb   :  { %v4025_v6 = vpack.c.bf16 %v4024_v1, %v4024_v1  ;;  %v9394_v1 = vld [vmem:[#allocation23 + $0x68] sm:$0xff]  }
0x1fed   :  { %7065 = vmatmul.mubr.msk.bf16.vlgmr.msra.gmra.mrb[68].mxu1 %vm1418_vm8, %v4025_v6 }
0x1fee   :  { %7085 = vmatpush3.bf16.xpose.msra.mxu1 %v4194_v7  ;;  %7086 = vmatprep.mubr.msk.bf16.mxu1 %vm8334_vm4, %v8333_v34 }
0x1fef   :  { %7090 = vmatprep.subr.bf16.mxu1 %v8333_v34 }
0x1ff5   :  { %7087 = vmatmul.mubr.msk.bf16.vlgmr.msra.gmra.mrb[72].mxu1 %vm1357_vm5, %v4187_v27 }
0x1ff6   :  { %7092 = vmatprep.mubr.msk.bf16.mxu1 %vm8334_vm4, %v8333_v34 }
0x20c0   :  { %v4069_v31 = vpop.f32.mrb[68].mxu1 }
0x20c1   :  { %v4075_v61 = vpack.c.bf16 %v4069_v31, %v4069_v31  ;;  %v7066_v12 = vpop.f32.mrb[69].mxu1 }
0x20c2   :  { %v4072_v25 = vpop.f32.mrb[70].mxu1 }
0x20c3   :  { %v7067_v39 = vpop.f32.mrb[71].mxu1  ;;  %7073 = vmatmul.mubr.msk.bf16.vlgmr.msra.gmra.mrb[68].mxu0 %vm1357_vm5, %v4075_v61 }
0x20c4   :  { %7077 = vmatpush3.bf16.msra.mxu0 %v9334_v10  ;;  %7080 = vmatprep.mubr.msk.bf16.mxu0 %vm8334_vm4, %v8333_v34 }
0x20c5   :  { %7078 = vmatprep.subr.bf16.mxu0 %v8333_v34 }
0x20c8   :  { %v4230_v23 = vpop.f32.mrb[72].mxu1  ;;  %7079 = vmatpush3.bf16.msra.mxu0 %v9338_v13 }
0x20c9   :  { %v4236_v16 = vmul.f32 0.17677669, %v4230_v23  ;;  %v7088_v17 = vpop.f32.mrb[73].mxu1  ;;  %7096 = vmatprep.subr.bf16.mxu0 %v8333_v34 }
0x20ca   :  { %v4233_v18 = vpop.f32.mrb[74].mxu1 }
0x20cb   :  { %v7089_v24 = vpop.f32.mrb[75].mxu1  ;;  %v4237_v19 = vsel %vm1405_vm7, %v4236_v16, -inf }
0x20cc   :  { %4238 = vmax.xlane.f32.xlu1 %v4237_v19 }
0x20cf   :  { %7081 = vmatmul.mubr.msk.bf16.vlgmr.msra.gmra.mrb[68].mxu0 %vm1357_vm5, %v3960_v20 }
0x20d0   :  { %7100 = vmatprep.mubr.msk.bf16.mxu0 %vm8334_vm4, %v8333_v34  ;;  %7097 = vmatpush3.bf16.msra.mxu0 %v9360_v55 }
0x20d1   :  { %7098 = vmatprep.subr.bf16.mxu0 %v8333_v34 }
0x20d4   :  { %7099 = vmatpush3.bf16.msra.mxu0 %v9394_v1 }
0x20d5   :  { %7110 = vmatprep.subr.bf16.mxu0 %v8333_v34 }
0x20dd   :  { %4249 = vrot.lane.b32.xlu1 %v9289_v15, %s9678_s2 }
0x20e1   :  { %4354 = vrot.lane.b32.xlu1 %v9276_v14, %s8337_s30 }
0x2159   :  { %v4239_v38 = vpop.xlane.xlu1 %4238 }
0x215a   :  { %v4240_v26 = vsub.f32 %v4236_v16, %v4239_v38 }
0x215c   :  { %v4241_v28 = vmul.f32 1.442695, %v4240_v26 }
0x215d   :  { %v4250_v37 = vpop.permute.xlu1 %4249 }
0x215e   :  { %7657 = vpow2.f32 %v4241_v28  ;;  %v4255_v29 = vand.u32 %v4250_v37, %v8917_v50 }
0x2160   :  { %7091 = vmatpush3.bf16.msra.mxu1 %v4255_v29 }
0x2161   :  { %7104 = vmatprep.subr.bf16.mxu1 %v8333_v34  ;;  %v4355_v49 = vpop.permute.xlu1 %4354 }
0x2168   :  { %v7658_v30 = vpop.eup %7657 }
0x2169   :  { %v4243_v54 = vsel %vm1405_vm7, %v7658_v30, 0.0 }
0x216a   :  { %4244 = vadd.xlane.f32.xlu0 %v4243_v54 }
0x2180   :  { %4356 = vrot.lane.b32.xlu0 %v9278_v41, %s8337_s30  ;;  %v4522_v41 = vshrl.u32 %v9276_v14, 16  ;;  %v4606_v14 = vand.u32 %v9383_v5, %v8917_v50 }
0x2182   :  { %v4524_v60 = vrot.slane %v4522_v41, 2 }
0x2184   :  { %v9385_v63 = vor.u32 %v4527_v62, %v4524_v60 }
0x21f7   :  { %v4245_v51 = vpop.xlane.xlu0 %4244 }
0x21f8   :  { %7659 = vrcp.f32 %v4245_v51 }
0x21fb   :  { %v4357_v9 = vpop.permute.xlu0 %4356 }
0x21fc   :  { %v4362_v33 = vsel %vm1357_vm5, %v4357_v9, 0 }
0x2202   :  { %v7660_v0 = vpop.eup %7659 }
0x2203   :  { %v4247_v2 = vmul.f32 %v7660_v0, %v7658_v30 }
0x2205   :  { %v4248_v32 = vpack.c.bf16 %v4247_v2, %v4247_v2 }
0x2207   :  { %7093 = vmatmul.mubr.msk.bf16.vlgmr.msra.gmra.mrb[76].mxu1 %vm1418_vm8, %v4248_v32 }
0x2208   :  { %7105 = vmatpush3.bf16.xpose.msra.mxu1 %v4362_v33  ;;  %7106 = vmatprep.mubr.msk.bf16.mxu1 %vm8334_vm4, %v8333_v34 }
0x2209   :  { %7124 = vmatprep.subr.bf16.mxu1 %v8333_v34 }
0x220f   :  { %7107 = vmatmul.mubr.msk.bf16.vlgmr.msra.gmra.mrb[80].mxu1 %vm1357_vm5, %v4355_v49 }
0x2210   :  { %7125 = vmatpush3.bf16.xpose.msra.mxu1 %v4540_v59  ;;  %7126 = vmatprep.mubr.msk.bf16.mxu1 %vm8334_vm4, %v8333_v34 }
0x2211   :  { %7130 = vmatprep.subr.bf16.mxu1 %v8333_v34 }
0x2217   :  { %7127 = vmatmul.mubr.msk.bf16.vlgmr.msra.gmra.mrb[84].mxu1 %vm1357_vm5, %v9385_v63 }
0x2218   :  { %7131 = vmatpush3.bf16.msra.mxu1 %v4606_v14  ;;  %7132 = vmatprep.mubr.msk.bf16.mxu1 %vm8334_vm4, %v8333_v34 }
0x2219   :  { %7142 = vmatprep.subr.bf16.mxu1 %v8333_v34 }
0x22da   :  { %v4291_v4 = vpop.f32.mrb[76].mxu1 }
0x22db   :  { %v4297_v6 = vpack.c.bf16 %v4291_v4, %v4291_v4  ;;  %v7094_v7 = vpop.f32.mrb[77].mxu1 }
0x22dc   :  { %v4294_v27 = vpop.f32.mrb[78].mxu1 }
0x22dd   :  { %v7095_v31 = vpop.f32.mrb[79].mxu1  ;;  %7101 = vmatmul.mubr.msk.bf16.vlgmr.msra.gmra.mrb[68].mxu0 %vm1357_vm5, %v4297_v6 }
0x22de   :  { %7112 = vmatprep.mubr.msk.bf16.mxu0 %vm8334_vm4, %v8333_v34 }
0x22e2   :  { %v4398_v61 = vpop.f32.mrb[80].mxu1 }
0x22e3   :  { %v4404_v12 = vmul.f32 0.17677669, %v4398_v61  ;;  %v7108_v25 = vpop.f32.mrb[81].mxu1 }
0x22e4   :  { %v4401_v39 = vpop.f32.mrb[82].mxu1 }
0x22e5   :  { %v7109_v23 = vpop.f32.mrb[83].mxu1  ;;  %v4405_v16 = vsel %vm1405_vm7, %v4404_v12, -inf }
0x22e6   :  { %4406 = vmax.xlane.f32.xlu1 %v4405_v16 }
0x22ea   :  { %v4576_v17 = vpop.f32.mrb[84].mxu1 }
0x22eb   :  { %v7128_v18 = vpop.f32.mrb[85].mxu1  ;;  %v4582_v20 = vmul.f32 0.17677669, %v4576_v17 }
0x22ec   :  { %v4579_v24 = vpop.f32.mrb[86].mxu1 }
0x22ed   :  { %v7129_v19 = vpop.f32.mrb[87].mxu1  ;;  %v4583_v38 = vsel %vm1405_vm7, %v4582_v20, -inf }
0x22f7   :  { %4417 = vrot.lane.b32.xlu1 %v9289_v15, %s8337_s30 }
0x22fb   :  { %4649 = vrot.lane.b32.xlu1 %v9385_v63, %s8336_s18 }
0x231f   :  { %4584 = vmax.xlane.f32.xlu1 %v4583_v38 }
0x2373   :  { %v4407_v26 = vpop.xlane.xlu1 %4406 }
0x2374   :  { %v4408_v28 = vsub.f32 %v4404_v12, %v4407_v26 }
0x2376   :  { %v4409_v37 = vmul.f32 1.442695, %v4408_v28 }
0x2377   :  { %v4418_v29 = vpop.permute.xlu1 %4417 }
0x2378   :  { %7661 = vpow2.f32 %v4409_v37  ;;  %v4423_v30 = vand.u32 %v4418_v29, %v8917_v50 }
0x237a   :  { %7111 = vmatpush3.bf16.msra.mxu0 %v4423_v30 }
0x237b   :  { %7116 = vmatprep.subr.bf16.mxu0 %v8333_v34  ;;  %v4650_v51 = vpop.permute.xlu1 %4649 }
0x2382   :  { %v7662_v54 = vpop.eup %7661 }
0x2383   :  { %v4411_v15 = vsel %vm1405_vm7, %v7662_v54, 0.0 }
0x2384   :  { %4412 = vadd.xlane.f32.xlu0 %v4411_v15 }
0x239a   :  { %4651 = vrot.lane.b32.xlu0 %v9373_v47, %s8336_s18 }
0x23ac   :  { %v4585_v0 = vpop.xlane.xlu1 %4584 }
0x23ad   :  { %v4586_v2 = vsub.f32 %v4582_v20, %v4585_v0 }
0x23af   :  { %v4587_v58 = vmul.f32 1.442695, %v4586_v2 }
0x23b1   :  { %7663 = vpow2.f32 %v4587_v58 }
0x23bb   :  { %v7664_v8 = vpop.eup %7663 }
0x23bc   :  { %v4589_v9 = vsel %vm1405_vm7, %v7664_v8, 0.0 }
0x23bd   :  { %4590 = vadd.xlane.f32.xlu1 %v4589_v9 }
0x23ce   :  { %4712 = vrot.lane.b32.xlu1 %v9383_v5, %s8336_s18 }
0x23d2   :  { %4847 = vrot.lane.b32.xlu1 %v9385_v63, %s9678_s2 }
0x2411   :  { %v4413_v32 = vpop.xlane.xlu0 %4412 }
0x2412   :  { %7665 = vrcp.f32 %v4413_v32 }
0x2415   :  { %v4652_v60 = vpop.permute.xlu0 %4651 }
0x2416   :  { %v4657_v7 = vsel %vm1357_vm5, %v4652_v60, 0 }
0x241c   :  { %v7666_v33 = vpop.eup %7665 }
0x241d   :  { %v4415_v35 = vmul.f32 %v7666_v33, %v7662_v54 }
0x241f   :  { %v4416_v42 = vpack.c.bf16 %v4415_v35, %v4415_v35 }
0x2421   :  { %7113 = vmatmul.mubr.msk.bf16.vlgmr.msra.gmra.mrb[72].mxu0 %vm1418_vm8, %v4416_v42 }
0x2422   :  { %7117 = vmatpush3.bf16.msra.mxu0 %v9417_v36  ;;  %7120 = vmatprep.mubr.msk.bf16.mxu0 %vm8334_vm4, %v8333_v34 }
0x2423   :  { %7118 = vmatprep.subr.bf16.mxu0 %v8333_v34 }
0x2426   :  { %7119 = vmatpush3.bf16.msra.mxu0 %v9421_v45 }
0x2427   :  { %7136 = vmatprep.subr.bf16.mxu0 %v8333_v34 }
0x244a   :  { %v4591_v41 = vpop.xlane.xlu1 %4590 }
0x244b   :  { %7667 = vrcp.f32 %v4591_v41 }
0x244e   :  { %v4713_v53 = vpop.permute.xlu1 %4712 }
0x244f   :  { %v4718_v59 = vand.u32 %v4713_v53, %v8917_v50 }
0x2452   :  { %v4848_v58 = vpop.permute.xlu1 %4847 }
0x2455   :  { %v7668_v48 = vpop.eup %7667 }
0x2456   :  { %v4593_v49 = vmul.f32 %v7668_v48, %v7664_v8 }
0x2458   :  { %v4594_v57 = vpack.c.bf16 %v4593_v49, %v4593_v49 }
0x245a   :  { %7133 = vmatmul.mubr.msk.bf16.vlgmr.msra.gmra.mrb[88].mxu1 %vm1418_vm8, %v4594_v57 }
0x245b   :  { %7143 = vmatpush3.bf16.msra.mxu1 %v4718_v59  ;;  %7144 = vmatprep.mubr.msk.bf16.mxu1 %vm8334_vm4, %v8333_v34 }
0x245c   :  { %7164 = vmatprep.subr.bf16.mxu1 %v8333_v34 }
0x24f4   :  { %v4459_v62 = vpop.f32.mrb[72].mxu0 }
0x24f5   :  { %v4465_v14 = vpack.c.bf16 %v4459_v62, %v4459_v62  ;;  %v7114_v4 = vpop.f32.mrb[73].mxu0 }
0x24f6   :  { %v4462_v6 = vpop.f32.mrb[74].mxu0 }
0x24f7   :  { %v7115_v27 = vpop.f32.mrb[75].mxu0  ;;  %7121 = vmatmul.mubr.msk.bf16.vlgmr.msra.gmra.mrb[68].mxu0 %vm1357_vm5, %v4465_v14 }
0x24f8   :  { %7137 = vmatpush3.bf16.xpose.msra.mxu0 %v4657_v7  ;;  %7138 = vmatprep.mubr.msk.bf16.mxu0 %vm8334_vm4, %v8333_v34 }
0x24f9   :  { %7148 = vmatprep.subr.bf16.mxu0 %v8333_v34 }
0x24ff   :  { %7139 = vmatmul.mubr.msk.bf16.vlgmr.msra.gmra.mrb[76].mxu0 %vm1357_vm5, %v4650_v51 }
0x2500   :  { %7149 = vmatpush3.bf16.msra.mxu0 %v9318_v3  ;;  %7152 = vmatprep.mubr.msk.bf16.mxu0 %vm8334_vm4, %v8333_v34 }
0x2501   :  { %7150 = vmatprep.subr.bf16.mxu0 %v8333_v34 }
0x2504   :  { %7151 = vmatpush3.bf16.msra.mxu0 %v9330_v46 }
0x2505   :  { %7156 = vmatprep.subr.bf16.mxu0 %v8333_v34 }
0x252d   :  { %v4642_v31 = vpop.f32.mrb[88].mxu1 }
0x252e   :  { %v7134_v61 = vpop.f32.mrb[89].mxu1  ;;  %v4648_v59 = vpack.c.bf16 %v4642_v31, %v4642_v31 }
0x252f   :  { %v4645_v12 = vpop.f32.mrb[90].mxu1 }
0x2530   :  { %v7135_v25 = vpop.f32.mrb[91].mxu1 }
0x25ca   :  { %v9445_v39 = vpop.f32.mrb[68].mxu0 }
0x25cb   :  { %v7122_v23 = vpop.f32.mrb[69].mxu0 }
0x25cc   :  { %v4518_v16 = vpop.f32.mrb[70].mxu0 }
0x25cd   :  { %v7123_v17 = vpop.f32.mrb[71].mxu0 }
0x25d2   :  { %v4693_v18 = vpop.f32.mrb[76].mxu0 }
0x25d3   :  { %v4699_v3 = vmul.f32 0.17677669, %v4693_v18  ;;  %v7140_v24 = vpop.f32.mrb[77].mxu0 }
0x25d4   :  { %v4696_v19 = vpop.f32.mrb[78].mxu0 }
0x25d5   :  { %v7141_v20 = vpop.f32.mrb[79].mxu0  ;;  %v4700_v38 = vsel %vm1405_vm7, %v4699_v3, -inf }
0x25d6   :  { %4701 = vmax.xlane.f32.xlu0 %v4700_v38 }
0x2663   :  { %v4702_v46 = vpop.xlane.xlu0 %4701 }
0x2664   :  { %v4703_v26 = vsub.f32 %v4699_v3, %v4702_v46 }
0x2666   :  { %v4704_v28 = vmul.f32 1.442695, %v4703_v26 }
0x2668   :  { %7669 = vpow2.f32 %v4704_v28 }
0x2672   :  { %v7670_v37 = vpop.eup %7669 }
0x2673   :  { %v4706_v29 = vsel %vm1405_vm7, %v7670_v37, 0.0 }
0x2674   :  { %4707 = vadd.xlane.f32.xlu0 %v4706_v29 }
0x268a   :  { %4849 = vrot.lane.b32.xlu0 %v9373_v47, %s9678_s2 }
0x2701   :  { %v4708_v30 = vpop.xlane.xlu0 %4707 }
0x2702   :  { %7671 = vrcp.f32 %v4708_v30 }
0x2705   :  { %v4850_v51 = vpop.permute.xlu0 %4849 }
0x2706   :  { %v4855_v2 = vsel %vm1357_vm5, %v4850_v51, 0 }
0x270c   :  { %v7672_v54 = vpop.eup %7671 }
0x270d   :  { %v4710_v15 = vmul.f32 %v7672_v54, %v7670_v37 }
0x270f   :  { %v4711_v0 = vpack.c.bf16 %v4710_v15, %v4710_v15 }
0x2711   :  { %7145 = vmatmul.mubr.msk.bf16.vlgmr.msra.gmra.mrb[92].mxu1 %vm1418_vm8, %v4711_v0 }
0x2712   :  { %7165 = vmatpush3.bf16.xpose.msra.mxu1 %v4855_v2  ;;  %7166 = vmatprep.mubr.msk.bf16.mxu1 %vm8334_vm4, %v8333_v34 }
0x2713   :  { %7170 = vmatprep.subr.bf16.mxu1 %v8333_v34 }
0x2719   :  { %7167 = vmatmul.mubr.msk.bf16.vlgmr.msra.gmra.mrb[96].mxu1 %vm1357_vm5, %v4848_v58 }
0x271a   :  { %7172 = vmatprep.mubr.msk.bf16.mxu1 %vm8334_vm4, %v8333_v34 }
0x27e4   :  { %v4754_v8 = vpop.f32.mrb[92].mxu1 }
0x27e5   :  { %v4760_v9 = vpack.c.bf16 %v4754_v8, %v4754_v8  ;;  %v7146_v32 = vpop.f32.mrb[93].mxu1 }
0x27e6   :  { %v4757_v33 = vpop.f32.mrb[94].mxu1  ;;  %v6356_v32 = vld [vmem:[#allocation25 + $0x1] ss:$0 sm:$0xff] }
0x27e7   :  { %v7147_v35 = vpop.f32.mrb[95].mxu1  ;;  %7153 = vmatmul.mubr.msk.bf16.vlgmr.msra.gmra.mrb[80].mxu0 %vm1357_vm5, %v4760_v9 }
0x27e8   :  { %7157 = vmatpush3.bf16.msra.mxu0 %v9334_v10  ;;  %7160 = vmatprep.mubr.msk.bf16.mxu0 %vm8334_vm4, %v8333_v34 }
0x27e9   :  { %7158 = vmatprep.subr.bf16.mxu0 %v8333_v34 }
0x27ec   :  { %v4891_v42 = vpop.f32.mrb[96].mxu1  ;;  %7159 = vmatpush3.bf16.msra.mxu0 %v9338_v13 }
0x27ed   :  { %v4897_v41 = vmul.f32 0.17677669, %v4891_v42  ;;  %v7168_v48 = vpop.f32.mrb[97].mxu1  ;;  %7176 = vmatprep.subr.bf16.mxu0 %v8333_v34 }
0x27ee   :  { %v4894_v49 = vpop.f32.mrb[98].mxu1 }
0x27ef   :  { %v7169_v53 = vpop.f32.mrb[99].mxu1  ;;  %v4898_v57 = vsel %vm1405_vm7, %v4897_v41, -inf }
0x27f0   :  { %4899 = vmax.xlane.f32.xlu1 %v4898_v57 }
0x27f3   :  { %7161 = vmatmul.mubr.msk.bf16.vlgmr.msra.gmra.mrb[80].mxu0 %vm1357_vm5, %v4648_v59  ;;  %v7503_v59 = vld [vmem:[#allocation29 + $0x104] ss:$16 sps:$4 sm:$0xff]  }
0x27f4   :  { %7177 = vmatpush3.bf16.msra.mxu0 %v9360_v55  ;;  %7180 = vmatprep.mubr.msk.bf16.mxu0 %vm8334_vm4, %v8333_v34 }
0x27f5   :  { %7178 = vmatprep.subr.bf16.mxu0 %v8333_v34 }
0x27f8   :  { %7179 = vmatpush3.bf16.msra.mxu0 %v9394_v1 }
0x27f9   :  { %7190 = vmatprep.subr.bf16.mxu0 %v8333_v34 }
0x2801   :  { %5005 = vrot.lane.b32.xlu1 %v9373_v47, %s8337_s30 }
0x2805   :  { %5003 = vrot.lane.b32.xlu1 %v9385_v63, %s8337_s30 }
0x287d   :  { %v4900_v10 = vpop.xlane.xlu1 %4899 }
0x287e   :  { %v4901_v13 = vsub.f32 %v4897_v41, %v4900_v10  ;;  %v7504_v10 = vld [vmem:[#allocation29 + $0x108] ss:$16 sps:$4 sm:$0xff]  }
0x2880   :  { %v4902_v60 = vmul.f32 1.442695, %v4901_v13  ;;  %v7506_v13 = vld [vmem:[#allocation29 + $0x10c] ss:$16 sps:$4 sm:$0xff]  }
0x2881   :  { %v5006_v6 = vpop.permute.xlu1 %5005 }
0x2882   :  { %7673 = vpow2.f32 %v4902_v60  ;;  %v5011_v27 = vsel %vm1357_vm5, %v5006_v6, 0  ;;  %v7509_v60 = vld [vmem:[#allocation29 + $0x124] ss:$16 sps:$4 sm:$0xff]  }
0x2885   :  { %v5004_v31 = vpop.permute.xlu1 %5003 }
0x288c   :  { %v7674_v55 = vpop.eup %7673 }
0x288d   :  { %v4904_v62 = vsel %vm1405_vm7, %v7674_v55, 0.0 }
0x288e   :  { %4905 = vadd.xlane.f32.xlu0 %v4904_v62 }
0x28a4   :  { %4910 = vrot.lane.b32.xlu0 %v9383_v5, %s9678_s2  ;;  %s8339_s2 = smov [#allocation41]  }
0x28a5   :  { %s6096_s10 = sshll.u32 %s8339_s2, 4  ;;  %s6097_s10 = int_to_ptr.vmem [resolvable:$true] %s6096_s10 }
0x28a6   :  { %s8253_s14 = scalar_lea.vmem %s6097_s10, 32  ;;  %p8258_p5 = scmp.lt.s32.totalorder %s6097_s10, %s6097_s10 }
0x28a7   :  { %p8254_p4 = scmp.ne.s32.totalorder %s6097_s10, %s8253_s14  ;;  %p8259_p6 = scmp.lt.s32.totalorder %s8253_s14, %s8253_s14 }
0x28a9   :  { %p8260_p7 = por %p8259_p6, %p8258_p5 }
0x28ab   :  { %p8261_p8 = pnand %p8260_p7, %p8254_p4 }
0x291b   :  { %v4906_v1 = vpop.xlane.xlu0 %4905 }
0x291c   :  { %7675 = vrcp.f32 %v4906_v1 }
0x291f   :  { %v4911_v14 = vpop.permute.xlu0 %4910 }
0x2920   :  { %v4916_v4 = vand.u32 %v4911_v14, %v8917_v50 }
0x2922   :  { %7171 = vmatpush3.bf16.msra.mxu1 %v4916_v4 }
0x2923   :  { %7184 = vmatprep.subr.bf16.mxu1 %v8333_v34 }
0x2926   :  { %v7676_v47 = vpop.eup %7675 }
0x2927   :  { %v4908_v63 = vmul.f32 %v7676_v47, %v7674_v55  ;;  %v7507_v55 = vld [vmem:[#allocation29 + $0x120] ss:$16 sps:$4 sm:$0xff]  }
0x2929   :  { %v4909_v7 = vpack.c.bf16 %v4908_v63, %v4908_v63 }
0x292b   :  { %7173 = vmatmul.mubr.msk.bf16.vlgmr.msra.gmra.mrb[100].mxu1 %vm1418_vm8, %v4909_v7 }
0x292c   :  { %7185 = vmatpush3.bf16.xpose.msra.mxu1 %v5011_v27  ;;  %7186 = vmatprep.mubr.msk.bf16.mxu1 %vm8334_vm4, %v8333_v34  ;;  %v7515_v27 = vld [vmem:[#allocation29 + $0x144] ss:$16 sps:$4 sm:$0xff]  }
0x292d   :  { %5436 = vmatprep.subr.bf16.mxu1 %v7503_v59  ;;  %v7549_v59 = vld [vmem:[#allocation32 + $0x140] sm:$0xff]  }
0x2933   :  { %7187 = vmatmul.mubr.msk.bf16.vlgmr.msra.gmra.mrb[104].mxu1 %vm1357_vm5, %v5004_v31  ;;  %v7518_v31 = vld [vmem:[#allocation29 + $0x14c] ss:$16 sps:$4 sm:$0xff]  }
0x2934   :  { %5468 = vmatprep.mubr.bf16.mxu1 %v8338_v52 }
0x29fe   :  { %v4952_v61 = vpop.f32.mrb[100].mxu1 }
0x29ff   :  { %v4958_v12 = vpack.c.bf16 %v4952_v61, %v4952_v61  ;;  %v7174_v25 = vpop.f32.mrb[101].mxu1  ;;  %v7513_v61 = vld [vmem:[#allocation29 + $0x140] ss:$16 sps:$4 sm:$0xff]  }
0x2a00   :  { %v4955_v23 = vpop.f32.mrb[102].mxu1  ;;  %v7521_v25 = vld [vmem:[#allocation29 + $0x164] ss:$16 sps:$4 sm:$0xff]  }
0x2a01   :  { %v7175_v16 = vpop.f32.mrb[103].mxu1  ;;  %7181 = vmatmul.mubr.msk.bf16.vlgmr.msra.gmra.mrb[80].mxu0 %vm1357_vm5, %v4958_v12  ;;  %v7516_v12 = vld [vmem:[#allocation29 + $0x148] ss:$16 sps:$4 sm:$0xff]   ;;  %v7524_v23 = vld [vmem:[#allocation29 + $0x16c] ss:$16 sps:$4 sm:$0xff]  }
0x2a02   :  { %7192 = vmatprep.mubr.msk.bf16.mxu0 %vm8334_vm4, %v8333_v34  ;;  %v7519_v16 = vld [vmem:[#allocation29 + $0x160] ss:$16 sps:$4 sm:$0xff]  }
0x2a06   :  { %v5047_v17 = vpop.f32.mrb[104].mxu1 }
0x2a07   :  { %v5053_v18 = vmul.f32 0.17677669, %v5047_v17  ;;  %v7188_v3 = vpop.f32.mrb[105].mxu1  ;;  %v7522_v17 = vld [vmem:[#allocation29 + $0x168] ss:$16 sps:$4 sm:$0xff]  }
0x2a08   :  { %v5050_v24 = vpop.f32.mrb[106].mxu1  ;;  %v7530_v3 = vld [vmem:[#allocation29 + $0x18c] ss:$16 sps:$4 sm:$0xff]  }
0x2a09   :  { %v7189_v19 = vpop.f32.mrb[107].mxu1  ;;  %v5054_v20 = vsel %vm1405_vm7, %v5053_v18, -inf  ;;  %v7525_v24 = vld [vmem:[#allocation29 + $0x180] ss:$16 sps:$4 sm:$0xff]  }
0x2a0a   :  { %5055 = vmax.xlane.f32.xlu0 %v5054_v20  ;;  %v7528_v19 = vld [vmem:[#allocation29 + $0x188] ss:$16 sps:$4 sm:$0xff]   ;;  %v7533_v20 = vld [vmem:[#allocation29 + $0x1a4] ss:$16 sps:$4 sm:$0xff]  }
0x2a20   :  { %5066 = vrot.lane.b32.xlu0 %v9383_v5, %s8337_s30 }
0x2a97   :  { %v5056_v38 = vpop.xlane.xlu0 %5055 }
0x2a98   :  { %v5057_v46 = vsub.f32 %v5053_v18, %v5056_v38  ;;  %v7527_v18 = vld [vmem:[#allocation29 + $0x184] ss:$16 sps:$4 sm:$0xff]   ;;  %v7536_v38 = vld [vmem:[#allocation29 + $0x1ac] ss:$16 sps:$4 sm:$0xff]  }
0x2a9a   :  { %v5058_v26 = vmul.f32 1.442695, %v5057_v46  ;;  %v7531_v46 = vld [vmem:[#allocation29 + $0x1a0] ss:$16 sps:$4 sm:$0xff]  }
0x2a9b   :  { %v5067_v28 = vpop.permute.xlu0 %5066 }
0x2a9c   :  { %7677 = vpow2.f32 %v5058_v26  ;;  %v5072_v37 = vand.u32 %v5067_v28, %v8917_v50  ;;  %v7534_v26 = vld [vmem:[#allocation29 + $0x1a8] ss:$16 sps:$4 sm:$0xff]   ;;  %v7539_v28 = vld [vmem:[#allocation29 + $0x1c4] ss:$16 sps:$4 sm:$0xff]  }
0x2a9e   :  { %7191 = vmatpush3.bf16.msra.mxu0 %v5072_v37  ;;  %v7542_v37 = vld [vmem:[#allocation29 + $0x1cc] ss:$16 sps:$4 sm:$0xff]  }
0x2a9f   :  { %7196 = vmatprep.subr.bf16.mxu0 %v8333_v34 }
0x2aa6   :  { %v7678_v29 = vpop.eup %7677 }
0x2aa7   :  { %v5060_v30 = vsel %vm1405_vm7, %v7678_v29, 0.0 }
0x2aa8   :  { %5061 = vadd.xlane.f32.xlu1 %v5060_v30  ;;  %v7540_v30 = vld [vmem:[#allocation29 + $0x1c8] ss:$16 sps:$4 sm:$0xff]  }
0x2b35   :  { %v5062_v54 = vpop.xlane.xlu1 %5061 }
0x2b36   :  { %7679 = vrcp.f32 %v5062_v54  ;;  %v7545_v54 = vld [vmem:[#allocation29 + $0x1e4] ss:$16 sps:$4 sm:$0xff]  }
0x2b40   :  { %v7680_v15 = vpop.eup %7679 }
0x2b41   :  { %v5064_v51 = vmul.f32 %v7680_v15, %v7678_v29  ;;  %v7537_v29 = vld [vmem:[#allocation29 + $0x1c0] ss:$16 sps:$4 sm:$0xff]   ;;  %v7548_v15 = vld [vmem:[#allocation29 + $0x1ec] ss:$16 sps:$4 sm:$0xff]  }
0x2b43   :  { %v5065_v0 = vpack.c.bf16 %v5064_v51, %v5064_v51  ;;  %v7543_v51 = vld [vmem:[#allocation29 + $0x1e0] ss:$16 sps:$4 sm:$0xff]  }
0x2b45   :  { %7193 = vmatmul.mubr.msk.bf16.vlgmr.msra.gmra.mrb[84].mxu0 %vm1418_vm8, %v5065_v0  ;;  %v7546_v0 = vld [vmem:[#allocation29 + $0x1e8] ss:$16 sps:$4 sm:$0xff]  }
0x2b46   :  { %7197 = vmatpush3.bf16.msra.mxu0 %v9417_v36  ;;  %7200 = vmatprep.mubr.msk.bf16.mxu0 %vm8334_vm4, %v8333_v34 }
0x2b47   :  { %7198 = vmatprep.subr.bf16.mxu0 %v8333_v34 }
0x2b4a   :  { %7199 = vmatpush3.bf16.msra.mxu0 %v9421_v45 }
0x2b4b   :  { %5479 = vmatprep.subr.bf16.mxu0 %v7506_v13  ;;  %v7551_v13 = vld [vmem:[#allocation32 + $0x100] sm:$0xff]  }
0x2c18   :  { %v5108_v50 = vpop.f32.mrb[84].mxu0 }
0x2c19   :  { %v5114_v5 = vpack.c.bf16 %v5108_v50, %v5108_v50  ;;  %v7194_v2 = vpop.f32.mrb[85].mxu0 }
0x2c1a   :  { %v5111_v58 = vpop.f32.mrb[86].mxu0 }
0x2c1b   :  { %v7195_v8 = vpop.f32.mrb[87].mxu0  ;;  %7201 = vmatmul.mubr.msk.bf16.vlgmr.msra.gmra.mrb[80].mxu0 %vm1357_vm5, %v5114_v5 }
0x2c1c   :  { %5511 = vmatprep.mubr.bf16.mxu0 %v8338_v52  ;;  %v7501_v52 = vld [vmem:[#allocation29 + $0x100] ss:$16 sps:$4 sm:$0xff]   ;;  %5480 = vmatpush1.bf16.msra.mxu0 %v7504_v10  ;;  %v7550_v10 = vld [vmem:[#allocation32 + $0x1c0] sm:$0xff]  }
0x2c1d   :  { %5437 = vmatpush1.bf16.msra.mxu1 %v7501_v52 }
0x2c1e   :  { %5438 = vmatprep.subr.bf16.mxu1 %v7509_v60  ;;  %v7552_v60 = vld [vmem:[#allocation32 + $0x180] sm:$0xff]  }
0x2c21   :  { %5439 = vmatpush1.bf16.msra.mxu1 %v7507_v55  ;;  %v7554_v55 = vld [vmem:[#allocation32 + $0x1c8] sm:$0xff]  }
0x2c22   :  { %5440 = vmatprep.subr.bf16.mxu1 %v7515_v27  ;;  %v7565_v27 = vld [vmem:[#allocation32 + $0x160] sm:$0xff]  }
0x2c25   :  { %5441 = vmatpush1.bf16.msra.mxu1 %v7513_v61  ;;  %v7567_v61 = vld [vmem:[#allocation32 + $0x120] sm:$0xff]  }
0x2c26   :  { %5442 = vmatprep.subr.bf16.mxu1 %v7521_v25  ;;  %v7569_v25 = vld [vmem:[#allocation32 + $0x168] sm:$0xff]  }
0x2c29   :  { %5443 = vmatpush1.bf16.msra.mxu1 %v7519_v16  ;;  %v7571_v16 = vld [vmem:[#allocation32 + $0x128] sm:$0xff]  }
0x2c2a   :  { %5444 = vmatprep.subr.bf16.mxu1 %v7527_v18  ;;  %v7573_v18 = vld [vmem:[#allocation32 + $0x170] sm:$0xff]  }
0x2c2d   :  { %5445 = vmatpush1.bf16.msra.mxu1 %v7525_v24  ;;  %v7575_v24 = vld [vmem:[#allocation32 + $0x130] sm:$0xff]  }
0x2c2e   :  { %5446 = vmatprep.subr.bf16.mxu1 %v7533_v20  ;;  %v7577_v20 = vld [vmem:[#allocation32 + $0x178] sm:$0xff]  }
0x2c31   :  { %5447 = vmatpush1.bf16.msra.mxu1 %v7531_v46  ;;  %v7579_v46 = vld [vmem:[#allocation32 + $0x138] sm:$0xff]  }
0x2c32   :  { %5448 = vmatprep.subr.bf16.mxu1 %v7539_v28  ;;  %v5254_v28 = vld [vmem:[#allocation31 + $0x4] sm:$0xf] }
0x2c35   :  { %5449 = vmatpush1.bf16.msra.mxu1 %v7537_v29  ;;  %v5267_v29 = vrot.slane %v5254_v28, %v2769_v40 }
0x2c36   :  { %5450 = vmatprep.subr.bf16.mxu1 %v7545_v54  ;;  %v5271_v54 = vrot.slane %v5254_v28, %v2773_v44 }
0x2c39   :  { %5451 = vmatpush1.bf16.msra.mxu1 %v7543_v51 }
0x2c3a   :  { %6711 = vmatprep.subr.bf16.mxu1 %v7549_v59 }
0x2cee   :  { %v5152_v9 = vpop.f32.mrb[80].mxu0 }
0x2cef   :  { %v5160_v33 = vrot.slane %v5152_v9, 3  ;;  %v7202_v36 = vpop.f32.mrb[81].mxu0 }
0x2cf0   :  { %v5155_v35 = vpop.f32.mrb[82].mxu0  ;;  %v6357_v36 = vld [vmem:[#allocation26 + $0x1] ss:$0 sm:$0xff] }
0x2cf1   :  { %v5162_v42 = vsel %vm953_vm2, %v9445_v39, %v5160_v33  ;;  %v5172_v41 = vadd.f32 %v6356_v32, %v5160_v33  ;;  %v7203_v48 = vpop.f32.mrb[83].mxu0  ;;  %v7512_v39 = vld [vmem:[#allocation29 + $0x12c] ss:$16 sps:$4 sm:$0xff]  }
0x2cf2   :  { %v5171_v49 = vadd.f32 %v6356_v32, %v5162_v42  ;;  %5481 = vmatprep.subr.bf16.mxu0 %v7512_v39  ;;  %v6358_v48 = vld [vmem:[#allocation28 + $0x1] ss:$0 sm:$0xff]  ;;  %v7553_v39 = vld [vmem:[#allocation32 + $0x148] sm:$0xff]  }
0x2cf3   :  { %v5174_v45 = vadd.f32 %v5172_v41, %v9238_v56  ;;  %v7510_v56 = vld [vmem:[#allocation29 + $0x128] ss:$16 sps:$4 sm:$0xff]  }
0x2cf4   :  { %v9511_v57 = vadd.f32 %v5171_v49, %v9235_v22  ;;  %5482 = vmatpush1.bf16.msra.mxu0 %v7510_v56  ;;  %v7555_v56 = vld [vmem:[#allocation32 + $0x108] sm:$0xff]  }
0x2cf5   :  { %v5181_v53 = vsel %vm961_vm0, %v5174_v45, 0.0  ;;  %5483 = vmatprep.subr.bf16.mxu0 %v7518_v31  ;;  %v7566_v31 = vld [vmem:[#allocation32 + $0x1e0] sm:$0xff]  }
0x2cf6   :  { %5182 = vadd.xlane.f32.xlu1 %v5181_v53 }
0x2cf8   :  { %5484 = vmatpush1.bf16.msra.mxu0 %v7516_v12  ;;  %v7568_v12 = vld [vmem:[#allocation32 + $0x1a0] sm:$0xff]  }
0x2cf9   :  { %5485 = vmatprep.subr.bf16.mxu0 %v7524_v23  ;;  %v7570_v23 = vld [vmem:[#allocation32 + $0x1e8] sm:$0xff]  }
0x2cfa   :  { %5179 = vadd.xlane.f32.xlu1 %v9511_v57 }
0x2cfc   :  { %5486 = vmatpush1.bf16.msra.mxu0 %v7522_v17  ;;  %v7572_v17 = vld [vmem:[#allocation32 + $0x1a8] sm:$0xff]  }
0x2cfd   :  { %5487 = vmatprep.subr.bf16.mxu0 %v7530_v3  ;;  %v7574_v3 = vld [vmem:[#allocation32 + $0x1f0] sm:$0xff]  }
0x2d00   :  { %5488 = vmatpush1.bf16.msra.mxu0 %v7528_v19  ;;  %v7576_v19 = vld [vmem:[#allocation32 + $0x1b0] sm:$0xff]  }
0x2d01   :  { %5489 = vmatprep.subr.bf16.mxu0 %v7536_v38  ;;  %v7578_v38 = vld [vmem:[#allocation32 + $0x1f8] sm:$0xff]  }
0x2d04   :  { %5490 = vmatpush1.bf16.msra.mxu0 %v7534_v26  ;;  %v7580_v26 = vld [vmem:[#allocation32 + $0x1b8] sm:$0xff]  }
0x2d05   :  { %5491 = vmatprep.subr.bf16.mxu0 %v7542_v37  ;;  %v5259_v37 = vrot.slane %v5254_v28, %v8853_v21 }
0x2d08   :  { %5492 = vmatpush1.bf16.msra.mxu0 %v7540_v30  ;;  %v5263_v30 = vrot.slane %v5254_v28, %v2765_v43 }
0x2d09   :  { %5493 = vmatprep.subr.bf16.mxu0 %v7548_v15 }
0x2d0c   :  { %5494 = vmatpush1.bf16.msra.mxu0 %v7546_v0 }
0x2d0d   :  { %6733 = vmatprep.subr.bf16.mxu0 %v7550_v10 }
0x2d83   :  { %v5183_v22 = vpop.xlane.xlu1 %5182 }
0x2d84   :  { %v5185_v62 = vmul.f32 0.0078125, %v5183_v22  ;;  %v7556_v22 = vld [vmem:[#allocation32 + $0x188] sm:$0xff]  }
0x2d86   :  { %v9514_v4 = vsub.f32 %v5174_v45, %v5185_v62  ;;  %v7557_v62 = vld [vmem:[#allocation32 + $0x150] sm:$0xff]  }
0x2d87   :  { %v5180_v1 = vpop.xlane.xlu1 %5179 }
0x2d88   :  { %v5184_v14 = vmul.f32 0.0078125, %v5180_v1  ;;  %v5189_v6 = vmul.f32 %v9514_v4, %v9514_v4  ;;  %v7558_v1 = vld [vmem:[#allocation32 + $0x1d0] sm:$0xff]  }
0x2d8a   :  { %v9517_v47 = vsub.f32 %v9511_v57, %v5184_v14  ;;  %v5192_v7 = vsel %vm961_vm0, %v5189_v6, 0.0  ;;  %v7559_v14 = vld [vmem:[#allocation32 + $0x110] sm:$0xff]   ;;  %v7563_v6 = vld [vmem:[#allocation32 + $0x118] sm:$0xff]  }
0x2d8c   :  { %v5188_v63 = vmul.f32 %v9517_v47, %v9517_v47 }
0x2d8e   :  { %5190 = vadd.xlane.f32.xlu1 %v5188_v63  ;;  %v7562_v63 = vld [vmem:[#allocation32 + $0x1d8] sm:$0xff]  }
0x2d92   :  { %5193 = vadd.xlane.f32.xlu1 %v5192_v7  ;;  %v7564_v7 = vld [vmem:[#allocation32 + $0x198] sm:$0xff]  }
0x2e1b   :  { %v5191_v50 = vpop.xlane.xlu1 %5190 }
0x2e1c   :  { %v5195_v5 = vmul.f32 0.0078125, %v5191_v50 }
0x2e1e   :  { %v5197_v2 = vadd.f32 1e-06, %v5195_v5 }
0x2e1f   :  { %v5194_v58 = vpop.xlane.xlu1 %5193 }
0x2e20   :  { %7681 = vrsqrt.f32 %v5197_v2  ;;  %v5196_v8 = vmul.f32 0.0078125, %v5194_v58 }
0x2e22   :  { %v5198_v9 = vadd.f32 1e-06, %v5196_v8 }
0x2e24   :  { %7683 = vrsqrt.f32 %v5198_v9 }
0x2e2a   :  { %v7682_v32 = vpop.eup %7681 }
0x2e2b   :  { %v5201_v33 = vmul.f32 %v7682_v32, %v9517_v47  ;;  %v7561_v47 = vld [vmem:[#allocation32 + $0x158] sm:$0xff]  }
0x2e2d   :  { %v5209_v41 = vmul.f32 %v6357_v36, %v5201_v33 }
0x2e2e   :  { %v7684_v35 = vpop.eup %7683 }
0x2e2f   :  { %v5202_v42 = vmul.f32 %v7684_v35, %v9514_v4  ;;  %v5217_v49 = vadd.f32 %v6358_v48, %v5209_v41  ;;  %v7560_v4 = vld [vmem:[#allocation32 + $0x190] sm:$0xff]  }
0x2e31   :  { %v5210_v45 = vmul.f32 %v6357_v36, %v5202_v42 }
0x2e33   :  { %v5218_v53 = vadd.f32 %v6358_v48, %v5210_v45 }
0x2e35   :  { %v5219_v52 = vpack.c.bf16 %v5218_v53, %v5217_v49 }
0x2e37   :  { %5469 = vmatmul.mubr.bf16.vlgmr.msra.gmra.mrb[108].mxu1 %v5219_v52  ;;  %5512 = vmatmul.mubr.bf16.vlgmr.msra.gmra.mrb[88].mxu0 %v5219_v52 }
0x2e38   :  { %6712 = vmatpush3.bf16.msra.mxu1 %v7551_v13  ;;  %6734 = vmatpush3.bf16.msra.mxu0 %v7552_v60 }
0x2e39   :  { %6713 = vmatprep.subr.bf16.mxu1 %v7553_v39  ;;  %6735 = vmatprep.subr.bf16.mxu0 %v7554_v55 }
0x2e3c   :  { %6714 = vmatpush3.bf16.msra.mxu1 %v7555_v56  ;;  %6736 = vmatpush3.bf16.msra.mxu0 %v7556_v22 }
0x2e3d   :  { %6715 = vmatprep.subr.bf16.mxu1 %v7557_v62  ;;  %6737 = vmatprep.subr.bf16.mxu0 %v7558_v1 }
0x2e40   :  { %6716 = vmatpush3.bf16.msra.mxu1 %v7559_v14  ;;  %6738 = vmatpush3.bf16.msra.mxu0 %v7560_v4 }
0x2e41   :  { %6717 = vmatprep.subr.bf16.mxu1 %v7561_v47  ;;  %6739 = vmatprep.subr.bf16.mxu0 %v7562_v63 }
0x2e44   :  { %6718 = vmatpush3.bf16.msra.mxu1 %v7563_v6  ;;  %6740 = vmatpush3.bf16.msra.mxu0 %v7564_v7 }
0x2e45   :  { %6719 = vmatprep.subr.bf16.mxu1 %v7565_v27  ;;  %6741 = vmatprep.subr.bf16.mxu0 %v7566_v31 }
0x2e48   :  { %6720 = vmatpush3.bf16.msra.mxu1 %v7567_v61  ;;  %6742 = vmatpush3.bf16.msra.mxu0 %v7568_v12 }
0x2e49   :  { %6721 = vmatprep.subr.bf16.mxu1 %v7569_v25  ;;  %6743 = vmatprep.subr.bf16.mxu0 %v7570_v23 }
0x2e4c   :  { %6722 = vmatpush3.bf16.msra.mxu1 %v7571_v16  ;;  %6744 = vmatpush3.bf16.msra.mxu0 %v7572_v17 }
0x2e4d   :  { %6723 = vmatprep.subr.bf16.mxu1 %v7573_v18  ;;  %6745 = vmatprep.subr.bf16.mxu0 %v7574_v3 }
0x2e50   :  { %6724 = vmatpush3.bf16.msra.mxu1 %v7575_v24  ;;  %6746 = vmatpush3.bf16.msra.mxu0 %v7576_v19 }
0x2e51   :  { %6725 = vmatprep.subr.bf16.mxu1 %v7577_v20  ;;  %6747 = vmatprep.subr.bf16.mxu0 %v7578_v38 }
0x2e54   :  { %6726 = vmatpush3.bf16.msra.mxu1 %v7579_v46  ;;  %6748 = vmatpush3.bf16.msra.mxu0 %v7580_v26 }
0x2e55   :  { %7204 = vmatprep.subr.bf16.mxu1 %v8333_v34 }
0x2f0a   :  { %v5470_v15 = vpop.f32.mrb[108].mxu1  ;;  %v5513_v51 = vpop.f32.mrb[88].mxu0 }
0x2f0b   :  { %v9534_v0 = vadd.f32 %v5470_v15, %v5259_v37  ;;  %v9536_v50 = vadd.f32 %v5513_v51, %v5267_v29  ;;  %v5472_v5 = vpop.f32.mrb[109].mxu1  ;;  %v5515_v2 = vpop.f32.mrb[89].mxu0 }
0x2f0c   :  { %v9538_v58 = vadd.f32 %v5472_v5, %v5263_v30  ;;  %v9540_v21 = vadd.f32 %v5515_v2, %v5271_v54  ;;  %v5474_v8 = vpop.f32.mrb[110].mxu1  ;;  %v5517_v40 = vpop.f32.mrb[90].mxu0 }
0x2f0d   :  { %v5522_v43 = vmul.f32 %v9534_v0, %v9534_v0  ;;  %v5524_v11 = vmul.f32 %v9536_v50, %v9536_v50  ;;  %v9546_v44 = vadd.f32 %v5474_v8, %v5259_v37  ;;  %v9548_v9 = vadd.f32 %v5517_v40, %v5267_v29  ;;  %v5476_v32 = vpop.f32.mrb[111].mxu1  ;;  %v5519_v33 = vpop.f32.mrb[91].mxu0 }
0x2f0e   :  { %v5523_v36 = vmul.f32 %v9538_v58, %v9538_v58  ;;  %v5525_v35 = vmul.f32 %v9540_v21, %v9540_v21  ;;  %v9554_v42 = vadd.f32 %v5476_v32, %v5263_v30  ;;  %v9556_v41 = vadd.f32 %v5519_v33, %v5271_v54 }
0x2f0f   :  { %v5530_v48 = vmul.f32 %v5522_v43, %v9534_v0  ;;  %v5532_v45 = vmul.f32 %v5524_v11, %v9536_v50  ;;  %v5526_v49 = vmul.f32 %v9546_v44, %v9546_v44  ;;  %v5528_v53 = vmul.f32 %v9548_v9, %v9548_v9 }
0x2f10   :  { %v5531_v52 = vmul.f32 %v5523_v36, %v9538_v58  ;;  %v5533_v59 = vmul.f32 %v5525_v35, %v9540_v21  ;;  %v5527_v10 = vmul.f32 %v9554_v42, %v9554_v42  ;;  %v5529_v13 = vmul.f32 %v9556_v41, %v9556_v41 }
0x2f11   :  { %v5538_v60 = vmul.f32 0.044715, %v5530_v48  ;;  %v5540_v39 = vmul.f32 0.044715, %v5532_v45  ;;  %v5534_v55 = vmul.f32 %v5526_v49, %v9546_v44  ;;  %v5536_v56 = vmul.f32 %v5528_v53, %v9548_v9 }
0x2f12   :  { %v5539_v22 = vmul.f32 0.044715, %v5531_v52  ;;  %v5541_v62 = vmul.f32 0.044715, %v5533_v59  ;;  %v5535_v1 = vmul.f32 %v5527_v10, %v9554_v42  ;;  %v5537_v14 = vmul.f32 %v5529_v13, %v9556_v41 }
0x2f13   :  { %v5546_v4 = vadd.f32 %v5538_v60, %v9534_v0  ;;  %v5548_v47 = vadd.f32 %v5540_v39, %v9536_v50  ;;  %v5542_v63 = vmul.f32 0.044715, %v5534_v55  ;;  %v5544_v6 = vmul.f32 0.044715, %v5536_v56 }
0x2f14   :  { %v5547_v7 = vadd.f32 %v5539_v22, %v9538_v58  ;;  %v5549_v27 = vadd.f32 %v5541_v62, %v9540_v21  ;;  %v5543_v31 = vmul.f32 0.044715, %v5535_v1  ;;  %v5545_v61 = vmul.f32 0.044715, %v5537_v14 }
0x2f15   :  { %v5554_v12 = vmul.f32 0.7978846, %v5546_v4  ;;  %v5556_v25 = vmul.f32 0.7978846, %v5548_v47  ;;  %v5550_v23 = vadd.f32 %v5542_v63, %v9546_v44  ;;  %v5552_v16 = vadd.f32 %v5544_v6, %v9548_v9 }
0x2f16   :  { %v5555_v17 = vmul.f32 0.7978846, %v5547_v7  ;;  %v5557_v18 = vmul.f32 0.7978846, %v5549_v27  ;;  %v5551_v3 = vadd.f32 %v5543_v31, %v9554_v42  ;;  %v5553_v24 = vadd.f32 %v5545_v61, %v9556_v41 }
0x2f17   :  { %7685 = vtanh.f32 %v5554_v12  ;;  %v5558_v19 = vmul.f32 0.7978846, %v5550_v23  ;;  %v5560_v20 = vmul.f32 0.7978846, %v5552_v16  ;;  %v7581_v16 = vld [vmem:[#allocation38] sm:$0xff]  }
0x2f18   :  { %7687 = vtanh.f32 %v5556_v25  ;;  %v5559_v38 = vmul.f32 0.7978846, %v5551_v3  ;;  %v5561_v46 = vmul.f32 0.7978846, %v5553_v24 }
0x2f19   :  { %7689 = vtanh.f32 %v5555_v17  ;;  %v7582_v17 = vld [vmem:[#allocation38 + $0x8] sm:$0xff]  }
0x2f1a   :  { %7691 = vtanh.f32 %v5557_v18 }
0x2f1b   :  { %7693 = vtanh.f32 %v5558_v19 }
0x2f1c   :  { %7695 = vtanh.f32 %v5560_v20  ;;  %v7583_v20 = vld [vmem:[#allocation38 + $0x10] sm:$0xff]  }
0x2f1d   :  { %7697 = vtanh.f32 %v5559_v38  ;;  %v7584_v38 = vld [vmem:[#allocation38 + $0x18] sm:$0xff]  }
0x2f1e   :  { %7699 = vtanh.f32 %v5561_v46  ;;  %v7585_v46 = vld [vmem:[#allocation38 + $0x20] sm:$0xff]  }
0x2f21   :  { %v7686_v26 = vpop.eup %7685 }
0x2f22   :  { %v7688_v28 = vpop.eup %7687  ;;  %v5570_v37 = vadd.f32 1.0, %v7686_v26  ;;  %v7586_v26 = vld [vmem:[#allocation38 + $0x28] sm:$0xff]  }
0x2f23   :  { %v7690_v29 = vpop.eup %7689  ;;  %v5572_v30 = vadd.f32 1.0, %v7688_v28  ;;  %v7587_v28 = vld [vmem:[#allocation38 + $0x30] sm:$0xff]  }
0x2f24   :  { %v7692_v54 = vpop.eup %7691  ;;  %v5571_v15 = vadd.f32 1.0, %v7690_v29  ;;  %v5578_v8 = vmul.f32 0.5, %v5570_v37  ;;  %v7588_v37 = vld [vmem:[#allocation38 + $0x38] sm:$0xff]  }
0x2f25   :  { %v7694_v51 = vpop.eup %7693  ;;  %v5573_v5 = vadd.f32 1.0, %v7692_v54  ;;  %v5580_v11 = vmul.f32 0.5, %v5572_v30 }
0x2f26   :  { %v7696_v2 = vpop.eup %7695  ;;  %v5574_v40 = vadd.f32 1.0, %v7694_v51  ;;  %v5579_v48 = vmul.f32 0.5, %v5571_v15  ;;  %v5586_v52 = vmul.f32 %v5578_v8, %v9534_v0  ;;  %v6424_v51 = vld [vmem:[#allocation35] ss:$0 sm:$0xff] }
0x2f27   :  { %v7698_v43 = vpop.eup %7697  ;;  %v5576_v32 = vadd.f32 1.0, %v7696_v2  ;;  %v5581_v53 = vmul.f32 0.5, %v5573_v5  ;;  %v5588_v13 = vmul.f32 %v5580_v11, %v9536_v50  ;;  %v6425_v2 = vld [vmem:[#allocation37] ss:$0 sm:$0xff]  ;;  %v6426_v11 = vld [vmem:[#allocation40] ss:$0 sm:$0xff] }
0x2f28   :  { %v7700_v33 = vpop.eup %7699  ;;  %v5582_v36 = vmul.f32 0.5, %v5574_v40  ;;  %v5575_v35 = vadd.f32 1.0, %v7698_v43  ;;  %v5587_v55 = vmul.f32 %v5579_v48, %v9538_v58  ;;  %v6391_v58 = vld [vmem:[#allocation34 + $0x1] ss:$0 sm:$0xff] }
0x2f29   :  { %v5584_v45 = vmul.f32 0.5, %v5576_v32  ;;  %v5577_v49 = vadd.f32 1.0, %v7700_v33  ;;  %v5589_v62 = vmul.f32 %v5581_v53, %v9540_v21 }
0x2f2a   :  { %v5590_v59 = vmul.f32 %v5582_v36, %v9546_v44  ;;  %v5583_v10 = vmul.f32 0.5, %v5575_v35 }
0x2f2b   :  { %v5592_v60 = vmul.f32 %v5584_v45, %v9548_v9  ;;  %v5585_v39 = vmul.f32 0.5, %v5577_v49 }
0x2f2c   :  { %v5591_v56 = vmul.f32 %v5583_v10, %v9554_v42  ;;  %v5594_v22 = vpack.c.bf16 %v5590_v59, %v5586_v52 }
0x2f2d   :  { %v5593_v1 = vmul.f32 %v5585_v39, %v9556_v41  ;;  %v5596_v14 = vpack.c.bf16 %v5592_v60, %v5588_v13 }
0x2f2e   :  { %v5595_v4 = vpack.c.bf16 %v5591_v56, %v5587_v55 }
0x2f2f   :  { %v5597_v0 = vpack.c.bf16 %v5593_v1, %v5589_v62 }
0x2f30   :  { %5895 = vmatprep.mubr.bf16.mxu1 %v5595_v4 }
0x2f31   :  { %5935 = vmatprep.mubr.bf16.mxu0 %v5597_v0  ;;  %5896 = vmatmul.mubr.bf16.vlgmr.msra.gmra.mrb[112].mxu1 %v5594_v22 }
0x2f32   :  { %5936 = vmatmul.mubr.bf16.vlgmr.msra.gmra.mrb[92].mxu0 %v5596_v14  ;;  %7220 = vmatprep.mubr.msk.bf16.mxu1 %vm8334_vm4, %v8333_v34 }
0x2f33   :  { %7205 = vmatpush3.bf16.msra.mxu1 %v7581_v16 }
0x2f34   :  { %7206 = vmatprep.subr.bf16.mxu1 %v8333_v34 }
0x2f37   :  { %7207 = vmatpush3.bf16.msra.mxu1 %v7582_v17 }
0x2f38   :  { %7208 = vmatprep.subr.bf16.mxu1 %v8333_v34 }
0x2f3b   :  { %7209 = vmatpush3.bf16.msra.mxu1 %v7583_v20 }
0x2f3c   :  { %7210 = vmatprep.subr.bf16.mxu1 %v8333_v34 }
0x2f3f   :  { %7211 = vmatpush3.bf16.msra.mxu1 %v7584_v38 }
0x2f40   :  { %7212 = vmatprep.subr.bf16.mxu1 %v8333_v34 }
0x2f43   :  { %7213 = vmatpush3.bf16.msra.mxu1 %v7585_v46 }
0x2f44   :  { %7214 = vmatprep.subr.bf16.mxu1 %v8333_v34 }
0x2f47   :  { %7215 = vmatpush3.bf16.msra.mxu1 %v7586_v26 }
0x2f48   :  { %7216 = vmatprep.subr.bf16.mxu1 %v8333_v34 }
0x2f4b   :  { %7217 = vmatpush3.bf16.msra.mxu1 %v7587_v28 }
0x2f4c   :  { %7218 = vmatprep.subr.bf16.mxu1 %v8333_v34 }
0x2f4f   :  { %7219 = vmatpush3.bf16.msra.mxu1 %v7588_v37 }
0x3004   :  { %v6727_v50 = vpop.f32.mrb[112].mxu1 }
0x3005   :  { %v6749_v44 = vpop.f32.mrb[92].mxu0  ;;  %v6728_v9 = vpop.f32.mrb[113].mxu1 }
0x3006   :  { %v6729_v42 = vadd.f32 %v6728_v9, %v6727_v50  ;;  %v6750_v47 = vpop.f32.mrb[93].mxu0  ;;  %v6730_v63 = vpop.f32.mrb[114].mxu1 }
0x3007   :  { %v6751_v21 = vadd.f32 %v6750_v47, %v6749_v44  ;;  %v6752_v6 = vpop.f32.mrb[94].mxu0  ;;  %v6731_v41 = vpop.f32.mrb[115].mxu1 }
0x3008   :  { %v5898_v7 = vadd.f32 %v6729_v42, %v6391_v58  ;;  %v6753_v27 = vpop.f32.mrb[95].mxu0 }
0x300a   :  { %v5938_v31 = vadd.f32 %v6751_v21, %v5898_v7 }
0x300c   :  { %v5943_v61 = vadd.f32 %v5938_v31, %v9511_v57 }
0x300e   :  { %v5945_v12 = vrot.slane %v5943_v61, 4 }
0x3010   :  { %v5947_v25 = vsel %vm951_vm1, %v5943_v61, %v5945_v12 }
0x3011   :  { %v5950_v23 = vsel %vm961_vm0, %v5947_v25, 0.0 }
0x3012   :  { %5951 = vadd.xlane.f32.xlu0 %v5950_v23 }
0x309f   :  { %v5952_v18 = vpop.xlane.xlu0 %5951 }
0x30a0   :  { %v5953_v3 = vmul.f32 0.0078125, %v5952_v18 }
0x30a2   :  { %v5954_v24 = vsub.f32 %v5947_v25, %v5953_v3 }
0x30a4   :  { %v5955_v19 = vmul.f32 %v5954_v24, %v5954_v24 }
0x30a6   :  { %v5956_v57 = vsel %vm961_vm0, %v5955_v19, 0.0 }
0x30a7   :  { %5957 = vadd.xlane.f32.xlu1 %v5956_v57 }
0x3134   :  { %v5958_v29 = vpop.xlane.xlu1 %5957 }
0x3135   :  { %v5959_v30 = vmul.f32 0.0078125, %v5958_v29 }
0x3137   :  { %v5960_v54 = vadd.f32 1e-06, %v5959_v30 }
0x3139   :  { %7701 = vrsqrt.f32 %v5960_v54 }
0x3143   :  { %v7702_v15 = vpop.eup %7701 }
0x3144   :  { %v5962_v5 = vmul.f32 %v7702_v15, %v5954_v24 }
0x3146   :  { %v5969_v8 = vmul.f32 %v6424_v51, %v5962_v5 }
0x3148   :  { %v5976_v40 = vadd.f32 %v6425_v2, %v5969_v8 }
0x314a   :  { %v5977_v43 = vpack.c.bf16 %v5976_v40, %v5976_v40 }
0x314c   :  { %7221 = vmatmul.mubr.bf16.vlgmr.msra.gmra.mrb[116].mxu1 %v5977_v43 }
0x321f   :  { %v6083_v32 = vpop.f32.mrb[116].mxu1 }
0x3220   :  { %v6084_v33 = vadd.f32 %v6426_v11, %v6083_v32  ;;  %v7222_v36 = vpop.f32.mrb[117].mxu1 }
0x3221   :  { %v6086_v34 = vpop.f32.mrb[118].mxu1 }
0x3222   :  { %6089 = vst [vmem:[#allocation41] sm:$0x3] %v6084_v33  ;;  %v7223_v35 = vpop.f32.mrb[119].mxu1 }
0x3223   :  { %8264 = shalt.err (!%p8261_p8)
}
0x3224   :  { %s9688_s0 = sld [smem:[#allocation68_spill]] }
0x322a   :  { %s8265_s23 = scalar_lea.hbm %s9688_s0, 32 }
0x322b   :  { %p8266_p9 = scmp.ne.s32.totalorder %s9688_s0, %s8265_s23  ;;  %p8269_p10 = scmp.lt.u32.totalorder %s8265_s23, %s9688_s0 }
0x322d   :  { %p8271_p11 = pnand %p8269_p10, %p8266_p9 }
0x322f   :  { %8274 = shalt.err (!%p8271_p11)
}
0x3230   :  { %6099 = dma.vmem_to_hbm [thread:$0]  %s6097_s10, 32, %s9688_s0, [#allocation4]  }
0x3231   :  { %8301 = dma.done.wait [#allocation4], 32  }
0x3232   :  { %8302 = vsyncadd [#allocation4], 4294967264 }
0x3233   :  { %6103 = vsyncpa [#allocation3], 1 }
0x3234   :  { %6104 = vsyncpa [#allocation6], 1 }
0x3235   :  { %6105 = vsyncpa [#allocation9], 1 }
0x3236   :  { %6106 = vsyncpa [#allocation12], 1 }
0x3237   :  { %6107 = vsyncpa [#allocation15], 1 }
0x3238   :  { %6108 = vsyncpa [#allocation18], 1 }
0x3239   :  { %6109 = vsyncpa [#allocation21], 1 }
0x323a   :  { %6110 = vsyncpa [#allocation24], 1 }
0x323b   :  { %6111 = vsyncpa [#allocation27], 1 }
0x323c   :  { %6112 = vsyncpa [#allocation30], 1 }
0x323d   :  { %6113 = vsyncpa [#allocation33], 1 }
0x323e   :  { %6114 = vsyncpa [#allocation36], 1 }
0x323f   :  { %6115 = vsyncpa [#allocation39], 1 }
0x3240   :  { %6116 = vsyncpa [#allocation4], 1 }

</bundles_post_ra>
